<compile_context>
chip_gen: v7x
topology: tpu7x:2x2x1
jax: 0.10.0
libtpu: 0.0.40
codegen_flags: <defaults>
</compile_context>

<pallas_src>
import functools
import numpy as np
import jax
import jax.numpy as jnp
from jax.experimental import pallas as pl
from jax.experimental.pallas import tpu as pltpu

CHANS = (128, 64, 32, 16, 8, 4, 2, 1)   # conv chain 128 -> ... -> 1
KPAD = 9 * CHANS[0]                     # widest im2col K (layer 1)


def _fused_kernel(nb, H, W, *refs):
    """One grid step processes `nb` batch elements.

    refs:
      [0]      x      (nb, H, W, 128)        f32
      [1:8]    w_l    (9*cin_l, cout_l)      bf16
      [8:15]   b_l    (1, cout_l)            f32
      [15]     pbig   (nb*H*W, 128)          f32  adaptive-pool matrix (W-mean folded in)
      [16]     sel    (nb, nb*H*W)           f32  per-batch-element row selector
      [17]     wfc    (128, 1)               f32
      [18]     bfc    (1, 1)                 f32
      [19]     out    (nb, 1)                f32
      [20:27]  act_l  (nb, H+2, W+2, cin_l)  f32  zero-padded activations (VMEM)
      [27]     col    (nb*H*W, 9*128)        f32  im2col scratch (VMEM)
    """
    x_ref = refs[0]
    w_refs = refs[1:8]
    b_refs = refs[8:15]
    pbig_ref, sel_ref, wfc_ref, bfc_ref = refs[15:19]
    o_ref = refs[19]
    act_refs = refs[20:27]
    col_ref = refs[27]

    HW = H * W

    # Zero padded-activation buffers (the 1-pixel halo must be zero).
    for a in act_refs:
        a[...] = jnp.zeros_like(a)

    # Input -> interior of the first padded buffer (full 128 lanes).
    for bi in range(nb):
        act_refs[0][bi, 1:H + 1, 1:W + 1, :] = x_ref[bi]

    y = None
    for l in range(7):                       # unrolled: static shapes per layer
        cin, cout = CHANS[l], CHANS[l + 1]
        src = act_refs[l]
        # Build im2col: col[:, tap*cin:(tap+1)*cin] = shifted (H,W) patch.
        for bi in range(nb):
            for tap in range(9):
                dy, dx = tap // 3, tap % 3
                patch = src[bi, dy:dy + H, dx:dx + W, :]          # (H, W, cin)
                col_ref[bi * HW:(bi + 1) * HW,
                        tap * cin:(tap + 1) * cin] = patch.reshape(HW, cin)
        colv = col_ref[:, :9 * cin].astype(jnp.bfloat16)          # (M, 9*cin)
        y = jnp.dot(colv, w_refs[l][...],
                    preferred_element_type=jnp.float32) + b_refs[l][...]
        if l < 6:
            dst = act_refs[l + 1]
            for bi in range(nb):
                dst[bi, 1:H + 1, 1:W + 1, :] = (
                    y[bi * HW:(bi + 1) * HW, :].reshape(H, W, cout))

    # Head: AdaptiveAvgPool2d((128,1)) + flatten + Linear(128,1).
    # y is (M, 1) with M = nb*H*W; pooled[b, i] = sum_{h,w} y[b,h,w] * P[h, i].
    weighted = y * pbig_ref[...]                                   # (M, 128)
    pooled = jnp.dot(sel_ref[...], weighted,
                     preferred_element_type=jnp.float32)           # (nb, 128)
    o_ref[...] = jnp.dot(pooled, wfc_ref[...],
                         preferred_element_type=jnp.float32) + bfc_ref[...]


def _adaptive_pool_vectors(H, W, nb, out_h=128):
    """AdaptiveAvgPool2d((out_h, 1)) on a single-channel (H, W) map as a linear
    map; out_h > H replicates rows (PyTorch semantics). Returns:
       pbig (nb*H*W, out_h), sel (nb, nb*H*W)."""
    P = np.zeros((H, out_h), np.float32)
    for i in range(out_h):
        s = (i * H) // out_h
        e = -((-(i + 1) * H) // out_h)       # ceil((i+1)*H / out_h)
        P[s:e, i] = 1.0 / ((e - s) * W)      # W-mean folded into the scale
    pfull = np.repeat(P, W, axis=0)          # row h*W + w -> P[h]
    pbig = np.tile(pfull, (nb, 1))
    sel = np.kron(np.eye(nb, dtype=np.float32),
                  np.ones((1, H * W), np.float32))
    return jnp.asarray(pbig), jnp.asarray(sel)


def init_params(key):
    """Deterministic PyTorch-like uniform fan-in init. Conv weights stored as
    (9*Cin, Cout) bf16 with row index (dy*3+dx)*Cin + ci."""
    convs = []
    for cin, cout in zip(CHANS[:-1], CHANS[1:]):
        key, kw, kb = jax.random.split(key, 3)
        bound = 1.0 / np.sqrt(cin * 9)
        w = jax.random.uniform(kw, (3, 3, cin, cout), jnp.float32,
                               -bound, bound).reshape(9 * cin, cout)
        b = jax.random.uniform(kb, (1, cout), jnp.float32, -bound, bound)
        convs.append((w.astype(jnp.bfloat16), b))
    key, kw, kb = jax.random.split(key, 3)
    bound = 1.0 / np.sqrt(128)
    wfc = jax.random.uniform(kw, (128, 1), jnp.float32, -bound, bound)
    bfc = jax.random.uniform(kb, (1, 1), jnp.float32, -bound, bound)
    return convs, wfc, bfc


@jax.jit
def network_forward(x_nchw, params):
    convs, wfc, bfc = params
    feat_map = x_nchw                                    # returned unchanged
    B, C, H, W = x_nchw.shape
    assert C == CHANS[0]
    x_nhwc = jnp.transpose(x_nchw, (0, 2, 3, 1))         # NCHW -> NHWC (once)

    nblk = 2 if B % 2 == 0 else 1   # 2 parallel batch blocks -> v7x's 2 TCs
    nb = B // nblk                  # batch elements merged into matmul M per step
    HW = H * W
    Hp, Wp = H + 2, W + 2

    pbig, sel = _adaptive_pool_vectors(H, W, nb)
    ws = [w for w, _ in convs]
    bs = [b for _, b in convs]
    operands = [x_nhwc] + ws + bs + [pbig, sel, wfc, bfc]

    def const_spec(a):
        nd = a.ndim
        return pl.BlockSpec(a.shape, lambda i, _nd=nd: (0,) * _nd)

    in_specs = [pl.BlockSpec((nb, H, W, CHANS[0]), lambda i: (i, 0, 0, 0))]
    in_specs += [const_spec(a) for a in operands[1:]]

    out = pl.pallas_call(
        functools.partial(_fused_kernel, nb, H, W),
        out_shape=jax.ShapeDtypeStruct((nblk, nb, 1), jnp.float32),
        grid=(nblk,),
        in_specs=in_specs,
        out_specs=pl.BlockSpec((None, nb, 1), lambda i: (i, 0, 0)),
        scratch_shapes=(
            [pltpu.VMEM((nb, Hp, Wp, c), jnp.float32) for c in CHANS[:-1]]
            + [pltpu.VMEM((nb * HW, KPAD), jnp.float32)]),
        compiler_params=pltpu.CompilerParams(
            dimension_semantics=("parallel",)),
    )(*operands)

    scale_vec = out.reshape(B, 1)
    return {'scale_vec': scale_vec, 'feat_map': feat_map}


if __name__ == "__main__":
    key = jax.random.PRNGKey(0)
    kx, kp = jax.random.split(key)
    # NCHW input matching nn.Conv2d(128, ...): batch=2, spatial 8x8.
    x = jax.random.normal(kx, (2, 128, 8, 8), jnp.float32)
    params = init_params(kp)
    out = network_forward(x, params)
    jax.block_until_ready(out['scale_vec'])
    assert out['scale_vec'].shape == (2, 1)
    assert out['feat_map'].shape == (2, 128, 8, 8)
    print("KERNEL_OK")
</pallas_src>

<mosaic_0001>
module attributes {stable_mosaic.version = 11 : i64} {
  func.func @_fused_kernel(%arg0: i32, %arg1: memref<1x8x8x128xf32, #tpu.memory_space<vmem>>, %arg2: memref<1152x64xbf16, #tpu.memory_space<vmem>>, %arg3: memref<576x32xbf16, #tpu.memory_space<vmem>>, %arg4: memref<288x16xbf16, #tpu.memory_space<vmem>>, %arg5: memref<144x8xbf16, #tpu.memory_space<vmem>>, %arg6: memref<72x4xbf16, #tpu.memory_space<vmem>>, %arg7: memref<36x2xbf16, #tpu.memory_space<vmem>>, %arg8: memref<18x1xbf16, #tpu.memory_space<vmem>>, %arg9: memref<1x64xf32, #tpu.memory_space<vmem>>, %arg10: memref<1x32xf32, #tpu.memory_space<vmem>>, %arg11: memref<1x16xf32, #tpu.memory_space<vmem>>, %arg12: memref<1x8xf32, #tpu.memory_space<vmem>>, %arg13: memref<1x4xf32, #tpu.memory_space<vmem>>, %arg14: memref<1x2xf32, #tpu.memory_space<vmem>>, %arg15: memref<1x1xf32, #tpu.memory_space<vmem>>, %arg16: memref<64x128xf32, #tpu.memory_space<vmem>>, %arg17: memref<1x64xf32, #tpu.memory_space<vmem>>, %arg18: memref<128x1xf32, #tpu.memory_space<vmem>>, %arg19: memref<1x1xf32, #tpu.memory_space<vmem>>, %arg20: memref<1x1x1xf32, #tpu.memory_space<vmem>>, %arg21: memref<1x10x10x128xf32, #tpu.memory_space<vmem>>, %arg22: memref<1x10x10x64xf32, #tpu.memory_space<vmem>>, %arg23: memref<1x10x10x32xf32, #tpu.memory_space<vmem>>, %arg24: memref<1x10x10x16xf32, #tpu.memory_space<vmem>>, %arg25: memref<1x10x10x8xf32, #tpu.memory_space<vmem>>, %arg26: memref<1x10x10x4xf32, #tpu.memory_space<vmem>>, %arg27: memref<1x10x10x2xf32, #tpu.memory_space<vmem>>, %arg28: memref<64x1152xf32, #tpu.memory_space<vmem>>) attributes {dimension_semantics = [#tpu.dimension_semantics<parallel>], iteration_bounds = array<i64: 2>, scalar_prefetch = 0 : i64, scratch_operands = 8 : i64, tpu.core_type = #tpu.core_type<tc>, window_params = [{transform_indices = @transform_0, window_bounds = array<i64: 1, 8, 8, 128>}, {pipeline_mode = #tpu.pipeline_mode<synchronous>, transform_indices = @transform_1, window_bounds = array<i64: 1152, 64>}, {pipeline_mode = #tpu.pipeline_mode<synchronous>, transform_indices = @transform_2, window_bounds = array<i64: 576, 32>}, {pipeline_mode = #tpu.pipeline_mode<synchronous>, transform_indices = @transform_3, window_bounds = array<i64: 288, 16>}, {pipeline_mode = #tpu.pipeline_mode<synchronous>, transform_indices = @transform_4, window_bounds = array<i64: 144, 8>}, {pipeline_mode = #tpu.pipeline_mode<synchronous>, transform_indices = @transform_5, window_bounds = array<i64: 72, 4>}, {pipeline_mode = #tpu.pipeline_mode<synchronous>, transform_indices = @transform_6, window_bounds = array<i64: 36, 2>}, {pipeline_mode = #tpu.pipeline_mode<synchronous>, transform_indices = @transform_7, window_bounds = array<i64: 18, 1>}, {pipeline_mode = #tpu.pipeline_mode<synchronous>, transform_indices = @transform_8, window_bounds = array<i64: 1, 64>}, {pipeline_mode = #tpu.pipeline_mode<synchronous>, transform_indices = @transform_9, window_bounds = array<i64: 1, 32>}, {pipeline_mode = #tpu.pipeline_mode<synchronous>, transform_indices = @transform_10, window_bounds = array<i64: 1, 16>}, {pipeline_mode = #tpu.pipeline_mode<synchronous>, transform_indices = @transform_11, window_bounds = array<i64: 1, 8>}, {pipeline_mode = #tpu.pipeline_mode<synchronous>, transform_indices = @transform_12, window_bounds = array<i64: 1, 4>}, {pipeline_mode = #tpu.pipeline_mode<synchronous>, transform_indices = @transform_13, window_bounds = array<i64: 1, 2>}, {pipeline_mode = #tpu.pipeline_mode<synchronous>, transform_indices = @transform_14, window_bounds = array<i64: 1, 1>}, {pipeline_mode = #tpu.pipeline_mode<synchronous>, transform_indices = @transform_15, window_bounds = array<i64: 64, 128>}, {pipeline_mode = #tpu.pipeline_mode<synchronous>, transform_indices = @transform_16, window_bounds = array<i64: 1, 64>}, {pipeline_mode = #tpu.pipeline_mode<synchronous>, transform_indices = @transform_17, window_bounds = array<i64: 128, 1>}, {pipeline_mode = #tpu.pipeline_mode<synchronous>, transform_indices = @transform_18, window_bounds = array<i64: 1, 1>}, {transform_indices = @transform_19, window_bounds = array<i64: 1, 1, 1>}]} {
    %cst = arith.constant 0.000000e+00 : f32
    %0 = vector.broadcast %cst : f32 to vector<1x10x10x128xf32>
    %c0 = arith.constant 0 : index
    %c0_0 = arith.constant 0 : index
    %c0_1 = arith.constant 0 : index
    %c0_2 = arith.constant 0 : index
    %1 = vector.load %arg21[%c0, %c0_0, %c0_1, %c0_2] : memref<1x10x10x128xf32, #tpu.memory_space<vmem>>, vector<1x10x10x128xf32>
    tpu.vector_store %arg21[%c0, %c0_0, %c0_1, %c0_2], %0 {strides = array<i32>} : memref<1x10x10x128xf32, #tpu.memory_space<vmem>>, vector<1x10x10x128xf32>,
    %cst_3 = arith.constant 0.000000e+00 : f32
    %2 = vector.broadcast %cst_3 : f32 to vector<1x10x10x64xf32>
    %c0_4 = arith.constant 0 : index
    %c0_5 = arith.constant 0 : index
    %c0_6 = arith.constant 0 : index
    %c0_7 = arith.constant 0 : index
    %3 = vector.load %arg22[%c0_4, %c0_5, %c0_6, %c0_7] : memref<1x10x10x64xf32, #tpu.memory_space<vmem>>, vector<1x10x10x64xf32>
    tpu.vector_store %arg22[%c0_4, %c0_5, %c0_6, %c0_7], %2 {strides = array<i32>} : memref<1x10x10x64xf32, #tpu.memory_space<vmem>>, vector<1x10x10x64xf32>,
    %cst_8 = arith.constant 0.000000e+00 : f32
    %4 = vector.broadcast %cst_8 : f32 to vector<1x10x10x32xf32>
    %c0_9 = arith.constant 0 : index
    %c0_10 = arith.constant 0 : index
    %c0_11 = arith.constant 0 : index
    %c0_12 = arith.constant 0 : index
    %5 = vector.load %arg23[%c0_9, %c0_10, %c0_11, %c0_12] : memref<1x10x10x32xf32, #tpu.memory_space<vmem>>, vector<1x10x10x32xf32>
    tpu.vector_store %arg23[%c0_9, %c0_10, %c0_11, %c0_12], %4 {strides = array<i32>} : memref<1x10x10x32xf32, #tpu.memory_space<vmem>>, vector<1x10x10x32xf32>,
    %cst_13 = arith.constant 0.000000e+00 : f32
    %6 = vector.broadcast %cst_13 : f32 to vector<1x10x10x16xf32>
    %c0_14 = arith.constant 0 : index
    %c0_15 = arith.constant 0 : index
    %c0_16 = arith.constant 0 : index
    %c0_17 = arith.constant 0 : index
    %7 = vector.load %arg24[%c0_14, %c0_15, %c0_16, %c0_17] : memref<1x10x10x16xf32, #tpu.memory_space<vmem>>, vector<1x10x10x16xf32>
    tpu.vector_store %arg24[%c0_14, %c0_15, %c0_16, %c0_17], %6 {strides = array<i32>} : memref<1x10x10x16xf32, #tpu.memory_space<vmem>>, vector<1x10x10x16xf32>,
    %cst_18 = arith.constant 0.000000e+00 : f32
    %8 = vector.broadcast %cst_18 : f32 to vector<1x10x10x8xf32>
    %c0_19 = arith.constant 0 : index
    %c0_20 = arith.constant 0 : index
    %c0_21 = arith.constant 0 : index
    %c0_22 = arith.constant 0 : index
    %9 = vector.load %arg25[%c0_19, %c0_20, %c0_21, %c0_22] : memref<1x10x10x8xf32, #tpu.memory_space<vmem>>, vector<1x10x10x8xf32>
    tpu.vector_store %arg25[%c0_19, %c0_20, %c0_21, %c0_22], %8 {strides = array<i32>} : memref<1x10x10x8xf32, #tpu.memory_space<vmem>>, vector<1x10x10x8xf32>,
    %cst_23 = arith.constant 0.000000e+00 : f32
    %10 = vector.broadcast %cst_23 : f32 to vector<1x10x10x4xf32>
    %c0_24 = arith.constant 0 : index
    %c0_25 = arith.constant 0 : index
    %c0_26 = arith.constant 0 : index
    %c0_27 = arith.constant 0 : index
    %11 = vector.load %arg26[%c0_24, %c0_25, %c0_26, %c0_27] : memref<1x10x10x4xf32, #tpu.memory_space<vmem>>, vector<1x10x10x4xf32>
    tpu.vector_store %arg26[%c0_24, %c0_25, %c0_26, %c0_27], %10 {strides = array<i32>} : memref<1x10x10x4xf32, #tpu.memory_space<vmem>>, vector<1x10x10x4xf32>,
    %cst_28 = arith.constant 0.000000e+00 : f32
    %12 = vector.broadcast %cst_28 : f32 to vector<1x10x10x2xf32>
    %c0_29 = arith.constant 0 : index
    %c0_30 = arith.constant 0 : index
    %c0_31 = arith.constant 0 : index
    %c0_32 = arith.constant 0 : index
    %13 = vector.load %arg27[%c0_29, %c0_30, %c0_31, %c0_32] : memref<1x10x10x2xf32, #tpu.memory_space<vmem>>, vector<1x10x10x2xf32>
    tpu.vector_store %arg27[%c0_29, %c0_30, %c0_31, %c0_32], %12 {strides = array<i32>} : memref<1x10x10x2xf32, #tpu.memory_space<vmem>>, vector<1x10x10x2xf32>,
    %c0_33 = arith.constant 0 : index
    %c0_34 = arith.constant 0 : index
    %c0_35 = arith.constant 0 : index
    %c0_36 = arith.constant 0 : index
    %14 = vector.load %arg1[%c0_33, %c0_34, %c0_35, %c0_36] : memref<1x8x8x128xf32, #tpu.memory_space<vmem>>, vector<1x8x8x128xf32>
    %15 = vector.shape_cast %14 : vector<1x8x8x128xf32> to vector<8x8x128xf32>
    %c0_37 = arith.constant 0 : index
    %c1 = arith.constant 1 : index
    %c1_38 = arith.constant 1 : index
    %c0_39 = arith.constant 0 : index
    %16 = vector.load %arg21[%c0_37, %c1, %c1_38, %c0_39] : memref<1x10x10x128xf32, #tpu.memory_space<vmem>>, vector<1x8x8x128xf32>
    %17 = vector.shape_cast %16 : vector<1x8x8x128xf32> to vector<8x8x128xf32>
    %18 = vector.shape_cast %15 : vector<8x8x128xf32> to vector<1x8x8x128xf32>
    tpu.vector_store %arg21[%c0_37, %c1, %c1_38, %c0_39], %18 {strides = array<i32>} : memref<1x10x10x128xf32, #tpu.memory_space<vmem>>, vector<1x8x8x128xf32>,
    %c0_40 = arith.constant 0 : index
    %c0_41 = arith.constant 0 : index
    %c0_42 = arith.constant 0 : index
    %c0_43 = arith.constant 0 : index
    %19 = vector.load %arg21[%c0_40, %c0_41, %c0_42, %c0_43] : memref<1x10x10x128xf32, #tpu.memory_space<vmem>>, vector<1x8x8x128xf32>
    %20 = vector.shape_cast %19 : vector<1x8x8x128xf32> to vector<8x8x128xf32>
    %21 = vector.shape_cast %20 : vector<8x8x128xf32> to vector<64x128xf32>
    %c0_44 = arith.constant 0 : index
    %c0_45 = arith.constant 0 : index
    %22 = vector.load %arg28[%c0_44, %c0_45] : memref<64x1152xf32, #tpu.memory_space<vmem>>, vector<64x128xf32>
    tpu.vector_store %arg28[%c0_44, %c0_45], %21 {strides = array<i32>} : memref<64x1152xf32, #tpu.memory_space<vmem>>, vector<64x128xf32>,
    %c0_46 = arith.constant 0 : index
    %c0_47 = arith.constant 0 : index
    %c1_48 = arith.constant 1 : index
    %c0_49 = arith.constant 0 : index
    %23 = vector.load %arg21[%c0_46, %c0_47, %c1_48, %c0_49] : memref<1x10x10x128xf32, #tpu.memory_space<vmem>>, vector<1x8x8x128xf32>
    %24 = vector.shape_cast %23 : vector<1x8x8x128xf32> to vector<8x8x128xf32>
    %25 = vector.shape_cast %24 : vector<8x8x128xf32> to vector<64x128xf32>
    %c0_50 = arith.constant 0 : index
    %c128 = arith.constant 128 : index
    %26 = vector.load %arg28[%c0_50, %c128] : memref<64x1152xf32, #tpu.memory_space<vmem>>, vector<64x128xf32>
    tpu.vector_store %arg28[%c0_50, %c128], %25 {strides = array<i32>} : memref<64x1152xf32, #tpu.memory_space<vmem>>, vector<64x128xf32>,
    %c0_51 = arith.constant 0 : index
    %c0_52 = arith.constant 0 : index
    %c2 = arith.constant 2 : index
    %c0_53 = arith.constant 0 : index
    %27 = vector.load %arg21[%c0_51, %c0_52, %c2, %c0_53] : memref<1x10x10x128xf32, #tpu.memory_space<vmem>>, vector<1x8x8x128xf32>
    %28 = vector.shape_cast %27 : vector<1x8x8x128xf32> to vector<8x8x128xf32>
    %29 = vector.shape_cast %28 : vector<8x8x128xf32> to vector<64x128xf32>
    %c0_54 = arith.constant 0 : index
    %c256 = arith.constant 256 : index
    %30 = vector.load %arg28[%c0_54, %c256] : memref<64x1152xf32, #tpu.memory_space<vmem>>, vector<64x128xf32>
    tpu.vector_store %arg28[%c0_54, %c256], %29 {strides = array<i32>} : memref<64x1152xf32, #tpu.memory_space<vmem>>, vector<64x128xf32>,
    %c0_55 = arith.constant 0 : index
    %c1_56 = arith.constant 1 : index
    %c0_57 = arith.constant 0 : index
    %c0_58 = arith.constant 0 : index
    %31 = vector.load %arg21[%c0_55, %c1_56, %c0_57, %c0_58] : memref<1x10x10x128xf32, #tpu.memory_space<vmem>>, vector<1x8x8x128xf32>
    %32 = vector.shape_cast %31 : vector<1x8x8x128xf32> to vector<8x8x128xf32>
    %33 = vector.shape_cast %32 : vector<8x8x128xf32> to vector<64x128xf32>
    %c0_59 = arith.constant 0 : index
    %c384 = arith.constant 384 : index
    %34 = vector.load %arg28[%c0_59, %c384] : memref<64x1152xf32, #tpu.memory_space<vmem>>, vector<64x128xf32>
    tpu.vector_store %arg28[%c0_59, %c384], %33 {strides = array<i32>} : memref<64x1152xf32, #tpu.memory_space<vmem>>, vector<64x128xf32>,
    %c0_60 = arith.constant 0 : index
    %c1_61 = arith.constant 1 : index
    %c1_62 = arith.constant 1 : index
    %c0_63 = arith.constant 0 : index
    %35 = vector.load %arg21[%c0_60, %c1_61, %c1_62, %c0_63] : memref<1x10x10x128xf32, #tpu.memory_space<vmem>>, vector<1x8x8x128xf32>
    %36 = vector.shape_cast %35 : vector<1x8x8x128xf32> to vector<8x8x128xf32>
    %37 = vector.shape_cast %36 : vector<8x8x128xf32> to vector<64x128xf32>
    %c0_64 = arith.constant 0 : index
    %c512 = arith.constant 512 : index
    %38 = vector.load %arg28[%c0_64, %c512] : memref<64x1152xf32, #tpu.memory_space<vmem>>, vector<64x128xf32>
    tpu.vector_store %arg28[%c0_64, %c512], %37 {strides = array<i32>} : memref<64x1152xf32, #tpu.memory_space<vmem>>, vector<64x128xf32>,
    %c0_65 = arith.constant 0 : index
    %c1_66 = arith.constant 1 : index
    %c2_67 = arith.constant 2 : index
    %c0_68 = arith.constant 0 : index
    %39 = vector.load %arg21[%c0_65, %c1_66, %c2_67, %c0_68] : memref<1x10x10x128xf32, #tpu.memory_space<vmem>>, vector<1x8x8x128xf32>
    %40 = vector.shape_cast %39 : vector<1x8x8x128xf32> to vector<8x8x128xf32>
    %41 = vector.shape_cast %40 : vector<8x8x128xf32> to vector<64x128xf32>
    %c0_69 = arith.constant 0 : index
    %c640 = arith.constant 640 : index
    %42 = vector.load %arg28[%c0_69, %c640] : memref<64x1152xf32, #tpu.memory_space<vmem>>, vector<64x128xf32>
    tpu.vector_store %arg28[%c0_69, %c640], %41 {strides = array<i32>} : memref<64x1152xf32, #tpu.memory_space<vmem>>, vector<64x128xf32>,
    %c0_70 = arith.constant 0 : index
    %c2_71 = arith.constant 2 : index
    %c0_72 = arith.constant 0 : index
    %c0_73 = arith.constant 0 : index
    %43 = vector.load %arg21[%c0_70, %c2_71, %c0_72, %c0_73] : memref<1x10x10x128xf32, #tpu.memory_space<vmem>>, vector<1x8x8x128xf32>
    %44 = vector.shape_cast %43 : vector<1x8x8x128xf32> to vector<8x8x128xf32>
    %45 = vector.shape_cast %44 : vector<8x8x128xf32> to vector<64x128xf32>
    %c0_74 = arith.constant 0 : index
    %c768 = arith.constant 768 : index
    %46 = vector.load %arg28[%c0_74, %c768] : memref<64x1152xf32, #tpu.memory_space<vmem>>, vector<64x128xf32>
    tpu.vector_store %arg28[%c0_74, %c768], %45 {strides = array<i32>} : memref<64x1152xf32, #tpu.memory_space<vmem>>, vector<64x128xf32>,
    %c0_75 = arith.constant 0 : index
    %c2_76 = arith.constant 2 : index
    %c1_77 = arith.constant 1 : index
    %c0_78 = arith.constant 0 : index
    %47 = vector.load %arg21[%c0_75, %c2_76, %c1_77, %c0_78] : memref<1x10x10x128xf32, #tpu.memory_space<vmem>>, vector<1x8x8x128xf32>
    %48 = vector.shape_cast %47 : vector<1x8x8x128xf32> to vector<8x8x128xf32>
    %49 = vector.shape_cast %48 : vector<8x8x128xf32> to vector<64x128xf32>
    %c0_79 = arith.constant 0 : index
    %c896 = arith.constant 896 : index
    %50 = vector.load %arg28[%c0_79, %c896] : memref<64x1152xf32, #tpu.memory_space<vmem>>, vector<64x128xf32>
    tpu.vector_store %arg28[%c0_79, %c896], %49 {strides = array<i32>} : memref<64x1152xf32, #tpu.memory_space<vmem>>, vector<64x128xf32>,
    %c0_80 = arith.constant 0 : index
    %c2_81 = arith.constant 2 : index
    %c2_82 = arith.constant 2 : index
    %c0_83 = arith.constant 0 : index
    %51 = vector.load %arg21[%c0_80, %c2_81, %c2_82, %c0_83] : memref<1x10x10x128xf32, #tpu.memory_space<vmem>>, vector<1x8x8x128xf32>
    %52 = vector.shape_cast %51 : vector<1x8x8x128xf32> to vector<8x8x128xf32>
    %53 = vector.shape_cast %52 : vector<8x8x128xf32> to vector<64x128xf32>
    %c0_84 = arith.constant 0 : index
    %c1024 = arith.constant 1024 : index
    %54 = vector.load %arg28[%c0_84, %c1024] : memref<64x1152xf32, #tpu.memory_space<vmem>>, vector<64x128xf32>
    tpu.vector_store %arg28[%c0_84, %c1024], %53 {strides = array<i32>} : memref<64x1152xf32, #tpu.memory_space<vmem>>, vector<64x128xf32>,
    %c0_85 = arith.constant 0 : index
    %c0_86 = arith.constant 0 : index
    %55 = vector.load %arg28[%c0_85, %c0_86] : memref<64x1152xf32, #tpu.memory_space<vmem>>, vector<64x1152xf32>
    %56 = arith.truncf %55 : vector<64x1152xf32> to vector<64x1152xbf16>
    %c0_87 = arith.constant 0 : index
    %c0_88 = arith.constant 0 : index
    %57 = vector.load %arg2[%c0_87, %c0_88] : memref<1152x64xbf16, #tpu.memory_space<vmem>>, vector<1152x64xbf16>
    %cst_89 = arith.constant dense<0.000000e+00> : vector<64x64xf32>
    %58 = tpu.matmul %56, %57, %cst_89 {dimension_numbers = #tpu.dot_dimension_numbers<[1], [0], [0], [1], [0, 0, 1, 1], [], []>} : vector<64x1152xbf16>, vector<1152x64xbf16>, vector<64x64xf32> -> vector<64x64xf32>
    %c0_90 = arith.constant 0 : index
    %c0_91 = arith.constant 0 : index
    %59 = vector.load %arg9[%c0_90, %c0_91] : memref<1x64xf32, #tpu.memory_space<vmem>>, vector<1x64xf32>
    %60 = vector.broadcast %59 : vector<1x64xf32> to vector<64x64xf32>
    %61 = arith.addf %58, %60 : vector<64x64xf32>
    %62 = vector.shape_cast %61 : vector<64x64xf32> to vector<8x8x64xf32>
    %c0_92 = arith.constant 0 : index
    %c1_93 = arith.constant 1 : index
    %c1_94 = arith.constant 1 : index
    %c0_95 = arith.constant 0 : index
    %63 = vector.load %arg22[%c0_92, %c1_93, %c1_94, %c0_95] : memref<1x10x10x64xf32, #tpu.memory_space<vmem>>, vector<1x8x8x64xf32>
    %64 = vector.shape_cast %63 : vector<1x8x8x64xf32> to vector<8x8x64xf32>
    %65 = vector.shape_cast %62 : vector<8x8x64xf32> to vector<1x8x8x64xf32>
    tpu.vector_store %arg22[%c0_92, %c1_93, %c1_94, %c0_95], %65 {strides = array<i32>} : memref<1x10x10x64xf32, #tpu.memory_space<vmem>>, vector<1x8x8x64xf32>,
    %c0_96 = arith.constant 0 : index
    %c0_97 = arith.constant 0 : index
    %c0_98 = arith.constant 0 : index
    %c0_99 = arith.constant 0 : index
    %66 = vector.load %arg22[%c0_96, %c0_97, %c0_98, %c0_99] : memref<1x10x10x64xf32, #tpu.memory_space<vmem>>, vector<1x8x8x64xf32>
    %67 = vector.shape_cast %66 : vector<1x8x8x64xf32> to vector<8x8x64xf32>
    %68 = vector.shape_cast %67 : vector<8x8x64xf32> to vector<64x64xf32>
    %c0_100 = arith.constant 0 : index
    %c0_101 = arith.constant 0 : index
    %69 = vector.load %arg28[%c0_100, %c0_101] : memref<64x1152xf32, #tpu.memory_space<vmem>>, vector<64x64xf32>
    tpu.vector_store %arg28[%c0_100, %c0_101], %68 {strides = array<i32>} : memref<64x1152xf32, #tpu.memory_space<vmem>>, vector<64x64xf32>,
    %c0_102 = arith.constant 0 : index
    %c0_103 = arith.constant 0 : index
    %c1_104 = arith.constant 1 : index
    %c0_105 = arith.constant 0 : index
    %70 = vector.load %arg22[%c0_102, %c0_103, %c1_104, %c0_105] : memref<1x10x10x64xf32, #tpu.memory_space<vmem>>, vector<1x8x8x64xf32>
    %71 = vector.shape_cast %70 : vector<1x8x8x64xf32> to vector<8x8x64xf32>
    %72 = vector.shape_cast %71 : vector<8x8x64xf32> to vector<64x64xf32>
    %c0_106 = arith.constant 0 : index
    %c64 = arith.constant 64 : index
    %73 = vector.load %arg28[%c0_106, %c64] : memref<64x1152xf32, #tpu.memory_space<vmem>>, vector<64x64xf32>
    tpu.vector_store %arg28[%c0_106, %c64], %72 {strides = array<i32>} : memref<64x1152xf32, #tpu.memory_space<vmem>>, vector<64x64xf32>,
    %c0_107 = arith.constant 0 : index
    %c0_108 = arith.constant 0 : index
    %c2_109 = arith.constant 2 : index
    %c0_110 = arith.constant 0 : index
    %74 = vector.load %arg22[%c0_107, %c0_108, %c2_109, %c0_110] : memref<1x10x10x64xf32, #tpu.memory_space<vmem>>, vector<1x8x8x64xf32>
    %75 = vector.shape_cast %74 : vector<1x8x8x64xf32> to vector<8x8x64xf32>
    %76 = vector.shape_cast %75 : vector<8x8x64xf32> to vector<64x64xf32>
    %c0_111 = arith.constant 0 : index
    %c128_112 = arith.constant 128 : index
    %77 = vector.load %arg28[%c0_111, %c128_112] : memref<64x1152xf32, #tpu.memory_space<vmem>>, vector<64x64xf32>
    tpu.vector_store %arg28[%c0_111, %c128_112], %76 {strides = array<i32>} : memref<64x1152xf32, #tpu.memory_space<vmem>>, vector<64x64xf32>,
    %c0_113 = arith.constant 0 : index
    %c1_114 = arith.constant 1 : index
    %c0_115 = arith.constant 0 : index
    %c0_116 = arith.constant 0 : index
    %78 = vector.load %arg22[%c0_113, %c1_114, %c0_115, %c0_116] : memref<1x10x10x64xf32, #tpu.memory_space<vmem>>, vector<1x8x8x64xf32>
    %79 = vector.shape_cast %78 : vector<1x8x8x64xf32> to vector<8x8x64xf32>
    %80 = vector.shape_cast %79 : vector<8x8x64xf32> to vector<64x64xf32>
    %c0_117 = arith.constant 0 : index
    %c192 = arith.constant 192 : index
    %81 = vector.load %arg28[%c0_117, %c192] : memref<64x1152xf32, #tpu.memory_space<vmem>>, vector<64x64xf32>
    tpu.vector_store %arg28[%c0_117, %c192], %80 {strides = array<i32>} : memref<64x1152xf32, #tpu.memory_space<vmem>>, vector<64x64xf32>,
    %c0_118 = arith.constant 0 : index
    %c1_119 = arith.constant 1 : index
    %c1_120 = arith.constant 1 : index
    %c0_121 = arith.constant 0 : index
    %82 = vector.load %arg22[%c0_118, %c1_119, %c1_120, %c0_121] : memref<1x10x10x64xf32, #tpu.memory_space<vmem>>, vector<1x8x8x64xf32>
    %83 = vector.shape_cast %82 : vector<1x8x8x64xf32> to vector<8x8x64xf32>
    %84 = vector.shape_cast %83 : vector<8x8x64xf32> to vector<64x64xf32>
    %c0_122 = arith.constant 0 : index
    %c256_123 = arith.constant 256 : index
    %85 = vector.load %arg28[%c0_122, %c256_123] : memref<64x1152xf32, #tpu.memory_space<vmem>>, vector<64x64xf32>
    tpu.vector_store %arg28[%c0_122, %c256_123], %84 {strides = array<i32>} : memref<64x1152xf32, #tpu.memory_space<vmem>>, vector<64x64xf32>,
    %c0_124 = arith.constant 0 : index
    %c1_125 = arith.constant 1 : index
    %c2_126 = arith.constant 2 : index
    %c0_127 = arith.constant 0 : index
    %86 = vector.load %arg22[%c0_124, %c1_125, %c2_126, %c0_127] : memref<1x10x10x64xf32, #tpu.memory_space<vmem>>, vector<1x8x8x64xf32>
    %87 = vector.shape_cast %86 : vector<1x8x8x64xf32> to vector<8x8x64xf32>
    %88 = vector.shape_cast %87 : vector<8x8x64xf32> to vector<64x64xf32>
    %c0_128 = arith.constant 0 : index
    %c320 = arith.constant 320 : index
    %89 = vector.load %arg28[%c0_128, %c320] : memref<64x1152xf32, #tpu.memory_space<vmem>>, vector<64x64xf32>
    tpu.vector_store %arg28[%c0_128, %c320], %88 {strides = array<i32>} : memref<64x1152xf32, #tpu.memory_space<vmem>>, vector<64x64xf32>,
    %c0_129 = arith.constant 0 : index
    %c2_130 = arith.constant 2 : index
    %c0_131 = arith.constant 0 : index
    %c0_132 = arith.constant 0 : index
    %90 = vector.load %arg22[%c0_129, %c2_130, %c0_131, %c0_132] : memref<1x10x10x64xf32, #tpu.memory_space<vmem>>, vector<1x8x8x64xf32>
    %91 = vector.shape_cast %90 : vector<1x8x8x64xf32> to vector<8x8x64xf32>
    %92 = vector.shape_cast %91 : vector<8x8x64xf32> to vector<64x64xf32>
    %c0_133 = arith.constant 0 : index
    %c384_134 = arith.constant 384 : index
    %93 = vector.load %arg28[%c0_133, %c384_134] : memref<64x1152xf32, #tpu.memory_space<vmem>>, vector<64x64xf32>
    tpu.vector_store %arg28[%c0_133, %c384_134], %92 {strides = array<i32>} : memref<64x1152xf32, #tpu.memory_space<vmem>>, vector<64x64xf32>,
    %c0_135 = arith.constant 0 : index
    %c2_136 = arith.constant 2 : index
    %c1_137 = arith.constant 1 : index
    %c0_138 = arith.constant 0 : index
    %94 = vector.load %arg22[%c0_135, %c2_136, %c1_137, %c0_138] : memref<1x10x10x64xf32, #tpu.memory_space<vmem>>, vector<1x8x8x64xf32>
    %95 = vector.shape_cast %94 : vector<1x8x8x64xf32> to vector<8x8x64xf32>
    %96 = vector.shape_cast %95 : vector<8x8x64xf32> to vector<64x64xf32>
    %c0_139 = arith.constant 0 : index
    %c448 = arith.constant 448 : index
    %97 = vector.load %arg28[%c0_139, %c448] : memref<64x1152xf32, #tpu.memory_space<vmem>>, vector<64x64xf32>
    tpu.vector_store %arg28[%c0_139, %c448], %96 {strides = array<i32>} : memref<64x1152xf32, #tpu.memory_space<vmem>>, vector<64x64xf32>,
    %c0_140 = arith.constant 0 : index
    %c2_141 = arith.constant 2 : index
    %c2_142 = arith.constant 2 : index
    %c0_143 = arith.constant 0 : index
    %98 = vector.load %arg22[%c0_140, %c2_141, %c2_142, %c0_143] : memref<1x10x10x64xf32, #tpu.memory_space<vmem>>, vector<1x8x8x64xf32>
    %99 = vector.shape_cast %98 : vector<1x8x8x64xf32> to vector<8x8x64xf32>
    %100 = vector.shape_cast %99 : vector<8x8x64xf32> to vector<64x64xf32>
    %c0_144 = arith.constant 0 : index
    %c512_145 = arith.constant 512 : index
    %101 = vector.load %arg28[%c0_144, %c512_145] : memref<64x1152xf32, #tpu.memory_space<vmem>>, vector<64x64xf32>
    tpu.vector_store %arg28[%c0_144, %c512_145], %100 {strides = array<i32>} : memref<64x1152xf32, #tpu.memory_space<vmem>>, vector<64x64xf32>,
    %c0_146 = arith.constant 0 : index
    %c0_147 = arith.constant 0 : index
    %102 = vector.load %arg28[%c0_146, %c0_147] : memref<64x1152xf32, #tpu.memory_space<vmem>>, vector<64x576xf32>
    %103 = arith.truncf %102 : vector<64x576xf32> to vector<64x576xbf16>
    %c0_148 = arith.constant 0 : index
    %c0_149 = arith.constant 0 : index
    %104 = vector.load %arg3[%c0_148, %c0_149] : memref<576x32xbf16, #tpu.memory_space<vmem>>, vector<576x32xbf16>
    %cst_150 = arith.constant dense<0.000000e+00> : vector<64x32xf32>
    %105 = tpu.matmul %103, %104, %cst_150 {dimension_numbers = #tpu.dot_dimension_numbers<[1], [0], [0], [1], [0, 0, 1, 1], [], []>} : vector<64x576xbf16>, vector<576x32xbf16>, vector<64x32xf32> -> vector<64x32xf32>
    %c0_151 = arith.constant 0 : index
    %c0_152 = arith.constant 0 : index
    %106 = vector.load %arg10[%c0_151, %c0_152] : memref<1x32xf32, #tpu.memory_space<vmem>>, vector<1x32xf32>
    %107 = vector.broadcast %106 : vector<1x32xf32> to vector<64x32xf32>
    %108 = arith.addf %105, %107 : vector<64x32xf32>
    %109 = vector.shape_cast %108 : vector<64x32xf32> to vector<8x8x32xf32>
    %c0_153 = arith.constant 0 : index
    %c1_154 = arith.constant 1 : index
    %c1_155 = arith.constant 1 : index
    %c0_156 = arith.constant 0 : index
    %110 = vector.load %arg23[%c0_153, %c1_154, %c1_155, %c0_156] : memref<1x10x10x32xf32, #tpu.memory_space<vmem>>, vector<1x8x8x32xf32>
    %111 = vector.shape_cast %110 : vector<1x8x8x32xf32> to vector<8x8x32xf32>
    %112 = vector.shape_cast %109 : vector<8x8x32xf32> to vector<1x8x8x32xf32>
    tpu.vector_store %arg23[%c0_153, %c1_154, %c1_155, %c0_156], %112 {strides = array<i32>} : memref<1x10x10x32xf32, #tpu.memory_space<vmem>>, vector<1x8x8x32xf32>,
    %c0_157 = arith.constant 0 : index
    %c0_158 = arith.constant 0 : index
    %c0_159 = arith.constant 0 : index
    %c0_160 = arith.constant 0 : index
    %113 = vector.load %arg23[%c0_157, %c0_158, %c0_159, %c0_160] : memref<1x10x10x32xf32, #tpu.memory_space<vmem>>, vector<1x8x8x32xf32>
    %114 = vector.shape_cast %113 : vector<1x8x8x32xf32> to vector<8x8x32xf32>
    %115 = vector.shape_cast %114 : vector<8x8x32xf32> to vector<64x32xf32>
    %c0_161 = arith.constant 0 : index
    %c0_162 = arith.constant 0 : index
    %116 = vector.load %arg28[%c0_161, %c0_162] : memref<64x1152xf32, #tpu.memory_space<vmem>>, vector<64x32xf32>
    tpu.vector_store %arg28[%c0_161, %c0_162], %115 {strides = array<i32>} : memref<64x1152xf32, #tpu.memory_space<vmem>>, vector<64x32xf32>,
    %c0_163 = arith.constant 0 : index
    %c0_164 = arith.constant 0 : index
    %c1_165 = arith.constant 1 : index
    %c0_166 = arith.constant 0 : index
    %117 = vector.load %arg23[%c0_163, %c0_164, %c1_165, %c0_166] : memref<1x10x10x32xf32, #tpu.memory_space<vmem>>, vector<1x8x8x32xf32>
    %118 = vector.shape_cast %117 : vector<1x8x8x32xf32> to vector<8x8x32xf32>
    %119 = vector.shape_cast %118 : vector<8x8x32xf32> to vector<64x32xf32>
    %c0_167 = arith.constant 0 : index
    %c32 = arith.constant 32 : index
    %120 = vector.load %arg28[%c0_167, %c32] : memref<64x1152xf32, #tpu.memory_space<vmem>>, vector<64x32xf32>
    tpu.vector_store %arg28[%c0_167, %c32], %119 {strides = array<i32>} : memref<64x1152xf32, #tpu.memory_space<vmem>>, vector<64x32xf32>,
    %c0_168 = arith.constant 0 : index
    %c0_169 = arith.constant 0 : index
    %c2_170 = arith.constant 2 : index
    %c0_171 = arith.constant 0 : index
    %121 = vector.load %arg23[%c0_168, %c0_169, %c2_170, %c0_171] : memref<1x10x10x32xf32, #tpu.memory_space<vmem>>, vector<1x8x8x32xf32>
    %122 = vector.shape_cast %121 : vector<1x8x8x32xf32> to vector<8x8x32xf32>
    %123 = vector.shape_cast %122 : vector<8x8x32xf32> to vector<64x32xf32>
    %c0_172 = arith.constant 0 : index
    %c64_173 = arith.constant 64 : index
    %124 = vector.load %arg28[%c0_172, %c64_173] : memref<64x1152xf32, #tpu.memory_space<vmem>>, vector<64x32xf32>
    tpu.vector_store %arg28[%c0_172, %c64_173], %123 {strides = array<i32>} : memref<64x1152xf32, #tpu.memory_space<vmem>>, vector<64x32xf32>,
    %c0_174 = arith.constant 0 : index
    %c1_175 = arith.constant 1 : index
    %c0_176 = arith.constant 0 : index
    %c0_177 = arith.constant 0 : index
    %125 = vector.load %arg23[%c0_174, %c1_175, %c0_176, %c0_177] : memref<1x10x10x32xf32, #tpu.memory_space<vmem>>, vector<1x8x8x32xf32>
    %126 = vector.shape_cast %125 : vector<1x8x8x32xf32> to vector<8x8x32xf32>
    %127 = vector.shape_cast %126 : vector<8x8x32xf32> to vector<64x32xf32>
    %c0_178 = arith.constant 0 : index
    %c96 = arith.constant 96 : index
    %128 = vector.load %arg28[%c0_178, %c96] : memref<64x1152xf32, #tpu.memory_space<vmem>>, vector<64x32xf32>
    tpu.vector_store %arg28[%c0_178, %c96], %127 {strides = array<i32>} : memref<64x1152xf32, #tpu.memory_space<vmem>>, vector<64x32xf32>,
    %c0_179 = arith.constant 0 : index
    %c1_180 = arith.constant 1 : index
    %c1_181 = arith.constant 1 : index
    %c0_182 = arith.constant 0 : index
    %129 = vector.load %arg23[%c0_179, %c1_180, %c1_181, %c0_182] : memref<1x10x10x32xf32, #tpu.memory_space<vmem>>, vector<1x8x8x32xf32>
    %130 = vector.shape_cast %129 : vector<1x8x8x32xf32> to vector<8x8x32xf32>
    %131 = vector.shape_cast %130 : vector<8x8x32xf32> to vector<64x32xf32>
    %c0_183 = arith.constant 0 : index
    %c128_184 = arith.constant 128 : index
    %132 = vector.load %arg28[%c0_183, %c128_184] : memref<64x1152xf32, #tpu.memory_space<vmem>>, vector<64x32xf32>
    tpu.vector_store %arg28[%c0_183, %c128_184], %131 {strides = array<i32>} : memref<64x1152xf32, #tpu.memory_space<vmem>>, vector<64x32xf32>,
    %c0_185 = arith.constant 0 : index
    %c1_186 = arith.constant 1 : index
    %c2_187 = arith.constant 2 : index
    %c0_188 = arith.constant 0 : index
    %133 = vector.load %arg23[%c0_185, %c1_186, %c2_187, %c0_188] : memref<1x10x10x32xf32, #tpu.memory_space<vmem>>, vector<1x8x8x32xf32>
    %134 = vector.shape_cast %133 : vector<1x8x8x32xf32> to vector<8x8x32xf32>
    %135 = vector.shape_cast %134 : vector<8x8x32xf32> to vector<64x32xf32>
    %c0_189 = arith.constant 0 : index
    %c160 = arith.constant 160 : index
    %136 = vector.load %arg28[%c0_189, %c160] : memref<64x1152xf32, #tpu.memory_space<vmem>>, vector<64x32xf32>
    tpu.vector_store %arg28[%c0_189, %c160], %135 {strides = array<i32>} : memref<64x1152xf32, #tpu.memory_space<vmem>>, vector<64x32xf32>,
    %c0_190 = arith.constant 0 : index
    %c2_191 = arith.constant 2 : index
    %c0_192 = arith.constant 0 : index
    %c0_193 = arith.constant 0 : index
    %137 = vector.load %arg23[%c0_190, %c2_191, %c0_192, %c0_193] : memref<1x10x10x32xf32, #tpu.memory_space<vmem>>, vector<1x8x8x32xf32>
    %138 = vector.shape_cast %137 : vector<1x8x8x32xf32> to vector<8x8x32xf32>
    %139 = vector.shape_cast %138 : vector<8x8x32xf32> to vector<64x32xf32>
    %c0_194 = arith.constant 0 : index
    %c192_195 = arith.constant 192 : index
    %140 = vector.load %arg28[%c0_194, %c192_195] : memref<64x1152xf32, #tpu.memory_space<vmem>>, vector<64x32xf32>
    tpu.vector_store %arg28[%c0_194, %c192_195], %139 {strides = array<i32>} : memref<64x1152xf32, #tpu.memory_space<vmem>>, vector<64x32xf32>,
    %c0_196 = arith.constant 0 : index
    %c2_197 = arith.constant 2 : index
    %c1_198 = arith.constant 1 : index
    %c0_199 = arith.constant 0 : index
    %141 = vector.load %arg23[%c0_196, %c2_197, %c1_198, %c0_199] : memref<1x10x10x32xf32, #tpu.memory_space<vmem>>, vector<1x8x8x32xf32>
    %142 = vector.shape_cast %141 : vector<1x8x8x32xf32> to vector<8x8x32xf32>
    %143 = vector.shape_cast %142 : vector<8x8x32xf32> to vector<64x32xf32>
    %c0_200 = arith.constant 0 : index
    %c224 = arith.constant 224 : index
    %144 = vector.load %arg28[%c0_200, %c224] : memref<64x1152xf32, #tpu.memory_space<vmem>>, vector<64x32xf32>
    tpu.vector_store %arg28[%c0_200, %c224], %143 {strides = array<i32>} : memref<64x1152xf32, #tpu.memory_space<vmem>>, vector<64x32xf32>,
    %c0_201 = arith.constant 0 : index
    %c2_202 = arith.constant 2 : index
    %c2_203 = arith.constant 2 : index
    %c0_204 = arith.constant 0 : index
    %145 = vector.load %arg23[%c0_201, %c2_202, %c2_203, %c0_204] : memref<1x10x10x32xf32, #tpu.memory_space<vmem>>, vector<1x8x8x32xf32>
    %146 = vector.shape_cast %145 : vector<1x8x8x32xf32> to vector<8x8x32xf32>
    %147 = vector.shape_cast %146 : vector<8x8x32xf32> to vector<64x32xf32>
    %c0_205 = arith.constant 0 : index
    %c256_206 = arith.constant 256 : index
    %148 = vector.load %arg28[%c0_205, %c256_206] : memref<64x1152xf32, #tpu.memory_space<vmem>>, vector<64x32xf32>
    tpu.vector_store %arg28[%c0_205, %c256_206], %147 {strides = array<i32>} : memref<64x1152xf32, #tpu.memory_space<vmem>>, vector<64x32xf32>,
    %c0_207 = arith.constant 0 : index
    %c0_208 = arith.constant 0 : index
    %149 = vector.load %arg28[%c0_207, %c0_208] : memref<64x1152xf32, #tpu.memory_space<vmem>>, vector<64x288xf32>
    %150 = arith.truncf %149 : vector<64x288xf32> to vector<64x288xbf16>
    %c0_209 = arith.constant 0 : index
    %c0_210 = arith.constant 0 : index
    %151 = vector.load %arg4[%c0_209, %c0_210] : memref<288x16xbf16, #tpu.memory_space<vmem>>, vector<288x16xbf16>
    %cst_211 = arith.constant dense<0.000000e+00> : vector<64x16xf32>
    %152 = tpu.matmul %150, %151, %cst_211 {dimension_numbers = #tpu.dot_dimension_numbers<[1], [0], [0], [1], [0, 0, 1, 1], [], []>} : vector<64x288xbf16>, vector<288x16xbf16>, vector<64x16xf32> -> vector<64x16xf32>
    %c0_212 = arith.constant 0 : index
    %c0_213 = arith.constant 0 : index
    %153 = vector.load %arg11[%c0_212, %c0_213] : memref<1x16xf32, #tpu.memory_space<vmem>>, vector<1x16xf32>
    %154 = vector.broadcast %153 : vector<1x16xf32> to vector<64x16xf32>
    %155 = arith.addf %152, %154 : vector<64x16xf32>
    %156 = vector.shape_cast %155 : vector<64x16xf32> to vector<8x8x16xf32>
    %c0_214 = arith.constant 0 : index
    %c1_215 = arith.constant 1 : index
    %c1_216 = arith.constant 1 : index
    %c0_217 = arith.constant 0 : index
    %157 = vector.load %arg24[%c0_214, %c1_215, %c1_216, %c0_217] : memref<1x10x10x16xf32, #tpu.memory_space<vmem>>, vector<1x8x8x16xf32>
    %158 = vector.shape_cast %157 : vector<1x8x8x16xf32> to vector<8x8x16xf32>
    %159 = vector.shape_cast %156 : vector<8x8x16xf32> to vector<1x8x8x16xf32>
    tpu.vector_store %arg24[%c0_214, %c1_215, %c1_216, %c0_217], %159 {strides = array<i32>} : memref<1x10x10x16xf32, #tpu.memory_space<vmem>>, vector<1x8x8x16xf32>,
    %c0_218 = arith.constant 0 : index
    %c0_219 = arith.constant 0 : index
    %c0_220 = arith.constant 0 : index
    %c0_221 = arith.constant 0 : index
    %160 = vector.load %arg24[%c0_218, %c0_219, %c0_220, %c0_221] : memref<1x10x10x16xf32, #tpu.memory_space<vmem>>, vector<1x8x8x16xf32>
    %161 = vector.shape_cast %160 : vector<1x8x8x16xf32> to vector<8x8x16xf32>
    %162 = vector.shape_cast %161 : vector<8x8x16xf32> to vector<64x16xf32>
    %c0_222 = arith.constant 0 : index
    %c0_223 = arith.constant 0 : index
    %163 = vector.load %arg28[%c0_222, %c0_223] : memref<64x1152xf32, #tpu.memory_space<vmem>>, vector<64x16xf32>
    tpu.vector_store %arg28[%c0_222, %c0_223], %162 {strides = array<i32>} : memref<64x1152xf32, #tpu.memory_space<vmem>>, vector<64x16xf32>,
    %c0_224 = arith.constant 0 : index
    %c0_225 = arith.constant 0 : index
    %c1_226 = arith.constant 1 : index
    %c0_227 = arith.constant 0 : index
    %164 = vector.load %arg24[%c0_224, %c0_225, %c1_226, %c0_227] : memref<1x10x10x16xf32, #tpu.memory_space<vmem>>, vector<1x8x8x16xf32>
    %165 = vector.shape_cast %164 : vector<1x8x8x16xf32> to vector<8x8x16xf32>
    %166 = vector.shape_cast %165 : vector<8x8x16xf32> to vector<64x16xf32>
    %c0_228 = arith.constant 0 : index
    %c16 = arith.constant 16 : index
    %167 = vector.load %arg28[%c0_228, %c16] : memref<64x1152xf32, #tpu.memory_space<vmem>>, vector<64x16xf32>
    tpu.vector_store %arg28[%c0_228, %c16], %166 {strides = array<i32>} : memref<64x1152xf32, #tpu.memory_space<vmem>>, vector<64x16xf32>,
    %c0_229 = arith.constant 0 : index
    %c0_230 = arith.constant 0 : index
    %c2_231 = arith.constant 2 : index
    %c0_232 = arith.constant 0 : index
    %168 = vector.load %arg24[%c0_229, %c0_230, %c2_231, %c0_232] : memref<1x10x10x16xf32, #tpu.memory_space<vmem>>, vector<1x8x8x16xf32>
    %169 = vector.shape_cast %168 : vector<1x8x8x16xf32> to vector<8x8x16xf32>
    %170 = vector.shape_cast %169 : vector<8x8x16xf32> to vector<64x16xf32>
    %c0_233 = arith.constant 0 : index
    %c32_234 = arith.constant 32 : index
    %171 = vector.load %arg28[%c0_233, %c32_234] : memref<64x1152xf32, #tpu.memory_space<vmem>>, vector<64x16xf32>
    tpu.vector_store %arg28[%c0_233, %c32_234], %170 {strides = array<i32>} : memref<64x1152xf32, #tpu.memory_space<vmem>>, vector<64x16xf32>,
    %c0_235 = arith.constant 0 : index
    %c1_236 = arith.constant 1 : index
    %c0_237 = arith.constant 0 : index
    %c0_238 = arith.constant 0 : index
    %172 = vector.load %arg24[%c0_235, %c1_236, %c0_237, %c0_238] : memref<1x10x10x16xf32, #tpu.memory_space<vmem>>, vector<1x8x8x16xf32>
    %173 = vector.shape_cast %172 : vector<1x8x8x16xf32> to vector<8x8x16xf32>
    %174 = vector.shape_cast %173 : vector<8x8x16xf32> to vector<64x16xf32>
    %c0_239 = arith.constant 0 : index
    %c48 = arith.constant 48 : index
    %175 = vector.load %arg28[%c0_239, %c48] : memref<64x1152xf32, #tpu.memory_space<vmem>>, vector<64x16xf32>
    tpu.vector_store %arg28[%c0_239, %c48], %174 {strides = array<i32>} : memref<64x1152xf32, #tpu.memory_space<vmem>>, vector<64x16xf32>,
    %c0_240 = arith.constant 0 : index
    %c1_241 = arith.constant 1 : index
    %c1_242 = arith.constant 1 : index
    %c0_243 = arith.constant 0 : index
    %176 = vector.load %arg24[%c0_240, %c1_241, %c1_242, %c0_243] : memref<1x10x10x16xf32, #tpu.memory_space<vmem>>, vector<1x8x8x16xf32>
    %177 = vector.shape_cast %176 : vector<1x8x8x16xf32> to vector<8x8x16xf32>
    %178 = vector.shape_cast %177 : vector<8x8x16xf32> to vector<64x16xf32>
    %c0_244 = arith.constant 0 : index
    %c64_245 = arith.constant 64 : index
    %179 = vector.load %arg28[%c0_244, %c64_245] : memref<64x1152xf32, #tpu.memory_space<vmem>>, vector<64x16xf32>
    tpu.vector_store %arg28[%c0_244, %c64_245], %178 {strides = array<i32>} : memref<64x1152xf32, #tpu.memory_space<vmem>>, vector<64x16xf32>,
    %c0_246 = arith.constant 0 : index
    %c1_247 = arith.constant 1 : index
    %c2_248 = arith.constant 2 : index
    %c0_249 = arith.constant 0 : index
    %180 = vector.load %arg24[%c0_246, %c1_247, %c2_248, %c0_249] : memref<1x10x10x16xf32, #tpu.memory_space<vmem>>, vector<1x8x8x16xf32>
    %181 = vector.shape_cast %180 : vector<1x8x8x16xf32> to vector<8x8x16xf32>
    %182 = vector.shape_cast %181 : vector<8x8x16xf32> to vector<64x16xf32>
    %c0_250 = arith.constant 0 : index
    %c80 = arith.constant 80 : index
    %183 = vector.load %arg28[%c0_250, %c80] : memref<64x1152xf32, #tpu.memory_space<vmem>>, vector<64x16xf32>
    tpu.vector_store %arg28[%c0_250, %c80], %182 {strides = array<i32>} : memref<64x1152xf32, #tpu.memory_space<vmem>>, vector<64x16xf32>,
    %c0_251 = arith.constant 0 : index
    %c2_252 = arith.constant 2 : index
    %c0_253 = arith.constant 0 : index
    %c0_254 = arith.constant 0 : index
    %184 = vector.load %arg24[%c0_251, %c2_252, %c0_253, %c0_254] : memref<1x10x10x16xf32, #tpu.memory_space<vmem>>, vector<1x8x8x16xf32>
    %185 = vector.shape_cast %184 : vector<1x8x8x16xf32> to vector<8x8x16xf32>
    %186 = vector.shape_cast %185 : vector<8x8x16xf32> to vector<64x16xf32>
    %c0_255 = arith.constant 0 : index
    %c96_256 = arith.constant 96 : index
    %187 = vector.load %arg28[%c0_255, %c96_256] : memref<64x1152xf32, #tpu.memory_space<vmem>>, vector<64x16xf32>
    tpu.vector_store %arg28[%c0_255, %c96_256], %186 {strides = array<i32>} : memref<64x1152xf32, #tpu.memory_space<vmem>>, vector<64x16xf32>,
    %c0_257 = arith.constant 0 : index
    %c2_258 = arith.constant 2 : index
    %c1_259 = arith.constant 1 : index
    %c0_260 = arith.constant 0 : index
    %188 = vector.load %arg24[%c0_257, %c2_258, %c1_259, %c0_260] : memref<1x10x10x16xf32, #tpu.memory_space<vmem>>, vector<1x8x8x16xf32>
    %189 = vector.shape_cast %188 : vector<1x8x8x16xf32> to vector<8x8x16xf32>
    %190 = vector.shape_cast %189 : vector<8x8x16xf32> to vector<64x16xf32>
    %c0_261 = arith.constant 0 : index
    %c112 = arith.constant 112 : index
    %191 = vector.load %arg28[%c0_261, %c112] : memref<64x1152xf32, #tpu.memory_space<vmem>>, vector<64x16xf32>
    tpu.vector_store %arg28[%c0_261, %c112], %190 {strides = array<i32>} : memref<64x1152xf32, #tpu.memory_space<vmem>>, vector<64x16xf32>,
    %c0_262 = arith.constant 0 : index
    %c2_263 = arith.constant 2 : index
    %c2_264 = arith.constant 2 : index
    %c0_265 = arith.constant 0 : index
    %192 = vector.load %arg24[%c0_262, %c2_263, %c2_264, %c0_265] : memref<1x10x10x16xf32, #tpu.memory_space<vmem>>, vector<1x8x8x16xf32>
    %193 = vector.shape_cast %192 : vector<1x8x8x16xf32> to vector<8x8x16xf32>
    %194 = vector.shape_cast %193 : vector<8x8x16xf32> to vector<64x16xf32>
    %c0_266 = arith.constant 0 : index
    %c128_267 = arith.constant 128 : index
    %195 = vector.load %arg28[%c0_266, %c128_267] : memref<64x1152xf32, #tpu.memory_space<vmem>>, vector<64x16xf32>
    tpu.vector_store %arg28[%c0_266, %c128_267], %194 {strides = array<i32>} : memref<64x1152xf32, #tpu.memory_space<vmem>>, vector<64x16xf32>,
    %c0_268 = arith.constant 0 : index
    %c0_269 = arith.constant 0 : index
    %196 = vector.load %arg28[%c0_268, %c0_269] : memref<64x1152xf32, #tpu.memory_space<vmem>>, vector<64x144xf32>
    %197 = arith.truncf %196 : vector<64x144xf32> to vector<64x144xbf16>
    %c0_270 = arith.constant 0 : index
    %c0_271 = arith.constant 0 : index
    %198 = vector.load %arg5[%c0_270, %c0_271] : memref<144x8xbf16, #tpu.memory_space<vmem>>, vector<144x8xbf16>
    %cst_272 = arith.constant dense<0.000000e+00> : vector<64x8xf32>
    %199 = tpu.matmul %197, %198, %cst_272 {dimension_numbers = #tpu.dot_dimension_numbers<[1], [0], [0], [1], [0, 0, 1, 1], [], []>} : vector<64x144xbf16>, vector<144x8xbf16>, vector<64x8xf32> -> vector<64x8xf32>
    %c0_273 = arith.constant 0 : index
    %c0_274 = arith.constant 0 : index
    %200 = vector.load %arg12[%c0_273, %c0_274] : memref<1x8xf32, #tpu.memory_space<vmem>>, vector<1x8xf32>
    %201 = vector.broadcast %200 : vector<1x8xf32> to vector<64x8xf32>
    %202 = arith.addf %199, %201 : vector<64x8xf32>
    %203 = vector.shape_cast %202 : vector<64x8xf32> to vector<8x8x8xf32>
    %c0_275 = arith.constant 0 : index
    %c1_276 = arith.constant 1 : index
    %c1_277 = arith.constant 1 : index
    %c0_278 = arith.constant 0 : index
    %204 = vector.load %arg25[%c0_275, %c1_276, %c1_277, %c0_278] : memref<1x10x10x8xf32, #tpu.memory_space<vmem>>, vector<1x8x8x8xf32>
    %205 = vector.shape_cast %204 : vector<1x8x8x8xf32> to vector<8x8x8xf32>
    %206 = vector.shape_cast %203 : vector<8x8x8xf32> to vector<1x8x8x8xf32>
    tpu.vector_store %arg25[%c0_275, %c1_276, %c1_277, %c0_278], %206 {strides = array<i32>} : memref<1x10x10x8xf32, #tpu.memory_space<vmem>>, vector<1x8x8x8xf32>,
    %c0_279 = arith.constant 0 : index
    %c0_280 = arith.constant 0 : index
    %c0_281 = arith.constant 0 : index
    %c0_282 = arith.constant 0 : index
    %207 = vector.load %arg25[%c0_279, %c0_280, %c0_281, %c0_282] : memref<1x10x10x8xf32, #tpu.memory_space<vmem>>, vector<1x8x8x8xf32>
    %208 = vector.shape_cast %207 : vector<1x8x8x8xf32> to vector<8x8x8xf32>
    %209 = vector.shape_cast %208 : vector<8x8x8xf32> to vector<64x8xf32>
    %c0_283 = arith.constant 0 : index
    %c0_284 = arith.constant 0 : index
    %210 = vector.load %arg28[%c0_283, %c0_284] : memref<64x1152xf32, #tpu.memory_space<vmem>>, vector<64x8xf32>
    tpu.vector_store %arg28[%c0_283, %c0_284], %209 {strides = array<i32>} : memref<64x1152xf32, #tpu.memory_space<vmem>>, vector<64x8xf32>,
    %c0_285 = arith.constant 0 : index
    %c0_286 = arith.constant 0 : index
    %c1_287 = arith.constant 1 : index
    %c0_288 = arith.constant 0 : index
    %211 = vector.load %arg25[%c0_285, %c0_286, %c1_287, %c0_288] : memref<1x10x10x8xf32, #tpu.memory_space<vmem>>, vector<1x8x8x8xf32>
    %212 = vector.shape_cast %211 : vector<1x8x8x8xf32> to vector<8x8x8xf32>
    %213 = vector.shape_cast %212 : vector<8x8x8xf32> to vector<64x8xf32>
    %c0_289 = arith.constant 0 : index
    %c8 = arith.constant 8 : index
    %214 = vector.load %arg28[%c0_289, %c8] : memref<64x1152xf32, #tpu.memory_space<vmem>>, vector<64x8xf32>
    tpu.vector_store %arg28[%c0_289, %c8], %213 {strides = array<i32>} : memref<64x1152xf32, #tpu.memory_space<vmem>>, vector<64x8xf32>,
    %c0_290 = arith.constant 0 : index
    %c0_291 = arith.constant 0 : index
    %c2_292 = arith.constant 2 : index
    %c0_293 = arith.constant 0 : index
    %215 = vector.load %arg25[%c0_290, %c0_291, %c2_292, %c0_293] : memref<1x10x10x8xf32, #tpu.memory_space<vmem>>, vector<1x8x8x8xf32>
    %216 = vector.shape_cast %215 : vector<1x8x8x8xf32> to vector<8x8x8xf32>
    %217 = vector.shape_cast %216 : vector<8x8x8xf32> to vector<64x8xf32>
    %c0_294 = arith.constant 0 : index
    %c16_295 = arith.constant 16 : index
    %218 = vector.load %arg28[%c0_294, %c16_295] : memref<64x1152xf32, #tpu.memory_space<vmem>>, vector<64x8xf32>
    tpu.vector_store %arg28[%c0_294, %c16_295], %217 {strides = array<i32>} : memref<64x1152xf32, #tpu.memory_space<vmem>>, vector<64x8xf32>,
    %c0_296 = arith.constant 0 : index
    %c1_297 = arith.constant 1 : index
    %c0_298 = arith.constant 0 : index
    %c0_299 = arith.constant 0 : index
    %219 = vector.load %arg25[%c0_296, %c1_297, %c0_298, %c0_299] : memref<1x10x10x8xf32, #tpu.memory_space<vmem>>, vector<1x8x8x8xf32>
    %220 = vector.shape_cast %219 : vector<1x8x8x8xf32> to vector<8x8x8xf32>
    %221 = vector.shape_cast %220 : vector<8x8x8xf32> to vector<64x8xf32>
    %c0_300 = arith.constant 0 : index
    %c24 = arith.constant 24 : index
    %222 = vector.load %arg28[%c0_300, %c24] : memref<64x1152xf32, #tpu.memory_space<vmem>>, vector<64x8xf32>
    tpu.vector_store %arg28[%c0_300, %c24], %221 {strides = array<i32>} : memref<64x1152xf32, #tpu.memory_space<vmem>>, vector<64x8xf32>,
    %c0_301 = arith.constant 0 : index
    %c1_302 = arith.constant 1 : index
    %c1_303 = arith.constant 1 : index
    %c0_304 = arith.constant 0 : index
    %223 = vector.load %arg25[%c0_301, %c1_302, %c1_303, %c0_304] : memref<1x10x10x8xf32, #tpu.memory_space<vmem>>, vector<1x8x8x8xf32>
    %224 = vector.shape_cast %223 : vector<1x8x8x8xf32> to vector<8x8x8xf32>
    %225 = vector.shape_cast %224 : vector<8x8x8xf32> to vector<64x8xf32>
    %c0_305 = arith.constant 0 : index
    %c32_306 = arith.constant 32 : index
    %226 = vector.load %arg28[%c0_305, %c32_306] : memref<64x1152xf32, #tpu.memory_space<vmem>>, vector<64x8xf32>
    tpu.vector_store %arg28[%c0_305, %c32_306], %225 {strides = array<i32>} : memref<64x1152xf32, #tpu.memory_space<vmem>>, vector<64x8xf32>,
    %c0_307 = arith.constant 0 : index
    %c1_308 = arith.constant 1 : index
    %c2_309 = arith.constant 2 : index
    %c0_310 = arith.constant 0 : index
    %227 = vector.load %arg25[%c0_307, %c1_308, %c2_309, %c0_310] : memref<1x10x10x8xf32, #tpu.memory_space<vmem>>, vector<1x8x8x8xf32>
    %228 = vector.shape_cast %227 : vector<1x8x8x8xf32> to vector<8x8x8xf32>
    %229 = vector.shape_cast %228 : vector<8x8x8xf32> to vector<64x8xf32>
    %c0_311 = arith.constant 0 : index
    %c40 = arith.constant 40 : index
    %230 = vector.load %arg28[%c0_311, %c40] : memref<64x1152xf32, #tpu.memory_space<vmem>>, vector<64x8xf32>
    tpu.vector_store %arg28[%c0_311, %c40], %229 {strides = array<i32>} : memref<64x1152xf32, #tpu.memory_space<vmem>>, vector<64x8xf32>,
    %c0_312 = arith.constant 0 : index
    %c2_313 = arith.constant 2 : index
    %c0_314 = arith.constant 0 : index
    %c0_315 = arith.constant 0 : index
    %231 = vector.load %arg25[%c0_312, %c2_313, %c0_314, %c0_315] : memref<1x10x10x8xf32, #tpu.memory_space<vmem>>, vector<1x8x8x8xf32>
    %232 = vector.shape_cast %231 : vector<1x8x8x8xf32> to vector<8x8x8xf32>
    %233 = vector.shape_cast %232 : vector<8x8x8xf32> to vector<64x8xf32>
    %c0_316 = arith.constant 0 : index
    %c48_317 = arith.constant 48 : index
    %234 = vector.load %arg28[%c0_316, %c48_317] : memref<64x1152xf32, #tpu.memory_space<vmem>>, vector<64x8xf32>
    tpu.vector_store %arg28[%c0_316, %c48_317], %233 {strides = array<i32>} : memref<64x1152xf32, #tpu.memory_space<vmem>>, vector<64x8xf32>,
    %c0_318 = arith.constant 0 : index
    %c2_319 = arith.constant 2 : index
    %c1_320 = arith.constant 1 : index
    %c0_321 = arith.constant 0 : index
    %235 = vector.load %arg25[%c0_318, %c2_319, %c1_320, %c0_321] : memref<1x10x10x8xf32, #tpu.memory_space<vmem>>, vector<1x8x8x8xf32>
    %236 = vector.shape_cast %235 : vector<1x8x8x8xf32> to vector<8x8x8xf32>
    %237 = vector.shape_cast %236 : vector<8x8x8xf32> to vector<64x8xf32>
    %c0_322 = arith.constant 0 : index
    %c56 = arith.constant 56 : index
    %238 = vector.load %arg28[%c0_322, %c56] : memref<64x1152xf32, #tpu.memory_space<vmem>>, vector<64x8xf32>
    tpu.vector_store %arg28[%c0_322, %c56], %237 {strides = array<i32>} : memref<64x1152xf32, #tpu.memory_space<vmem>>, vector<64x8xf32>,
    %c0_323 = arith.constant 0 : index
    %c2_324 = arith.constant 2 : index
    %c2_325 = arith.constant 2 : index
    %c0_326 = arith.constant 0 : index
    %239 = vector.load %arg25[%c0_323, %c2_324, %c2_325, %c0_326] : memref<1x10x10x8xf32, #tpu.memory_space<vmem>>, vector<1x8x8x8xf32>
    %240 = vector.shape_cast %239 : vector<1x8x8x8xf32> to vector<8x8x8xf32>
    %241 = vector.shape_cast %240 : vector<8x8x8xf32> to vector<64x8xf32>
    %c0_327 = arith.constant 0 : index
    %c64_328 = arith.constant 64 : index
    %242 = vector.load %arg28[%c0_327, %c64_328] : memref<64x1152xf32, #tpu.memory_space<vmem>>, vector<64x8xf32>
    tpu.vector_store %arg28[%c0_327, %c64_328], %241 {strides = array<i32>} : memref<64x1152xf32, #tpu.memory_space<vmem>>, vector<64x8xf32>,
    %c0_329 = arith.constant 0 : index
    %c0_330 = arith.constant 0 : index
    %243 = vector.load %arg28[%c0_329, %c0_330] : memref<64x1152xf32, #tpu.memory_space<vmem>>, vector<64x72xf32>
    %244 = arith.truncf %243 : vector<64x72xf32> to vector<64x72xbf16>
    %c0_331 = arith.constant 0 : index
    %c0_332 = arith.constant 0 : index
    %245 = vector.load %arg6[%c0_331, %c0_332] : memref<72x4xbf16, #tpu.memory_space<vmem>>, vector<72x4xbf16>
    %cst_333 = arith.constant dense<0.000000e+00> : vector<64x4xf32>
    %246 = tpu.matmul %244, %245, %cst_333 {dimension_numbers = #tpu.dot_dimension_numbers<[1], [0], [0], [1], [0, 0, 1, 1], [], []>} : vector<64x72xbf16>, vector<72x4xbf16>, vector<64x4xf32> -> vector<64x4xf32>
    %c0_334 = arith.constant 0 : index
    %c0_335 = arith.constant 0 : index
    %247 = vector.load %arg13[%c0_334, %c0_335] : memref<1x4xf32, #tpu.memory_space<vmem>>, vector<1x4xf32>
    %248 = vector.broadcast %247 : vector<1x4xf32> to vector<64x4xf32>
    %249 = arith.addf %246, %248 : vector<64x4xf32>
    %250 = vector.shape_cast %249 : vector<64x4xf32> to vector<8x8x4xf32>
    %c0_336 = arith.constant 0 : index
    %c1_337 = arith.constant 1 : index
    %c1_338 = arith.constant 1 : index
    %c0_339 = arith.constant 0 : index
    %251 = vector.load %arg26[%c0_336, %c1_337, %c1_338, %c0_339] : memref<1x10x10x4xf32, #tpu.memory_space<vmem>>, vector<1x8x8x4xf32>
    %252 = vector.shape_cast %251 : vector<1x8x8x4xf32> to vector<8x8x4xf32>
    %253 = vector.shape_cast %250 : vector<8x8x4xf32> to vector<1x8x8x4xf32>
    tpu.vector_store %arg26[%c0_336, %c1_337, %c1_338, %c0_339], %253 {strides = array<i32>} : memref<1x10x10x4xf32, #tpu.memory_space<vmem>>, vector<1x8x8x4xf32>,
    %c0_340 = arith.constant 0 : index
    %c0_341 = arith.constant 0 : index
    %c0_342 = arith.constant 0 : index
    %c0_343 = arith.constant 0 : index
    %254 = vector.load %arg26[%c0_340, %c0_341, %c0_342, %c0_343] : memref<1x10x10x4xf32, #tpu.memory_space<vmem>>, vector<1x8x8x4xf32>
    %255 = vector.shape_cast %254 : vector<1x8x8x4xf32> to vector<8x8x4xf32>
    %256 = vector.shape_cast %255 : vector<8x8x4xf32> to vector<64x4xf32>
    %c0_344 = arith.constant 0 : index
    %c0_345 = arith.constant 0 : index
    %257 = vector.load %arg28[%c0_344, %c0_345] : memref<64x1152xf32, #tpu.memory_space<vmem>>, vector<64x4xf32>
    tpu.vector_store %arg28[%c0_344, %c0_345], %256 {strides = array<i32>} : memref<64x1152xf32, #tpu.memory_space<vmem>>, vector<64x4xf32>,
    %c0_346 = arith.constant 0 : index
    %c0_347 = arith.constant 0 : index
    %c1_348 = arith.constant 1 : index
    %c0_349 = arith.constant 0 : index
    %258 = vector.load %arg26[%c0_346, %c0_347, %c1_348, %c0_349] : memref<1x10x10x4xf32, #tpu.memory_space<vmem>>, vector<1x8x8x4xf32>
    %259 = vector.shape_cast %258 : vector<1x8x8x4xf32> to vector<8x8x4xf32>
    %260 = vector.shape_cast %259 : vector<8x8x4xf32> to vector<64x4xf32>
    %c0_350 = arith.constant 0 : index
    %c4 = arith.constant 4 : index
    %261 = vector.load %arg28[%c0_350, %c4] : memref<64x1152xf32, #tpu.memory_space<vmem>>, vector<64x4xf32>
    tpu.vector_store %arg28[%c0_350, %c4], %260 {strides = array<i32>} : memref<64x1152xf32, #tpu.memory_space<vmem>>, vector<64x4xf32>,
    %c0_351 = arith.constant 0 : index
    %c0_352 = arith.constant 0 : index
    %c2_353 = arith.constant 2 : index
    %c0_354 = arith.constant 0 : index
    %262 = vector.load %arg26[%c0_351, %c0_352, %c2_353, %c0_354] : memref<1x10x10x4xf32, #tpu.memory_space<vmem>>, vector<1x8x8x4xf32>
    %263 = vector.shape_cast %262 : vector<1x8x8x4xf32> to vector<8x8x4xf32>
    %264 = vector.shape_cast %263 : vector<8x8x4xf32> to vector<64x4xf32>
    %c0_355 = arith.constant 0 : index
    %c8_356 = arith.constant 8 : index
    %265 = vector.load %arg28[%c0_355, %c8_356] : memref<64x1152xf32, #tpu.memory_space<vmem>>, vector<64x4xf32>
    tpu.vector_store %arg28[%c0_355, %c8_356], %264 {strides = array<i32>} : memref<64x1152xf32, #tpu.memory_space<vmem>>, vector<64x4xf32>,
    %c0_357 = arith.constant 0 : index
    %c1_358 = arith.constant 1 : index
    %c0_359 = arith.constant 0 : index
    %c0_360 = arith.constant 0 : index
    %266 = vector.load %arg26[%c0_357, %c1_358, %c0_359, %c0_360] : memref<1x10x10x4xf32, #tpu.memory_space<vmem>>, vector<1x8x8x4xf32>
    %267 = vector.shape_cast %266 : vector<1x8x8x4xf32> to vector<8x8x4xf32>
    %268 = vector.shape_cast %267 : vector<8x8x4xf32> to vector<64x4xf32>
    %c0_361 = arith.constant 0 : index
    %c12 = arith.constant 12 : index
    %269 = vector.load %arg28[%c0_361, %c12] : memref<64x1152xf32, #tpu.memory_space<vmem>>, vector<64x4xf32>
    tpu.vector_store %arg28[%c0_361, %c12], %268 {strides = array<i32>} : memref<64x1152xf32, #tpu.memory_space<vmem>>, vector<64x4xf32>,
    %c0_362 = arith.constant 0 : index
    %c1_363 = arith.constant 1 : index
    %c1_364 = arith.constant 1 : index
    %c0_365 = arith.constant 0 : index
    %270 = vector.load %arg26[%c0_362, %c1_363, %c1_364, %c0_365] : memref<1x10x10x4xf32, #tpu.memory_space<vmem>>, vector<1x8x8x4xf32>
    %271 = vector.shape_cast %270 : vector<1x8x8x4xf32> to vector<8x8x4xf32>
    %272 = vector.shape_cast %271 : vector<8x8x4xf32> to vector<64x4xf32>
    %c0_366 = arith.constant 0 : index
    %c16_367 = arith.constant 16 : index
    %273 = vector.load %arg28[%c0_366, %c16_367] : memref<64x1152xf32, #tpu.memory_space<vmem>>, vector<64x4xf32>
    tpu.vector_store %arg28[%c0_366, %c16_367], %272 {strides = array<i32>} : memref<64x1152xf32, #tpu.memory_space<vmem>>, vector<64x4xf32>,
    %c0_368 = arith.constant 0 : index
    %c1_369 = arith.constant 1 : index
    %c2_370 = arith.constant 2 : index
    %c0_371 = arith.constant 0 : index
    %274 = vector.load %arg26[%c0_368, %c1_369, %c2_370, %c0_371] : memref<1x10x10x4xf32, #tpu.memory_space<vmem>>, vector<1x8x8x4xf32>
    %275 = vector.shape_cast %274 : vector<1x8x8x4xf32> to vector<8x8x4xf32>
    %276 = vector.shape_cast %275 : vector<8x8x4xf32> to vector<64x4xf32>
    %c0_372 = arith.constant 0 : index
    %c20 = arith.constant 20 : index
    %277 = vector.load %arg28[%c0_372, %c20] : memref<64x1152xf32, #tpu.memory_space<vmem>>, vector<64x4xf32>
    tpu.vector_store %arg28[%c0_372, %c20], %276 {strides = array<i32>} : memref<64x1152xf32, #tpu.memory_space<vmem>>, vector<64x4xf32>,
    %c0_373 = arith.constant 0 : index
    %c2_374 = arith.constant 2 : index
    %c0_375 = arith.constant 0 : index
    %c0_376 = arith.constant 0 : index
    %278 = vector.load %arg26[%c0_373, %c2_374, %c0_375, %c0_376] : memref<1x10x10x4xf32, #tpu.memory_space<vmem>>, vector<1x8x8x4xf32>
    %279 = vector.shape_cast %278 : vector<1x8x8x4xf32> to vector<8x8x4xf32>
    %280 = vector.shape_cast %279 : vector<8x8x4xf32> to vector<64x4xf32>
    %c0_377 = arith.constant 0 : index
    %c24_378 = arith.constant 24 : index
    %281 = vector.load %arg28[%c0_377, %c24_378] : memref<64x1152xf32, #tpu.memory_space<vmem>>, vector<64x4xf32>
    tpu.vector_store %arg28[%c0_377, %c24_378], %280 {strides = array<i32>} : memref<64x1152xf32, #tpu.memory_space<vmem>>, vector<64x4xf32>,
    %c0_379 = arith.constant 0 : index
    %c2_380 = arith.constant 2 : index
    %c1_381 = arith.constant 1 : index
    %c0_382 = arith.constant 0 : index
    %282 = vector.load %arg26[%c0_379, %c2_380, %c1_381, %c0_382] : memref<1x10x10x4xf32, #tpu.memory_space<vmem>>, vector<1x8x8x4xf32>
    %283 = vector.shape_cast %282 : vector<1x8x8x4xf32> to vector<8x8x4xf32>
    %284 = vector.shape_cast %283 : vector<8x8x4xf32> to vector<64x4xf32>
    %c0_383 = arith.constant 0 : index
    %c28 = arith.constant 28 : index
    %285 = vector.load %arg28[%c0_383, %c28] : memref<64x1152xf32, #tpu.memory_space<vmem>>, vector<64x4xf32>
    tpu.vector_store %arg28[%c0_383, %c28], %284 {strides = array<i32>} : memref<64x1152xf32, #tpu.memory_space<vmem>>, vector<64x4xf32>,
    %c0_384 = arith.constant 0 : index
    %c2_385 = arith.constant 2 : index
    %c2_386 = arith.constant 2 : index
    %c0_387 = arith.constant 0 : index
    %286 = vector.load %arg26[%c0_384, %c2_385, %c2_386, %c0_387] : memref<1x10x10x4xf32, #tpu.memory_space<vmem>>, vector<1x8x8x4xf32>
    %287 = vector.shape_cast %286 : vector<1x8x8x4xf32> to vector<8x8x4xf32>
    %288 = vector.shape_cast %287 : vector<8x8x4xf32> to vector<64x4xf32>
    %c0_388 = arith.constant 0 : index
    %c32_389 = arith.constant 32 : index
    %289 = vector.load %arg28[%c0_388, %c32_389] : memref<64x1152xf32, #tpu.memory_space<vmem>>, vector<64x4xf32>
    tpu.vector_store %arg28[%c0_388, %c32_389], %288 {strides = array<i32>} : memref<64x1152xf32, #tpu.memory_space<vmem>>, vector<64x4xf32>,
    %c0_390 = arith.constant 0 : index
    %c0_391 = arith.constant 0 : index
    %290 = vector.load %arg28[%c0_390, %c0_391] : memref<64x1152xf32, #tpu.memory_space<vmem>>, vector<64x36xf32>
    %291 = arith.truncf %290 : vector<64x36xf32> to vector<64x36xbf16>
    %c0_392 = arith.constant 0 : index
    %c0_393 = arith.constant 0 : index
    %292 = vector.load %arg7[%c0_392, %c0_393] : memref<36x2xbf16, #tpu.memory_space<vmem>>, vector<36x2xbf16>
    %cst_394 = arith.constant dense<0.000000e+00> : vector<64x2xf32>
    %293 = tpu.matmul %291, %292, %cst_394 {dimension_numbers = #tpu.dot_dimension_numbers<[1], [0], [0], [1], [0, 0, 1, 1], [], []>} : vector<64x36xbf16>, vector<36x2xbf16>, vector<64x2xf32> -> vector<64x2xf32>
    %c0_395 = arith.constant 0 : index
    %c0_396 = arith.constant 0 : index
    %294 = vector.load %arg14[%c0_395, %c0_396] : memref<1x2xf32, #tpu.memory_space<vmem>>, vector<1x2xf32>
    %295 = vector.broadcast %294 : vector<1x2xf32> to vector<64x2xf32>
    %296 = arith.addf %293, %295 : vector<64x2xf32>
    %297 = vector.shape_cast %296 : vector<64x2xf32> to vector<8x8x2xf32>
    %c0_397 = arith.constant 0 : index
    %c1_398 = arith.constant 1 : index
    %c1_399 = arith.constant 1 : index
    %c0_400 = arith.constant 0 : index
    %298 = vector.load %arg27[%c0_397, %c1_398, %c1_399, %c0_400] : memref<1x10x10x2xf32, #tpu.memory_space<vmem>>, vector<1x8x8x2xf32>
    %299 = vector.shape_cast %298 : vector<1x8x8x2xf32> to vector<8x8x2xf32>
    %300 = vector.shape_cast %297 : vector<8x8x2xf32> to vector<1x8x8x2xf32>
    tpu.vector_store %arg27[%c0_397, %c1_398, %c1_399, %c0_400], %300 {strides = array<i32>} : memref<1x10x10x2xf32, #tpu.memory_space<vmem>>, vector<1x8x8x2xf32>,
    %c0_401 = arith.constant 0 : index
    %c0_402 = arith.constant 0 : index
    %c0_403 = arith.constant 0 : index
    %c0_404 = arith.constant 0 : index
    %301 = vector.load %arg27[%c0_401, %c0_402, %c0_403, %c0_404] : memref<1x10x10x2xf32, #tpu.memory_space<vmem>>, vector<1x8x8x2xf32>
    %302 = vector.shape_cast %301 : vector<1x8x8x2xf32> to vector<8x8x2xf32>
    %303 = vector.shape_cast %302 : vector<8x8x2xf32> to vector<64x2xf32>
    %c0_405 = arith.constant 0 : index
    %c0_406 = arith.constant 0 : index
    %304 = vector.load %arg28[%c0_405, %c0_406] : memref<64x1152xf32, #tpu.memory_space<vmem>>, vector<64x2xf32>
    tpu.vector_store %arg28[%c0_405, %c0_406], %303 {strides = array<i32>} : memref<64x1152xf32, #tpu.memory_space<vmem>>, vector<64x2xf32>,
    %c0_407 = arith.constant 0 : index
    %c0_408 = arith.constant 0 : index
    %c1_409 = arith.constant 1 : index
    %c0_410 = arith.constant 0 : index
    %305 = vector.load %arg27[%c0_407, %c0_408, %c1_409, %c0_410] : memref<1x10x10x2xf32, #tpu.memory_space<vmem>>, vector<1x8x8x2xf32>
    %306 = vector.shape_cast %305 : vector<1x8x8x2xf32> to vector<8x8x2xf32>
    %307 = vector.shape_cast %306 : vector<8x8x2xf32> to vector<64x2xf32>
    %c0_411 = arith.constant 0 : index
    %c2_412 = arith.constant 2 : index
    %308 = vector.load %arg28[%c0_411, %c2_412] : memref<64x1152xf32, #tpu.memory_space<vmem>>, vector<64x2xf32>
    tpu.vector_store %arg28[%c0_411, %c2_412], %307 {strides = array<i32>} : memref<64x1152xf32, #tpu.memory_space<vmem>>, vector<64x2xf32>,
    %c0_413 = arith.constant 0 : index
    %c0_414 = arith.constant 0 : index
    %c2_415 = arith.constant 2 : index
    %c0_416 = arith.constant 0 : index
    %309 = vector.load %arg27[%c0_413, %c0_414, %c2_415, %c0_416] : memref<1x10x10x2xf32, #tpu.memory_space<vmem>>, vector<1x8x8x2xf32>
    %310 = vector.shape_cast %309 : vector<1x8x8x2xf32> to vector<8x8x2xf32>
    %311 = vector.shape_cast %310 : vector<8x8x2xf32> to vector<64x2xf32>
    %c0_417 = arith.constant 0 : index
    %c4_418 = arith.constant 4 : index
    %312 = vector.load %arg28[%c0_417, %c4_418] : memref<64x1152xf32, #tpu.memory_space<vmem>>, vector<64x2xf32>
    tpu.vector_store %arg28[%c0_417, %c4_418], %311 {strides = array<i32>} : memref<64x1152xf32, #tpu.memory_space<vmem>>, vector<64x2xf32>,
    %c0_419 = arith.constant 0 : index
    %c1_420 = arith.constant 1 : index
    %c0_421 = arith.constant 0 : index
    %c0_422 = arith.constant 0 : index
    %313 = vector.load %arg27[%c0_419, %c1_420, %c0_421, %c0_422] : memref<1x10x10x2xf32, #tpu.memory_space<vmem>>, vector<1x8x8x2xf32>
    %314 = vector.shape_cast %313 : vector<1x8x8x2xf32> to vector<8x8x2xf32>
    %315 = vector.shape_cast %314 : vector<8x8x2xf32> to vector<64x2xf32>
    %c0_423 = arith.constant 0 : index
    %c6 = arith.constant 6 : index
    %316 = vector.load %arg28[%c0_423, %c6] : memref<64x1152xf32, #tpu.memory_space<vmem>>, vector<64x2xf32>
    tpu.vector_store %arg28[%c0_423, %c6], %315 {strides = array<i32>} : memref<64x1152xf32, #tpu.memory_space<vmem>>, vector<64x2xf32>,
    %c0_424 = arith.constant 0 : index
    %c1_425 = arith.constant 1 : index
    %c1_426 = arith.constant 1 : index
    %c0_427 = arith.constant 0 : index
    %317 = vector.load %arg27[%c0_424, %c1_425, %c1_426, %c0_427] : memref<1x10x10x2xf32, #tpu.memory_space<vmem>>, vector<1x8x8x2xf32>
    %318 = vector.shape_cast %317 : vector<1x8x8x2xf32> to vector<8x8x2xf32>
    %319 = vector.shape_cast %318 : vector<8x8x2xf32> to vector<64x2xf32>
    %c0_428 = arith.constant 0 : index
    %c8_429 = arith.constant 8 : index
    %320 = vector.load %arg28[%c0_428, %c8_429] : memref<64x1152xf32, #tpu.memory_space<vmem>>, vector<64x2xf32>
    tpu.vector_store %arg28[%c0_428, %c8_429], %319 {strides = array<i32>} : memref<64x1152xf32, #tpu.memory_space<vmem>>, vector<64x2xf32>,
    %c0_430 = arith.constant 0 : index
    %c1_431 = arith.constant 1 : index
    %c2_432 = arith.constant 2 : index
    %c0_433 = arith.constant 0 : index
    %321 = vector.load %arg27[%c0_430, %c1_431, %c2_432, %c0_433] : memref<1x10x10x2xf32, #tpu.memory_space<vmem>>, vector<1x8x8x2xf32>
    %322 = vector.shape_cast %321 : vector<1x8x8x2xf32> to vector<8x8x2xf32>
    %323 = vector.shape_cast %322 : vector<8x8x2xf32> to vector<64x2xf32>
    %c0_434 = arith.constant 0 : index
    %c10 = arith.constant 10 : index
    %324 = vector.load %arg28[%c0_434, %c10] : memref<64x1152xf32, #tpu.memory_space<vmem>>, vector<64x2xf32>
    tpu.vector_store %arg28[%c0_434, %c10], %323 {strides = array<i32>} : memref<64x1152xf32, #tpu.memory_space<vmem>>, vector<64x2xf32>,
    %c0_435 = arith.constant 0 : index
    %c2_436 = arith.constant 2 : index
    %c0_437 = arith.constant 0 : index
    %c0_438 = arith.constant 0 : index
    %325 = vector.load %arg27[%c0_435, %c2_436, %c0_437, %c0_438] : memref<1x10x10x2xf32, #tpu.memory_space<vmem>>, vector<1x8x8x2xf32>
    %326 = vector.shape_cast %325 : vector<1x8x8x2xf32> to vector<8x8x2xf32>
    %327 = vector.shape_cast %326 : vector<8x8x2xf32> to vector<64x2xf32>
    %c0_439 = arith.constant 0 : index
    %c12_440 = arith.constant 12 : index
    %328 = vector.load %arg28[%c0_439, %c12_440] : memref<64x1152xf32, #tpu.memory_space<vmem>>, vector<64x2xf32>
    tpu.vector_store %arg28[%c0_439, %c12_440], %327 {strides = array<i32>} : memref<64x1152xf32, #tpu.memory_space<vmem>>, vector<64x2xf32>,
    %c0_441 = arith.constant 0 : index
    %c2_442 = arith.constant 2 : index
    %c1_443 = arith.constant 1 : index
    %c0_444 = arith.constant 0 : index
    %329 = vector.load %arg27[%c0_441, %c2_442, %c1_443, %c0_444] : memref<1x10x10x2xf32, #tpu.memory_space<vmem>>, vector<1x8x8x2xf32>
    %330 = vector.shape_cast %329 : vector<1x8x8x2xf32> to vector<8x8x2xf32>
    %331 = vector.shape_cast %330 : vector<8x8x2xf32> to vector<64x2xf32>
    %c0_445 = arith.constant 0 : index
    %c14 = arith.constant 14 : index
    %332 = vector.load %arg28[%c0_445, %c14] : memref<64x1152xf32, #tpu.memory_space<vmem>>, vector<64x2xf32>
    tpu.vector_store %arg28[%c0_445, %c14], %331 {strides = array<i32>} : memref<64x1152xf32, #tpu.memory_space<vmem>>, vector<64x2xf32>,
    %c0_446 = arith.constant 0 : index
    %c2_447 = arith.constant 2 : index
    %c2_448 = arith.constant 2 : index
    %c0_449 = arith.constant 0 : index
    %333 = vector.load %arg27[%c0_446, %c2_447, %c2_448, %c0_449] : memref<1x10x10x2xf32, #tpu.memory_space<vmem>>, vector<1x8x8x2xf32>
    %334 = vector.shape_cast %333 : vector<1x8x8x2xf32> to vector<8x8x2xf32>
    %335 = vector.shape_cast %334 : vector<8x8x2xf32> to vector<64x2xf32>
    %c0_450 = arith.constant 0 : index
    %c16_451 = arith.constant 16 : index
    %336 = vector.load %arg28[%c0_450, %c16_451] : memref<64x1152xf32, #tpu.memory_space<vmem>>, vector<64x2xf32>
    tpu.vector_store %arg28[%c0_450, %c16_451], %335 {strides = array<i32>} : memref<64x1152xf32, #tpu.memory_space<vmem>>, vector<64x2xf32>,
    %c0_452 = arith.constant 0 : index
    %c0_453 = arith.constant 0 : index
    %337 = vector.load %arg28[%c0_452, %c0_453] : memref<64x1152xf32, #tpu.memory_space<vmem>>, vector<64x18xf32>
    %338 = arith.truncf %337 : vector<64x18xf32> to vector<64x18xbf16>
    %c0_454 = arith.constant 0 : index
    %c0_455 = arith.constant 0 : index
    %339 = vector.load %arg8[%c0_454, %c0_455] : memref<18x1xbf16, #tpu.memory_space<vmem>>, vector<18x1xbf16>
    %cst_456 = arith.constant dense<0.000000e+00> : vector<64x1xf32>
    %340 = tpu.matmul %338, %339, %cst_456 {dimension_numbers = #tpu.dot_dimension_numbers<[1], [0], [0], [1], [0, 0, 1, 1], [], []>} : vector<64x18xbf16>, vector<18x1xbf16>, vector<64x1xf32> -> vector<64x1xf32>
    %c0_457 = arith.constant 0 : index
    %c0_458 = arith.constant 0 : index
    %341 = vector.load %arg15[%c0_457, %c0_458] : memref<1x1xf32, #tpu.memory_space<vmem>>, vector<1x1xf32>
    %342 = vector.broadcast %341 : vector<1x1xf32> to vector<64x1xf32>
    %343 = arith.addf %340, %342 : vector<64x1xf32>
    %c0_459 = arith.constant 0 : index
    %c0_460 = arith.constant 0 : index
    %344 = vector.load %arg16[%c0_459, %c0_460] : memref<64x128xf32, #tpu.memory_space<vmem>>, vector<64x128xf32>
    %345 = vector.broadcast %343 : vector<64x1xf32> to vector<64x128xf32>
    %346 = arith.mulf %345, %344 : vector<64x128xf32>
    %c0_461 = arith.constant 0 : index
    %c0_462 = arith.constant 0 : index
    %347 = vector.load %arg17[%c0_461, %c0_462] : memref<1x64xf32, #tpu.memory_space<vmem>>, vector<1x64xf32>
    %cst_463 = arith.constant dense<0.000000e+00> : vector<1x128xf32>
    %348 = tpu.matmul %347, %346, %cst_463 {dimension_numbers = #tpu.dot_dimension_numbers<[1], [0], [0], [1], [0, 0, 1, 1], [], []>} : vector<1x64xf32>, vector<64x128xf32>, vector<1x128xf32> -> vector<1x128xf32>
    %c0_464 = arith.constant 0 : index
    %c0_465 = arith.constant 0 : index
    %349 = vector.load %arg18[%c0_464, %c0_465] : memref<128x1xf32, #tpu.memory_space<vmem>>, vector<128x1xf32>
    %cst_466 = arith.constant dense<0.000000e+00> : vector<1x1xf32>
    %350 = tpu.matmul %348, %349, %cst_466 {dimension_numbers = #tpu.dot_dimension_numbers<[1], [0], [0], [1], [0, 0, 1, 1], [], []>} : vector<1x128xf32>, vector<128x1xf32>, vector<1x1xf32> -> vector<1x1xf32>
    %c0_467 = arith.constant 0 : index
    %c0_468 = arith.constant 0 : index
    %351 = vector.load %arg19[%c0_467, %c0_468] : memref<1x1xf32, #tpu.memory_space<vmem>>, vector<1x1xf32>
    %352 = arith.addf %350, %351 : vector<1x1xf32>
    %c0_469 = arith.constant 0 : index
    %c0_470 = arith.constant 0 : index
    %c0_471 = arith.constant 0 : index
    %353 = vector.load %arg20[%c0_469, %c0_470, %c0_471] : memref<1x1x1xf32, #tpu.memory_space<vmem>>, vector<1x1x1xf32>
    %354 = vector.shape_cast %353 : vector<1x1x1xf32> to vector<1x1xf32>
    %355 = vector.shape_cast %352 : vector<1x1xf32> to vector<1x1x1xf32>
    tpu.vector_store %arg20[%c0_469, %c0_470, %c0_471], %355 {strides = array<i32>} : memref<1x1x1xf32, #tpu.memory_space<vmem>>, vector<1x1x1xf32>,
    return
  }
  func.func @transform_0(%arg0: i32) -> (i32, i32, i32, i32) {
    %c0_i32 = arith.constant 0 : i32
    %c0_i32_0 = arith.constant 0 : i32
    %c0_i32_1 = arith.constant 0 : i32
    %c0_i32_2 = arith.constant 0 : i32
    return %arg0, %c0_i32, %c0_i32_0, %c0_i32_1 : i32, i32, i32, i32
  }
  func.func @transform_1(%arg0: i32) -> (i32, i32) {
    %c0_i32 = arith.constant 0 : i32
    %c0_i32_0 = arith.constant 0 : i32
    %c0_i32_1 = arith.constant 0 : i32
    return %c0_i32, %c0_i32_0 : i32, i32
  }
  func.func @transform_2(%arg0: i32) -> (i32, i32) {
    %c0_i32 = arith.constant 0 : i32
    %c0_i32_0 = arith.constant 0 : i32
    %c0_i32_1 = arith.constant 0 : i32
    return %c0_i32, %c0_i32_0 : i32, i32
  }
  func.func @transform_3(%arg0: i32) -> (i32, i32) {
    %c0_i32 = arith.constant 0 : i32
    %c0_i32_0 = arith.constant 0 : i32
    %c0_i32_1 = arith.constant 0 : i32
    return %c0_i32, %c0_i32_0 : i32, i32
  }
  func.func @transform_4(%arg0: i32) -> (i32, i32) {
    %c0_i32 = arith.constant 0 : i32
    %c0_i32_0 = arith.constant 0 : i32
    %c0_i32_1 = arith.constant 0 : i32
    return %c0_i32, %c0_i32_0 : i32, i32
  }
  func.func @transform_5(%arg0: i32) -> (i32, i32) {
    %c0_i32 = arith.constant 0 : i32
    %c0_i32_0 = arith.constant 0 : i32
    %c0_i32_1 = arith.constant 0 : i32
    return %c0_i32, %c0_i32_0 : i32, i32
  }
  func.func @transform_6(%arg0: i32) -> (i32, i32) {
    %c0_i32 = arith.constant 0 : i32
    %c0_i32_0 = arith.constant 0 : i32
    %c0_i32_1 = arith.constant 0 : i32
    return %c0_i32, %c0_i32_0 : i32, i32
  }
  func.func @transform_7(%arg0: i32) -> (i32, i32) {
    %c0_i32 = arith.constant 0 : i32
    %c0_i32_0 = arith.constant 0 : i32
    %c0_i32_1 = arith.constant 0 : i32
    return %c0_i32, %c0_i32_0 : i32, i32
  }
  func.func @transform_8(%arg0: i32) -> (i32, i32) {
    %c0_i32 = arith.constant 0 : i32
    %c0_i32_0 = arith.constant 0 : i32
    %c0_i32_1 = arith.constant 0 : i32
    return %c0_i32, %c0_i32_0 : i32, i32
  }
  func.func @transform_9(%arg0: i32) -> (i32, i32) {
    %c0_i32 = arith.constant 0 : i32
    %c0_i32_0 = arith.constant 0 : i32
    %c0_i32_1 = arith.constant 0 : i32
    return %c0_i32, %c0_i32_0 : i32, i32
  }
  func.func @transform_10(%arg0: i32) -> (i32, i32) {
    %c0_i32 = arith.constant 0 : i32
    %c0_i32_0 = arith.constant 0 : i32
    %c0_i32_1 = arith.constant 0 : i32
    return %c0_i32, %c0_i32_0 : i32, i32
  }
  func.func @transform_11(%arg0: i32) -> (i32, i32) {
    %c0_i32 = arith.constant 0 : i32
    %c0_i32_0 = arith.constant 0 : i32
    %c0_i32_1 = arith.constant 0 : i32
    return %c0_i32, %c0_i32_0 : i32, i32
  }
  func.func @transform_12(%arg0: i32) -> (i32, i32) {
    %c0_i32 = arith.constant 0 : i32
    %c0_i32_0 = arith.constant 0 : i32
    %c0_i32_1 = arith.constant 0 : i32
    return %c0_i32, %c0_i32_0 : i32, i32
  }
  func.func @transform_13(%arg0: i32) -> (i32, i32) {
    %c0_i32 = arith.constant 0 : i32
    %c0_i32_0 = arith.constant 0 : i32
    %c0_i32_1 = arith.constant 0 : i32
    return %c0_i32, %c0_i32_0 : i32, i32
  }
  func.func @transform_14(%arg0: i32) -> (i32, i32) {
    %c0_i32 = arith.constant 0 : i32
    %c0_i32_0 = arith.constant 0 : i32
    %c0_i32_1 = arith.constant 0 : i32
    return %c0_i32, %c0_i32_0 : i32, i32
  }
  func.func @transform_15(%arg0: i32) -> (i32, i32) {
    %c0_i32 = arith.constant 0 : i32
    %c0_i32_0 = arith.constant 0 : i32
    %c0_i32_1 = arith.constant 0 : i32
    return %c0_i32, %c0_i32_0 : i32, i32
  }
  func.func @transform_16(%arg0: i32) -> (i32, i32) {
    %c0_i32 = arith.constant 0 : i32
    %c0_i32_0 = arith.constant 0 : i32
    %c0_i32_1 = arith.constant 0 : i32
    return %c0_i32, %c0_i32_0 : i32, i32
  }
  func.func @transform_17(%arg0: i32) -> (i32, i32) {
    %c0_i32 = arith.constant 0 : i32
    %c0_i32_0 = arith.constant 0 : i32
    %c0_i32_1 = arith.constant 0 : i32
    return %c0_i32, %c0_i32_0 : i32, i32
  }
  func.func @transform_18(%arg0: i32) -> (i32, i32) {
    %c0_i32 = arith.constant 0 : i32
    %c0_i32_0 = arith.constant 0 : i32
    %c0_i32_1 = arith.constant 0 : i32
    return %c0_i32, %c0_i32_0 : i32, i32
  }
  func.func @transform_19(%arg0: i32) -> (i32, i32, i32) {
    %c0_i32 = arith.constant 0 : i32
    %c0_i32_0 = arith.constant 0 : i32
    %c0_i32_1 = arith.constant 0 : i32
    return %arg0, %c0_i32, %c0_i32_0 : i32, i32, i32
  }
}

</mosaic_0001>

<bundles_post_ra>
// kernel: network_forward.1
= control target key start
LH: loop header
LB: loop body
LE: loop exit
PB: predicated region body
PF: predicated region fallthrough
CT: control target
= control target key end

     0   :  { %s9076_s0 = inlined_call_operand.vmem [shape: f32[2,8,8,128], index: 0, kind: input, shape index: {}]   ;;  %s9077_s1 = inlined_call_operand.vmem [shape: bf16[1152,64], index: 1, kind: input, shape index: {}]   ;;  %s9078_s2 = inlined_call_operand.vmem [shape: bf16[576,32], index: 2, kind: input, shape index: {}]   ;;  %s9079_s3 = inlined_call_operand.vmem [shape: bf16[288,16], index: 3, kind: input, shape index: {}]   ;;  %s9080_s4 = inlined_call_operand.vmem [shape: bf16[144,8], index: 4, kind: input, shape index: {}]   ;;  %s9081_s5 = inlined_call_operand.vmem [shape: bf16[72,4], index: 5, kind: input, shape index: {}]   ;;  %s9082_s6 = inlined_call_operand.vmem [shape: bf16[36,2], index: 6, kind: input, shape index: {}]   ;;  %s9083_s7 = inlined_call_operand.vmem [shape: bf16[18,1], index: 7, kind: input, shape index: {}]   ;;  %s9084_s8 = inlined_call_operand.vmem [shape: f32[1,64], index: 8, kind: input, shape index: {}]   ;;  %s9085_s9 = inlined_call_operand.vmem [shape: f32[1,32], index: 9, kind: input, shape index: {}]   ;;  %s9086_s10 = inlined_call_operand.vmem [shape: f32[1,16], index: 10, kind: input, shape index: {}]   ;;  %s9087_s11 = inlined_call_operand.vmem [shape: f32[1,8], index: 11, kind: input, shape index: {}]   ;;  %s9088_s12 = inlined_call_operand.vmem [shape: f32[1,4], index: 12, kind: input, shape index: {}]   ;;  %s9089_s13 = inlined_call_operand.vmem [shape: f32[1,2], index: 13, kind: input, shape index: {}]   ;;  %s9090_s14 = inlined_call_operand.<no memory space> [shape: f32[1,1], index: 14, kind: input, shape index: {}]   ;;  %s9091_s15 = inlined_call_operand.vmem [shape: f32[64,128], index: 15, kind: input, shape index: {}]   ;;  %s9092_s16 = inlined_call_operand.vmem [shape: f32[1,64], index: 16, kind: input, shape index: {}]   ;;  %s9093_s17 = inlined_call_operand.vmem [shape: f32[128,1], index: 17, kind: input, shape index: {}]   ;;  %s9094_s19 = inlined_call_operand.vmem [shape: f32[2,1,1], index: 19, kind: output, shape index: {}]   ;;  %s9095_s18 = inlined_call_operand.<no memory space> [shape: f32[1,1], index: 18, kind: input, shape index: {}]  }
   0x1   :  { %9101 = sst [smem:[#allocation12_spill]] %s9076_s0  ;;  %v24_v0 = vstv %s9090_s14  ;;  %v26_v1 = vstv %s9095_s18 }
   0x2   :  { %9102 = sst [smem:[#allocation13_spill]] %s9077_s1  ;;  %25 = vst [vmem:[#allocation10] sm:$0x1] %v24_v0  ;;  %27 = vst [vmem:[#allocation11] sm:$0x1] %v26_v1  ;;  %s6978_s1 = smov 0  }
   0x3   :  { %9103 = sst [smem:[#allocation14_spill]] %s9078_s2 }
   0x4   :  { %9104 = sst [smem:[#allocation15_spill]] %s9079_s3 }
   0x5 LB: > { %s5913_s22 = sadd.s32 4294967295, %s6847_s1   ;;  %p5917_p0 = scmp.ge.s32.totalorder %s6847_s1, 1  ;;  %s6847_s1 = sphi %s6978_s1, %s33_s1  }
   0x6   : > { %p541_p1 = scmp.lt.s32.totalorder %s6847_s1, 3 }
   0x8   : > { %p542_p2 = pnand %p5917_p0, %p541_p1 }
   0x9   : > { %s9105_s18 = sld [smem:[#allocation13_spill]] (!%p542_p2)  ;;  %v6849_v5 = vmov (!%p542_p2), 0.0   ;;  %vm624_vm0 = vcmask (!%p542_p2), 523264   ;;  %vm626_vm1 = vcmask (!%p542_p2), 517120   ;;  %p595_p3 = scmp.lt.s32.totalorder (!%p542_p2), %s5913_s22, 1  ;;  %vm1999_vm2 = vcmask (!%p542_p2), 1048064  }
   0xa   : > { %545 = sbr.rel (%p542_p2) target bundleno = 3425 (0xd61), region = 96  ;;  %604 = vst [vmem:[#allocation2] sm:$0xff] (!%p542_p2), %v6849_v5  ;;  %605 = vst [vmem:[#allocation2 + $0x8] sm:$0x3] (!%p542_p2), %v6849_v5  ;;  %s9106_s3 = sld [smem:[#allocation12_spill]] (!%p542_p2)  ;;  %vm646_vm3 = vcmask (!%p542_p2), 261120  }
   0xb   : > { %606 = vst [vmem:[#allocation2 + $0x10] sm:$0xff] (!%p542_p2), %v6849_v5  ;;  %607 = vst [vmem:[#allocation2 + $0x18] sm:$0x3] (!%p542_p2), %v6849_v5  ;;  %s6850_s21 = smov (!%p542_p2), 64   ;;  %s9107_s24 = sld [smem:[#allocation14_spill]] (!%p542_p2)  ;;  %vm648_vm4 = vcmask (!%p542_p2), 254976  }
   0xc   : > { %608 = vst [vmem:[#allocation2 + $0x20] sm:$0xff] (!%p542_p2), %v6849_v5  ;;  %609 = vst [vmem:[#allocation2 + $0x28] sm:$0x3] (!%p542_p2), %v6849_v5  ;;  %s6851_s2 = smov (!%p542_p2), 32   ;;  %s9099_s23 = smov (!%p542_p2), 96   ;;  %vm2844_vm5 = vcmask (!%p542_p2), 523520  }
   0xd   : > { %610 = vst [vmem:[#allocation2 + $0x30] sm:$0xff] (!%p542_p2), %v6849_v5  ;;  %611 = vst [vmem:[#allocation2 + $0x38] sm:$0x3] (!%p542_p2), %v6849_v5  ;;  %vm2893_vm6 = vcmask (!%p542_p2), 785920   ;;  %s9108_s29 = sld [smem:[#allocation15_spill]] (!%p542_p2)  ;;  %vm668_vm7 = vcmask (!%p542_p2), 130048  }
   0xe   : > { %612 = vst [vmem:[#allocation2 + $0x40] sm:$0xff] (!%p542_p2), %v6849_v5  ;;  %613 = vst [vmem:[#allocation2 + $0x48] sm:$0x3] (!%p542_p2), %v6849_v5  ;;  %vm670_vm8 = vcmask (!%p542_p2), 123904   ;;  %vm2942_vm9 = vcmask (!%p542_p2), 1048320   ;;  %s6853_s27 = smov (!%p542_p2), 16  }
   0xf   : > { %v6692_v2 = vld [vmem:[%s9105_s18 + $0x40] sm:$0xff] (!%p542_p2)   ;;  %614 = vst [vmem:[#allocation2 + $0x50] sm:$0xff] (!%p542_p2), %v6849_v5  ;;  %615 = vst [vmem:[#allocation2 + $0x58] sm:$0x3] (!%p542_p2), %v6849_v5  ;;  %v6696_v7 = vld [vmem:[%s9105_s18 + $0x48] sm:$0xff] (!%p542_p2)   ;;  %vm3522_vm10 = vcmask (!%p542_p2), 261248  }
  0x10   : > { %v6693_v3 = vld [vmem:[%s9105_s18] sm:$0xff] (!%p542_p2)   ;;  %6100 = vmatprep.subr.bf16.mxu0 (!%p542_p2), %v6692_v2  ;;  %616 = vst [vmem:[#allocation2 + $0x60] sm:$0xff] (!%p542_p2), %v6849_v5  ;;  %617 = vst [vmem:[#allocation2 + $0x68] sm:$0x3] (!%p542_p2), %v6849_v5  ;;  %v6697_v8 = vld [vmem:[%s9105_s18 + $0x8] sm:$0xff] (!%p542_p2)   ;;  %vm3571_vm11 = vcmask (!%p542_p2), 392448  }
  0x11   : > { %v6694_v4 = vld [vmem:[%s9105_s18 + $0xc0] sm:$0xff]   ;;  %618 = vst [vmem:[#allocation2 + $0x70] sm:$0xff] %v6849_v5  ;;  %619 = vst [vmem:[#allocation2 + $0x78] sm:$0x3] %v6849_v5  ;;  %6101 = vmatpush3.bf16.msra.mxu0 %v6693_v3  ;;  %v6698_v9 = vld [vmem:[%s9105_s18 + $0xc8] sm:$0xff]   ;;  %s9111_s22 = smov (!%p595_p3, %s5913_s22), 1 }
  0x12   : > { %620 = vst [vmem:[#allocation2 + $0x80] sm:$0xff] %v6849_v5  ;;  %621 = vst [vmem:[#allocation2 + $0x88] sm:$0x3] %v6849_v5  ;;  %v6695_v6 = vld [vmem:[%s9105_s18 + $0x80] sm:$0xff]   ;;  %6140 = vmatprep.subr.bf16.mxu1 %v6694_v4  ;;  %6102 = vmatprep.subr.bf16.mxu0 %v6696_v7  ;;  %v6699_v10 = vld [vmem:[%s9105_s18 + $0x88] sm:$0xff]   ;;  %s6099_s0 = sshll.u32 %s9111_s22, 6 }
  0x13   : > { %622 = vst [vmem:[#allocation2 + $0x90] sm:$0xff] %v6849_v5  ;;  %623 = vst [vmem:[#allocation2 + $0x98] sm:$0x3] %v6849_v5  ;;  %6141 = vmatpush3.bf16.msra.mxu1 %v6695_v6  ;;  %v6700_v11 = vld [vmem:[%s9105_s18 + $0x50] sm:$0xff]   ;;  %v6704_v15 = vld [vmem:[%s9105_s18 + $0x58] sm:$0xff]   ;;  %s7134_s26 = scalar_lea.vmem %s9106_s3, %s6099_s0  ;;  %s6854_s0 = smov 48  }
  0x14   : > { %781 = vst [vmem:[#allocation9] sm:$0xff] %v6849_v5  ;;  %644 = vst.msk [vmem:[#allocation3 + $0x90] sm:$0xff] %vm624_vm0, %v6849_v5  ;;  %6142 = vmatprep.subr.bf16.mxu1 %v6698_v9  ;;  %v6701_v12 = vld [vmem:[%s9105_s18 + $0x10] sm:$0xff]   ;;  %v6705_v16 = vld [vmem:[%s9105_s18 + $0x18] sm:$0xff]   ;;  %s6855_s20 = smov 112   ;;  %s9109_s14 = smov 96  }
  0x15   : > { %625 = vst.msk [vmem:[#allocation3] sm:$0xff] %vm624_vm0, %v6849_v5  ;;  %628 = vst.msk [vmem:[#allocation3 + $0x10] sm:$0xff] %vm624_vm0, %v6849_v5  ;;  %6103 = vmatpush3.bf16.msra.mxu0 %v6697_v8  ;;  %v6702_v13 = vld [vmem:[%s9105_s18 + $0xd0] sm:$0xff]   ;;  %v6706_v17 = vld [vmem:[%s9105_s18 + $0xd8] sm:$0xff]   ;;  %vm690_vm12 = vcmask 64512   ;;  %vm692_vm13 = vcmask 58368  }
  0x16   : > { %630 = vst.msk [vmem:[#allocation3 + $0x20] sm:$0xff] %vm624_vm0, %v6849_v5  ;;  %632 = vst.msk [vmem:[#allocation3 + $0x30] sm:$0xff] %vm624_vm0, %v6849_v5  ;;  %6104 = vmatprep.subr.bf16.mxu0 %v6700_v11  ;;  %v6703_v14 = vld [vmem:[%s9105_s18 + $0x90] sm:$0xff]   ;;  %v6707_v18 = vld [vmem:[%s9105_s18 + $0x98] sm:$0xff]   ;;  %vm3620_vm14 = vcmask 523648   ;;  %vm3669_vm15 = vcmask 654848  }
  0x17   : > { %634 = vst.msk [vmem:[#allocation3 + $0x40] sm:$0xff] %vm624_vm0, %v6849_v5  ;;  %636 = vst.msk [vmem:[#allocation3 + $0x50] sm:$0xff] %vm624_vm0, %v6849_v5  ;;  %6143 = vmatpush3.bf16.msra.mxu1 %v6699_v10  ;;  %v6708_v19 = vld [vmem:[%s9105_s18 + $0x60] sm:$0xff]   ;;  %v6712_v23 = vld [vmem:[%s9105_s18 + $0x68] sm:$0xff]   ;;  %s6860_s30 = smov 24   ;;  %s6864_s3 = smov 12  }
  0x18   : > { %638 = vst.msk [vmem:[#allocation3 + $0x60] sm:$0xff] %vm624_vm0, %v6849_v5  ;;  %640 = vst.msk [vmem:[#allocation3 + $0x70] sm:$0xff] %vm624_vm0, %v6849_v5  ;;  %6144 = vmatprep.subr.bf16.mxu1 %v6702_v13  ;;  %v6709_v20 = vld [vmem:[%s9105_s18 + $0x20] sm:$0xff]   ;;  %v6713_v24 = vld [vmem:[%s9105_s18 + $0x28] sm:$0xff]   ;;  %s6865_s28 = smov 20  }
  0x19   : > { %642 = vst.msk [vmem:[#allocation3 + $0x80] sm:$0xff] %vm624_vm0, %v6849_v5  ;;  %6105 = vmatpush3.bf16.msra.mxu0 %v6701_v12  ;;  %v6710_v21 = vld [vmem:[%s9105_s18 + $0xe0] sm:$0xff]   ;;  %v6714_v25 = vld [vmem:[%s9105_s18 + $0xe8] sm:$0xff]   ;;  %v6716_v27 = vld [vmem:[%s9105_s18 + $0x70] sm:$0xff]  }
  0x1a   : > { %645 = vst.msk [vmem:[#allocation3 + $0x98] sm:$0x3] %vm626_vm1, %v6849_v5  ;;  %627 = vst.msk [vmem:[#allocation3 + $0x8] sm:$0x3] %vm626_vm1, %v6849_v5  ;;  %6106 = vmatprep.subr.bf16.mxu0 %v6704_v15  ;;  %v6711_v22 = vld [vmem:[%s9105_s18 + $0xa0] sm:$0xff]   ;;  %v6715_v26 = vld [vmem:[%s9105_s18 + $0xa8] sm:$0xff]  }
  0x1b   : > { %629 = vst.msk [vmem:[#allocation3 + $0x18] sm:$0x3] %vm626_vm1, %v6849_v5  ;;  %631 = vst.msk [vmem:[#allocation3 + $0x28] sm:$0x3] %vm626_vm1, %v6849_v5  ;;  %6145 = vmatpush3.bf16.msra.mxu1 %v6703_v14  ;;  %v6717_v28 = vld [vmem:[%s9105_s18 + $0x30] sm:$0xff]   ;;  %v6720_v31 = vld [vmem:[%s9105_s18 + $0x78] sm:$0xff]  }
  0x1c   : > { %633 = vst.msk [vmem:[#allocation3 + $0x38] sm:$0x3] %vm626_vm1, %v6849_v5  ;;  %635 = vst.msk [vmem:[#allocation3 + $0x48] sm:$0x3] %vm626_vm1, %v6849_v5  ;;  %6146 = vmatprep.subr.bf16.mxu1 %v6706_v17  ;;  %v6718_v29 = vld [vmem:[%s9105_s18 + $0xf0] sm:$0xff]   ;;  %v6721_v32 = vld [vmem:[%s9105_s18 + $0x38] sm:$0xff]  }
  0x1d   : > { %637 = vst.msk [vmem:[#allocation3 + $0x58] sm:$0x3] %vm626_vm1, %v6849_v5  ;;  %639 = vst.msk [vmem:[#allocation3 + $0x68] sm:$0x3] %vm626_vm1, %v6849_v5  ;;  %6107 = vmatpush3.bf16.msra.mxu0 %v6705_v16  ;;  %v6719_v30 = vld [vmem:[%s9105_s18 + $0xb0] sm:$0xff]   ;;  %v6722_v33 = vld [vmem:[%s9105_s18 + $0xf8] sm:$0xff]  }
  0x1e   : > { %641 = vst.msk [vmem:[#allocation3 + $0x78] sm:$0x3] %vm626_vm1, %v6849_v5  ;;  %643 = vst.msk [vmem:[#allocation3 + $0x88] sm:$0x3] %vm626_vm1, %v6849_v5  ;;  %6108 = vmatprep.subr.bf16.mxu0 %v6708_v19  ;;  %v7143_v34 = vld [vmem:[%s7134_s26] sm:$0xff]  ;;  %v6723_v37 = vld [vmem:[%s9105_s18 + $0xb8] sm:$0xff]  }
  0x1f   : > { %6147 = vmatpush3.bf16.msra.mxu1 %v6707_v18  ;;  %v789_v35 = vld [vmem:[#allocation2 + $0x1] sm:$0xff]  ;;  %765 = vst [vmem:[#allocation2 + $0x11] sm:$0xff] %v7143_v34  ;;  %798 = vst [vmem:[#allocation9 + $0x50] sm:$0xff] %v7143_v34  ;;  %v7179_v50 = vld [vmem:[%s7134_s26 + $0x10] sm:$0xff]  ;;  %vm3718_vm1 = vcmask 786048  }
  0x20   : > { %6148 = vmatprep.subr.bf16.mxu1 %v6710_v21  ;;  %797 = vst [vmem:[#allocation9 + $0x8] sm:$0xff] %v789_v35  ;;  %v991_v36 = vpack.c.bf16 %v7143_v34, %v789_v35  ;;  %845 = vst [vmem:[#allocation9 + $0x20] sm:$0xff] %v7143_v34  ;;  %v6724_v38 = vld [vmem:[%s9105_s18 + $0x140] sm:$0xff]   ;;  %v7156_v39 = vld [vmem:[%s7134_s26 + $0x8] sm:$0xff] }
  0x21   : > { %6109 = vmatpush3.bf16.msra.mxu0 %v6709_v20  ;;  %766 = vst [vmem:[#allocation2 + $0x21] sm:$0xff] %v7156_v39  ;;  %799 = vst [vmem:[#allocation9 + $0x98] sm:$0xff] %v7156_v39  ;;  %v805_v40 = vld [vmem:[#allocation2 + $0x2] sm:$0xff]  ;;  %v7188_v53 = vpack.c.bf16 %v7179_v50, %v7156_v39  ;;  %v7195_v55 = vld [vmem:[%s7134_s26 + $0x18] sm:$0xff] }
  0x22   : > { %6110 = vmatprep.subr.bf16.mxu0 %v6712_v23  ;;  %1641 = vmatprep.mubr.bf16.mxu0 %v991_v36  ;;  %846 = vst [vmem:[#allocation9 + $0x68] sm:$0xff] %v7156_v39  ;;  %813 = vst [vmem:[#allocation9 + $0x10] sm:$0xff] %v805_v40  ;;  %v6726_v41 = vld [vmem:[%s9105_s18 + $0x1c0] sm:$0xff]   ;;  %v6728_v47 = vld [vmem:[%s9105_s18 + $0x148] sm:$0xff]  }
  0x23   : > { %6149 = vmatpush3.bf16.msra.mxu1 %v6711_v22  ;;  %v6725_v43 = vld [vmem:[%s9105_s18 + $0x100] sm:$0xff]   ;;  %v6729_v52 = vld [vmem:[%s9105_s18 + $0x108] sm:$0xff]   ;;  %767 = vst [vmem:[#allocation2 + $0x31] sm:$0xff] %v7179_v50  ;;  %800 = vst [vmem:[#allocation9 + $0xe0] sm:$0xff] %v7179_v50 }
  0x24   : > { %6150 = vmatprep.subr.bf16.mxu1 %v6714_v25  ;;  %v6727_v46 = vld [vmem:[%s9105_s18 + $0x180] sm:$0xff]   ;;  %847 = vst [vmem:[#allocation9 + $0xb0] sm:$0xff] %v7179_v50  ;;  %v6730_v54 = vld [vmem:[%s9105_s18 + $0x1c8] sm:$0xff]   ;;  %v6732_v57 = vld [vmem:[%s9105_s18 + $0x150] sm:$0xff]  }
  0x25   : > { %6111 = vmatpush3.bf16.msra.mxu0 %v6713_v24  ;;  %v6731_v56 = vld [vmem:[%s9105_s18 + $0x188] sm:$0xff]   ;;  %768 = vst [vmem:[#allocation2 + $0x41] sm:$0xff] %v7195_v55  ;;  %801 = vst [vmem:[#allocation9 + $0x128] sm:$0xff] %v7195_v55  ;;  %v6733_v59 = vld [vmem:[%s9105_s18 + $0x110] sm:$0xff]  }
  0x26   : > { %6112 = vmatprep.subr.bf16.mxu0 %v6716_v27  ;;  %v774_v42 = vld [vmem:[#allocation2 + $0x10] sm:$0xff]  ;;  %848 = vst [vmem:[#allocation9 + $0xf8] sm:$0xff] %v7195_v55  ;;  %v6736_v62 = vld [vmem:[%s9105_s18 + $0x158] sm:$0xff]   ;;  %v7238_v6 = vld [vmem:[%s7134_s26 + $0x20] sm:$0xff] }
  0x27   : > { %6151 = vmatpush3.bf16.msra.mxu1 %v6715_v26  ;;  %v7167_v44 = vld [vmem:[#allocation2 + $0x12] sm:$0xff]  ;;  %782 = vst [vmem:[#allocation9 + $0x48] sm:$0xff] %v774_v42  ;;  %v990_v45 = vpack.c.bf16 %v774_v42, %v6849_v5  ;;  %829 = vst [vmem:[#allocation9 + $0x18] sm:$0xff] %v774_v42  ;;  %v7245_v8 = vpack.c.bf16 %v7238_v6, %v7195_v55  ;;  %v6740_v10 = vld [vmem:[%s9105_s18 + $0x160] sm:$0xff]  }
  0x28   : > { %6152 = vmatprep.subr.bf16.mxu1 %v6718_v29  ;;  %814 = vst [vmem:[#allocation9 + $0x58] sm:$0xff] %v7167_v44  ;;  %v822_v48 = vld [vmem:[#allocation2 + $0x20] sm:$0xff]  ;;  %v992_v49 = vpack.c.bf16 %v7167_v44, %v805_v40  ;;  %v6734_v60 = vld [vmem:[%s9105_s18 + $0x1d0] sm:$0xff]   ;;  %v6737_v1 = vld [vmem:[%s9105_s18 + $0x118] sm:$0xff]  }
  0x29   : > { %6113 = vmatpush3.bf16.msra.mxu0 %v6717_v28  ;;  %830 = vst [vmem:[#allocation9 + $0x60] sm:$0xff] %v822_v48  ;;  %v993_v51 = vpack.c.bf16 %v822_v48, %v774_v42  ;;  %783 = vst [vmem:[#allocation9 + $0x90] sm:$0xff] %v822_v48  ;;  %v7207_v58 = vld [vmem:[#allocation2 + $0x22] sm:$0xff]  ;;  %v6735_v61 = vld [vmem:[%s9105_s18 + $0x190] sm:$0xff]  }
  0x2a   : > { %6114 = vmatprep.subr.bf16.mxu0 %v6720_v31  ;;  %815 = vst [vmem:[#allocation9 + $0xa0] sm:$0xff] %v7207_v58  ;;  %v776_v63 = vld [vmem:[#allocation2 + $0x30] sm:$0xff]  ;;  %v6738_v3 = vld [vmem:[%s9105_s18 + $0x1d8] sm:$0xff]   ;;  %769 = vst [vmem:[#allocation2 + $0x51] sm:$0xff] %v7238_v6  ;;  %v995_v40 = vpack.c.bf16 %v7207_v58, %v7167_v44 }
  0x2b   : > { %6153 = vmatpush3.bf16.msra.mxu1 %v6719_v30  ;;  %1706 = vmatprep.mubr.bf16.mxu1 %v993_v51  ;;  %v7222_v0 = vld [vmem:[#allocation2 + $0x32] sm:$0xff]  ;;  %784 = vst [vmem:[#allocation9 + $0xd8] sm:$0xff] %v776_v63  ;;  %v7227_v2 = vpack.c.bf16 %v776_v63, %v822_v48  ;;  %831 = vst [vmem:[#allocation9 + $0xa8] sm:$0xff] %v776_v63  ;;  %v7255_v11 = vld [vmem:[%s7134_s26 + $0x28] sm:$0xff]  ;;  %v994_v48 = vpack.c.bf16 %v7156_v39, %v7143_v34 }
  0x2c   : > { %6154 = vmatprep.subr.bf16.mxu1 %v6722_v33  ;;  %816 = vst [vmem:[#allocation9 + $0xe8] sm:$0xff] %v7222_v0  ;;  %v824_v4 = vld [vmem:[#allocation2 + $0x40] sm:$0xff]  ;;  %v7235_v5 = vpack.c.bf16 %v7222_v0, %v7207_v58  ;;  %802 = vst [vmem:[#allocation9 + $0x170] sm:$0xff] %v7238_v6  ;;  %v6739_v9 = vld [vmem:[%s9105_s18 + $0x198] sm:$0xff]  }
  0x2d   : > { %6115 = vmatpush3.bf16.msra.mxu0 %v6721_v32  ;;  %832 = vst [vmem:[#allocation9 + $0xf0] sm:$0xff] %v824_v4  ;;  %v1002_v7 = vpack.c.bf16 %v824_v4, %v776_v63  ;;  %785 = vst [vmem:[#allocation9 + $0x120] sm:$0xff] %v824_v4  ;;  %v6741_v12 = vld [vmem:[%s9105_s18 + $0x120] sm:$0xff]   ;;  %v6744_v16 = vld [vmem:[%s9105_s18 + $0x168] sm:$0xff]  }
  0x2e   : > { %6180 = vmatprep.subr.bf16.mxu0 %v6724_v38  ;;  %849 = vst [vmem:[#allocation9 + $0x140] sm:$0xff] %v7238_v6  ;;  %770 = vst [vmem:[#allocation2 + $0x61] sm:$0xff] %v7255_v11  ;;  %v7264_v13 = vld [vmem:[#allocation2 + $0x42] sm:$0xff]  ;;  %v7293_v24 = vld [vmem:[%s7134_s26 + $0x30] sm:$0xff] }
  0x2f   : > { %6155 = vmatpush3.bf16.msra.mxu1 %v6723_v37  ;;  %803 = vst [vmem:[#allocation9 + $0x1b8] sm:$0xff] %v7255_v11  ;;  %850 = vst [vmem:[#allocation9 + $0x188] sm:$0xff] %v7255_v11  ;;  %v6742_v14 = vld [vmem:[%s9105_s18 + $0x1e0] sm:$0xff]   ;;  %v6745_v19 = vld [vmem:[%s9105_s18 + $0x128] sm:$0xff]   ;;  %v7300_v26 = vpack.c.bf16 %v7293_v24, %v7255_v11 }
  0x30   : > { %6220 = vmatprep.subr.bf16.mxu1 %v6726_v41  ;;  %1642 = vmatmul.mubr.bf16.vlgmr.msra.gmra.mrb[0].mxu0 %v990_v45  ;;  %817 = vst [vmem:[#allocation9 + $0x130] sm:$0xff] %v7264_v13  ;;  %v6743_v15 = vld [vmem:[%s9105_s18 + $0x1a0] sm:$0xff]   ;;  %v6746_v21 = vld [vmem:[%s9105_s18 + $0x1e8] sm:$0xff]   ;;  %771 = vst [vmem:[#allocation2 + $0x71] sm:$0xff] %v7293_v24 }
  0x31   : > { %6181 = vmatpush3.bf16.msra.mxu0 %v6725_v43  ;;  %1649 = vmatprep.mubr.bf16.mxu0 %v7188_v53  ;;  %v778_v17 = vld [vmem:[#allocation2 + $0x50] sm:$0xff]  ;;  %804 = vst [vmem:[#allocation9 + $0x200] sm:$0xff] %v7293_v24  ;;  %v6747_v27 = vld [vmem:[%s9105_s18 + $0x1a8] sm:$0xff]   ;;  %851 = vst [vmem:[#allocation9 + $0x1d0] sm:$0xff] %v7293_v24 }
  0x32   : > { %6182 = vmatprep.subr.bf16.mxu0 %v6728_v47  ;;  %1707 = vmatmul.mubr.bf16.vlgmr.msra.gmra.mrb[0].mxu1 %v992_v49  ;;  %v7277_v18 = vld [vmem:[#allocation2 + $0x52] sm:$0xff]  ;;  %786 = vst [vmem:[#allocation9 + $0x168] sm:$0xff] %v778_v17  ;;  %v7282_v20 = vpack.c.bf16 %v778_v17, %v824_v4  ;;  %833 = vst [vmem:[#allocation9 + $0x138] sm:$0xff] %v778_v17  ;;  %v6756_v47 = vld [vmem:[%s9105_s18 + $0x200] sm:$0xff]   ;;  %v1004_v49 = vpack.c.bf16 %v7264_v13, %v7222_v0 }
  0x33   : > { %6221 = vmatpush3.bf16.msra.mxu1 %v6727_v46  ;;  %1714 = vmatprep.mubr.bf16.mxu1 %v1002_v7  ;;  %818 = vst [vmem:[#allocation9 + $0x178] sm:$0xff] %v7277_v18  ;;  %v7290_v23 = vpack.c.bf16 %v7277_v18, %v7264_v13  ;;  %v6748_v28 = vld [vmem:[%s9105_s18 + $0x170] sm:$0xff]   ;;  %v7310_v29 = vld [vmem:[%s7134_s26 + $0x38] sm:$0xff]  ;;  %v6757_v51 = vld [vmem:[%s9105_s18 + $0x208] sm:$0xff]   ;;  %s6856_s26 = smov 80  }
  0x34   : > { %6222 = vmatprep.subr.bf16.mxu1 %v6730_v54  ;;  %772 = vst [vmem:[#allocation2 + $0x81] sm:$0xff] %v7310_v29  ;;  %v6749_v30 = vld [vmem:[%s9105_s18 + $0x130] sm:$0xff]   ;;  %852 = vst [vmem:[#allocation9 + $0x218] sm:$0xff] %v7310_v29  ;;  %v6752_v35 = vld [vmem:[%s9105_s18 + $0x178] sm:$0xff]   ;;  %v1021_v63 = vpack.c.bf16 %v7310_v29, %v7293_v24 }
  0x35   : > { %6183 = vmatpush3.bf16.msra.mxu0 %v6729_v52  ;;  %v826_v22 = vld [vmem:[#allocation2 + $0x60] sm:$0xff]  ;;  %v6750_v32 = vld [vmem:[%s9105_s18 + $0x1f0] sm:$0xff]   ;;  %v6753_v38 = vld [vmem:[%s9105_s18 + $0x138] sm:$0xff]  }
  0x36   : > { %6184 = vmatprep.subr.bf16.mxu0 %v6732_v57  ;;  %834 = vst [vmem:[#allocation9 + $0x180] sm:$0xff] %v826_v22  ;;  %v1011_v25 = vpack.c.bf16 %v826_v22, %v778_v17  ;;  %787 = vst [vmem:[#allocation9 + $0x1b0] sm:$0xff] %v826_v22  ;;  %v811_v31 = vld [vmem:[#allocation2 + $0x62] sm:$0xff]  ;;  %v6751_v33 = vld [vmem:[%s9105_s18 + $0x1b0] sm:$0xff]  }
  0x37   : > { %6223 = vmatpush3.bf16.msra.mxu1 %v6731_v56  ;;  %819 = vst [vmem:[#allocation9 + $0x1c0] sm:$0xff] %v811_v31  ;;  %v780_v36 = vld [vmem:[#allocation2 + $0x70] sm:$0xff]  ;;  %v6754_v42 = vld [vmem:[%s9105_s18 + $0x1f8] sm:$0xff]   ;;  %v1013_v58 = vpack.c.bf16 %v811_v31, %v7277_v18  ;;  %v1959_v4 = vld [vmem:[#allocation3 + $0x1] sm:$0xff] }
  0x38   : > { %6224 = vmatprep.subr.bf16.mxu1 %v6734_v60  ;;  %1650 = vmatmul.mubr.bf16.gmra.mrb[4].mxu0 %v7227_v2  ;;  %v812_v37 = vld [vmem:[#allocation2 + $0x72] sm:$0xff]  ;;  %788 = vst [vmem:[#allocation9 + $0x1f8] sm:$0xff] %v780_v36  ;;  %v1017_v41 = vpack.c.bf16 %v780_v36, %v826_v22  ;;  %835 = vst [vmem:[#allocation9 + $0x1c8] sm:$0xff] %v780_v36  ;;  %v5920_v7 = vld [vmem:[%s9084_s8] ss:$0 sm:$0xff] }
  0x39   : > { %6185 = vmatpush3.bf16.msra.mxu0 %v6733_v59  ;;  %1657 = vmatprep.mubr.bf16.mxu0 %v7245_v8  ;;  %820 = vst [vmem:[#allocation9 + $0x208] sm:$0xff] %v812_v37  ;;  %v7338_v45 = vpack.c.bf16 %v812_v37, %v811_v31  ;;  %v6755_v46 = vld [vmem:[%s9105_s18 + $0x1b8] sm:$0xff]   ;;  %v6758_v34 = vld [vmem:[%s9105_s18 + $0x210] sm:$0xff]   ;;  %v6760_v59 = vld [vmem:[%s9105_s18 + $0x220] sm:$0xff]  }
  0x3a   : > { %6186 = vmatprep.subr.bf16.mxu0 %v6736_v62  ;;  %1715 = vmatmul.mubr.bf16.gmra.mrb[4].mxu1 %v7235_v5  ;;  %v2208_v54 = vld [vmem:[#allocation3 + $0x92] sm:$0xff] }
  0x3b   : > { %6225 = vmatpush3.bf16.msra.mxu1 %v6735_v61  ;;  %1722 = vmatprep.mubr.bf16.mxu1 %v1011_v25  ;;  %v7336_v43 = vld [vmem:[#allocation2 + $0x80] sm:$0xff]  ;;  %2216 = vst.msk [vmem:[#allocation9 + $0x218] sm:$0xff] %vm624_vm0, %v2208_v54  ;;  %v893_v56 = vld [vmem:[#allocation2 + $0x91] sm:$0xff] }
  0x3c   : > { %6226 = vmatprep.subr.bf16.mxu1 %v6738_v3  ;;  %836 = vst [vmem:[#allocation9 + $0x210] sm:$0xff] %v7336_v43  ;;  %v1020_v44 = vpack.c.bf16 %v7336_v43, %v780_v36  ;;  %v860_v52 = vld [vmem:[#allocation2 + $0x82] sm:$0xff]  ;;  %v909_v39 = vld [vmem:[#allocation2 + $0x92] sm:$0xff]  ;;  %v1024_v62 = vpack.c.bf16 %v893_v56, %v7310_v29  ;;  %1975 = vrot.lane.b32.xlu1 %v1959_v4, %s6850_s21 }
  0x3d   : > { %6187 = vmatpush3.bf16.msra.mxu0 %v6737_v1  ;;  %v6759_v57 = vld [vmem:[%s9105_s18 + $0x218] sm:$0xff]   ;;  %v1022_v60 = vpack.c.bf16 %v860_v52, %v812_v37  ;;  %v6762_v61 = vld [vmem:[%s9105_s18 + $0x230] sm:$0xff]   ;;  %v7388_v1 = vld [vmem:[#allocation2] sm:$0xff]  ;;  %v1025_v3 = vpack.c.bf16 %v909_v39, %v860_v52 }
  0x3e   : > { %6188 = vmatprep.subr.bf16.mxu0 %v6740_v10  ;;  %v6763_v0 = vld [vmem:[%s9105_s18 + $0x238] sm:$0xff]   ;;  %666 = vst.msk [vmem:[#allocation4 + $0x90] sm:$0xff] %vm646_vm3, %v7388_v1  ;;  %647 = vst.msk [vmem:[#allocation4] sm:$0xff] %vm646_vm3, %v7388_v1 }
  0x3f   : > { %6227 = vmatpush3.bf16.msra.mxu1 %v6739_v9  ;;  %667 = vst.msk [vmem:[#allocation4 + $0x98] sm:$0x3] %vm648_vm4, %v7388_v1  ;;  %649 = vst.msk [vmem:[#allocation4 + $0x8] sm:$0x3] %vm648_vm4, %v7388_v1 }
  0x40   : > { %6228 = vmatprep.subr.bf16.mxu1 %v6742_v14  ;;  %1658 = vmatmul.mubr.bf16.gmra.mrb[8].mxu0 %v7282_v20  ;;  %650 = vst.msk [vmem:[#allocation4 + $0x10] sm:$0xff] %vm646_vm3, %v7388_v1  ;;  %652 = vst.msk [vmem:[#allocation4 + $0x20] sm:$0xff] %vm646_vm3, %v7388_v1 }
  0x41   : > { %6189 = vmatpush3.bf16.msra.mxu0 %v6741_v12  ;;  %1665 = vmatprep.mubr.bf16.mxu0 %v7300_v26  ;;  %651 = vst.msk [vmem:[#allocation4 + $0x18] sm:$0x3] %vm648_vm4, %v7388_v1  ;;  %653 = vst.msk [vmem:[#allocation4 + $0x28] sm:$0x3] %vm648_vm4, %v7388_v1 }
  0x42   : > { %6190 = vmatprep.subr.bf16.mxu0 %v6744_v16  ;;  %1723 = vmatmul.mubr.bf16.gmra.mrb[8].mxu1 %v7290_v23  ;;  %654 = vst.msk [vmem:[#allocation4 + $0x30] sm:$0xff] %vm646_vm3, %v7388_v1  ;;  %656 = vst.msk [vmem:[#allocation4 + $0x40] sm:$0xff] %vm646_vm3, %v7388_v1 }
  0x43   : > { %6229 = vmatpush3.bf16.msra.mxu1 %v6743_v15  ;;  %1730 = vmatprep.mubr.bf16.mxu1 %v1020_v44  ;;  %655 = vst.msk [vmem:[#allocation4 + $0x38] sm:$0x3] %vm648_vm4, %v7388_v1  ;;  %657 = vst.msk [vmem:[#allocation4 + $0x48] sm:$0x3] %vm648_vm4, %v7388_v1 }
  0x44   : > { %6230 = vmatprep.subr.bf16.mxu1 %v6746_v21  ;;  %658 = vst.msk [vmem:[#allocation4 + $0x50] sm:$0xff] %vm646_vm3, %v7388_v1  ;;  %660 = vst.msk [vmem:[#allocation4 + $0x60] sm:$0xff] %vm646_vm3, %v7388_v1 }
  0x45   : > { %6191 = vmatpush3.bf16.msra.mxu0 %v6745_v19  ;;  %659 = vst.msk [vmem:[#allocation4 + $0x58] sm:$0x3] %vm648_vm4, %v7388_v1  ;;  %661 = vst.msk [vmem:[#allocation4 + $0x68] sm:$0x3] %vm648_vm4, %v7388_v1 }
  0x46   : > { %6192 = vmatprep.subr.bf16.mxu0 %v6748_v28  ;;  %v1943_v28 = vld [vmem:[#allocation3] sm:$0xff]  ;;  %662 = vst.msk [vmem:[#allocation4 + $0x70] sm:$0xff] %vm646_vm3, %v7388_v1  ;;  %664 = vst.msk [vmem:[#allocation4 + $0x80] sm:$0xff] %vm646_vm3, %v7388_v1 }
  0x47   : > { %6231 = vmatpush3.bf16.msra.mxu1 %v6747_v27  ;;  %1951 = vst.msk [vmem:[#allocation9] sm:$0xff] %vm624_vm0, %v1943_v28 }
  0x48   : > { %6232 = vmatprep.subr.bf16.mxu1 %v6750_v32  ;;  %1666 = vmatmul.mubr.bf16.gmra.mrb[12].mxu0 %v1017_v41  ;;  %663 = vst.msk [vmem:[#allocation4 + $0x78] sm:$0x3] %vm648_vm4, %v7388_v1  ;;  %665 = vst.msk [vmem:[#allocation4 + $0x88] sm:$0x3] %vm648_vm4, %v7388_v1  ;;  %vm4087_vm4 = vcmask 130112  }
  0x49   : > { %6193 = vmatpush3.bf16.msra.mxu0 %v6749_v30  ;;  %1771 = vmatprep.mubr.bf16.mxu0 %v995_v40 }
  0x4a   : > { %6194 = vmatprep.subr.bf16.mxu0 %v6752_v35  ;;  %1731 = vmatmul.mubr.bf16.gmra.mrb[12].mxu1 %v7338_v45 }
  0x4b   : > { %6233 = vmatpush3.bf16.msra.mxu1 %v6751_v33  ;;  %1836 = vmatprep.mubr.bf16.mxu1 %v7188_v53  ;;  %v1003_v53 = vpack.c.bf16 %v7195_v55, %v7179_v50  ;;  %v1012_v50 = vpack.c.bf16 %v7255_v11, %v7238_v6  ;;  %v6761_v55 = vld [vmem:[%s9105_s18 + $0x228] sm:$0xff]  }
  0x4c   : > { %6234 = vmatprep.subr.bf16.mxu1 %v6754_v42 }
  0x4d   : > { %6195 = vmatpush3.bf16.msra.mxu0 %v6753_v38 }
  0x4e   : > { %6454 = vmatprep.subr.bf16.mxu0 %v6756_v47 }
  0x4f   : > { %6235 = vmatpush3.bf16.msra.mxu1 %v6755_v46 }
  0x50   : > { %1772 = vmatmul.mubr.bf16.vlgmr.msra.gmra.mrb[16].mxu0 %v994_v48 }
  0x51   : > { %6455 = vmatpush3.bf16.msra.mxu0 %v6756_v47  ;;  %1779 = vmatprep.mubr.bf16.mxu0 %v1004_v49 }
  0x52   : > { %6456 = vmatprep.subr.bf16.mxu0 %v6757_v51  ;;  %1837 = vmatmul.mubr.bf16.vlgmr.msra.gmra.mrb[16].mxu1 %v7227_v2  ;;  %v1023_v2 = vpack.c.bf16 %v7388_v1, %v7336_v43 }
  0x53   : > { %1844 = vmatprep.mubr.bf16.mxu1 %v7245_v8 }
  0x55   : > { %6457 = vmatpush3.bf16.msra.mxu0 %v6757_v51 }
  0x56   : > { %6458 = vmatprep.subr.bf16.mxu0 %v6758_v34 }
  0x58   : > { %1780 = vmatmul.mubr.bf16.gmra.mrb[20].mxu0 %v1003_v53 }
  0x59   : > { %6459 = vmatpush3.bf16.msra.mxu0 %v6758_v34  ;;  %1787 = vmatprep.mubr.bf16.mxu0 %v1013_v58 }
  0x5a   : > { %6460 = vmatprep.subr.bf16.mxu0 %v6759_v57  ;;  %1845 = vmatmul.mubr.bf16.gmra.mrb[20].mxu1 %v7282_v20 }
  0x5b   : > { %1852 = vmatprep.mubr.bf16.mxu1 %v7300_v26 }
  0x5d   : > { %6461 = vmatpush3.bf16.msra.mxu0 %v6759_v57 }
  0x5e   : > { %6462 = vmatprep.subr.bf16.mxu0 %v6760_v59 }
  0x60   : > { %1788 = vmatmul.mubr.bf16.gmra.mrb[24].mxu0 %v1012_v50 }
  0x61   : > { %6463 = vmatpush3.bf16.msra.mxu0 %v6760_v59  ;;  %1795 = vmatprep.mubr.bf16.mxu0 %v1022_v60 }
  0x62   : > { %6464 = vmatprep.subr.bf16.mxu0 %v6761_v55  ;;  %1853 = vmatmul.mubr.bf16.gmra.mrb[24].mxu1 %v1017_v41 }
  0x63   : > { %1860 = vmatprep.mubr.bf16.mxu1 %v1024_v62 }
  0x65   : > { %6465 = vmatpush3.bf16.msra.mxu0 %v6761_v55 }
  0x66   : > { %6466 = vmatprep.subr.bf16.mxu0 %v6762_v61 }
  0x68   : > { %1796 = vmatmul.mubr.bf16.gmra.mrb[28].mxu0 %v1021_v63 }
  0x69   : > { %6467 = vmatpush3.bf16.msra.mxu0 %v6762_v61  ;;  %6470 = vmatprep.mubr.bf16.mxu0 %v7235_v5 }
  0x6a   : > { %6468 = vmatprep.subr.bf16.mxu0 %v6763_v0  ;;  %1861 = vmatmul.mubr.bf16.gmra.mrb[28].mxu1 %v1023_v2 }
  0x6d   : > { %6469 = vmatpush3.bf16.msra.mxu0 %v6763_v0 }
  0x70   : > { %6471 = vmatmul.mubr.bf16.vlgmr.msra.gmra.mrb[32].mxu0 %v7290_v23 }
  0x71   : > { %6474 = vmatprep.mubr.bf16.mxu0 %v7338_v45 }
  0x78   : > { %6475 = vmatmul.mubr.bf16.gmra.mrb[36].mxu0 %v1025_v3 }
 0x103   : > { %v6116_v6 = vpop.f32.mrb[0].mxu0 }
 0x104   : > { %v6117_v8 = vpop.f32.mrb[1].mxu0 }
 0x105   : > { %v6118_v5 = vadd.f32 %v6117_v8, %v6116_v6  ;;  %v6119_v9 = vpop.f32.mrb[2].mxu0  ;;  %v6156_v10 = vpop.f32.mrb[0].mxu1 }
 0x106   : > { %v6120_v11 = vpop.f32.mrb[3].mxu0  ;;  %v6157_v14 = vpop.f32.mrb[1].mxu1 }
 0x107   : > { %v1644_v12 = vadd.f32 %v6118_v5, %v5920_v7  ;;  %v6121_v13 = vadd.f32 %v6120_v11, %v6119_v9  ;;  %v6158_v15 = vadd.f32 %v6157_v14, %v6156_v10  ;;  %v6159_v16 = vpop.f32.mrb[2].mxu1 }
 0x108   : > { %v6160_v18 = vpop.f32.mrb[3].mxu1 }
 0x109   : > { %v1647_v17 = vadd.f32 %v6121_v13, %v5920_v7  ;;  %v1709_v19 = vadd.f32 %v6158_v15, %v1644_v12  ;;  %v6161_v20 = vadd.f32 %v6160_v18, %v6159_v16 }
 0x10b   : > { %v1712_v21 = vadd.f32 %v6161_v20, %v1647_v17  ;;  %v6122_v22 = vpop.f32.mrb[4].mxu0 }
 0x10c   : > { %v6123_v23 = vpop.f32.mrb[5].mxu0 }
 0x10d   : > { %v6124_v24 = vadd.f32 %v6123_v23, %v6122_v22  ;;  %v6125_v25 = vpop.f32.mrb[6].mxu0  ;;  %v6162_v26 = vpop.f32.mrb[4].mxu1 }
 0x10e   : > { %v6126_v27 = vpop.f32.mrb[7].mxu0  ;;  %v6163_v31 = vpop.f32.mrb[5].mxu1 }
 0x10f   : > { %v1652_v29 = vadd.f32 %v6124_v24, %v5920_v7  ;;  %v6127_v30 = vadd.f32 %v6126_v27, %v6125_v25  ;;  %v6164_v32 = vadd.f32 %v6163_v31, %v6162_v26  ;;  %v6165_v33 = vpop.f32.mrb[6].mxu1 }
 0x110   : > { %v6166_v36 = vpop.f32.mrb[7].mxu1 }
 0x111   : > { %v1655_v35 = vadd.f32 %v6127_v30, %v5920_v7  ;;  %v1717_v37 = vadd.f32 %v6164_v32, %v1652_v29  ;;  %v6167_v38 = vadd.f32 %v6166_v36, %v6165_v33 }
 0x113   : > { %v1720_v40 = vadd.f32 %v6167_v38, %v1655_v35  ;;  %v6128_v41 = vpop.f32.mrb[8].mxu0 }
 0x114   : > { %v6129_v42 = vpop.f32.mrb[9].mxu0 }
 0x115   : > { %v6130_v43 = vadd.f32 %v6129_v42, %v6128_v41  ;;  %v6131_v45 = vpop.f32.mrb[10].mxu0  ;;  %v6168_v44 = vpop.f32.mrb[8].mxu1 }
 0x116   : > { %v6132_v46 = vpop.f32.mrb[11].mxu0  ;;  %v6169_v49 = vpop.f32.mrb[9].mxu1 }
 0x117   : > { %v1660_v47 = vadd.f32 %v6130_v43, %v5920_v7  ;;  %v6133_v48 = vadd.f32 %v6132_v46, %v6131_v45  ;;  %v6170_v51 = vadd.f32 %v6169_v49, %v6168_v44  ;;  %v6171_v52 = vpop.f32.mrb[10].mxu1 }
 0x118   : > { %v6172_v56 = vpop.f32.mrb[11].mxu1 }
 0x119   : > { %v1663_v54 = vadd.f32 %v6133_v48, %v5920_v7  ;;  %v1725_v34 = vadd.f32 %v6170_v51, %v1660_v47  ;;  %v6173_v39 = vadd.f32 %v6172_v56, %v6171_v52 }
 0x11b   : > { %v1728_v53 = vadd.f32 %v6173_v39, %v1663_v54  ;;  %v6134_v57 = vpop.f32.mrb[12].mxu0 }
 0x11c   : > { %v6135_v58 = vpop.f32.mrb[13].mxu0 }
 0x11d   : > { %v6136_v59 = vadd.f32 %v6135_v58, %v6134_v57  ;;  %v6137_v50 = vpop.f32.mrb[14].mxu0  ;;  %v6174_v55 = vpop.f32.mrb[12].mxu1 }
 0x11e   : > { %v6138_v60 = vpop.f32.mrb[15].mxu0  ;;  %v6175_v63 = vpop.f32.mrb[13].mxu1 }
 0x11f   : > { %v1668_v61 = vadd.f32 %v6136_v59, %v5920_v7  ;;  %v6139_v62 = vadd.f32 %v6138_v60, %v6137_v50  ;;  %v6176_v0 = vadd.f32 %v6175_v63, %v6174_v55  ;;  %v6177_v2 = vpop.f32.mrb[14].mxu1 }
 0x120   : > { %v6178_v4 = vpop.f32.mrb[15].mxu1 }
 0x121   : > { %v1671_v3 = vadd.f32 %v6139_v62, %v5920_v7  ;;  %v1733_v6 = vadd.f32 %v6176_v0, %v1668_v61  ;;  %v6179_v8 = vadd.f32 %v6178_v4, %v6177_v2  ;;  %v1976_v62 = vpop.permute.xlu1 %1975 }
 0x122   : > { %2000 = vst.msk [vmem:[#allocation9] sm:$0xff] %vm1999_vm2, %v1976_v62 }
 0x123   : > { %v6196_v5 = vpop.f32.mrb[16].mxu0  ;;  %v1736_v9 = vadd.f32 %v6179_v8, %v1671_v3 }
 0x124   : > { %v6197_v10 = vpop.f32.mrb[17].mxu0 }
 0x125   : > { %v6198_v11 = vadd.f32 %v6197_v10, %v6196_v5  ;;  %v6199_v12 = vpop.f32.mrb[18].mxu0  ;;  %v6236_v13 = vpop.f32.mrb[16].mxu1  ;;  %v6764_v10 = vld [vmem:[%s9107_s24 + $0x40] sm:$0xff]  }
 0x126   : > { %v6200_v14 = vpop.f32.mrb[19].mxu0  ;;  %v6237_v17 = vpop.f32.mrb[17].mxu1  ;;  %6272 = vmatprep.subr.bf16.mxu1 %v6764_v10  ;;  %v6783_v10 = vld [vmem:[%s9107_s24 + $0x98] sm:$0xff]  }
 0x127   : > { %v1774_v15 = vadd.f32 %v6198_v11, %v1709_v19  ;;  %v6201_v16 = vadd.f32 %v6200_v14, %v6199_v12  ;;  %v6238_v18 = vadd.f32 %v6237_v17, %v6236_v13  ;;  %v6239_v20 = vpop.f32.mrb[18].mxu1 }
 0x128   : > { %v6240_v23 = vpop.f32.mrb[19].mxu1 }
 0x129   : > { %v1777_v22 = vadd.f32 %v6201_v16, %v1712_v21  ;;  %v6241_v24 = vadd.f32 %v6240_v23, %v6239_v20  ;;  %v1839_v25 = vadd.f32 %v6238_v18, %v1774_v15  ;;  %v2008_v20 = vld [vmem:[#allocation3 + $0x2] sm:$0xff] }
 0x12a   : > { %2016 = vst.msk [vmem:[#allocation9 + $0x8] sm:$0xff] %vm624_vm0, %v2008_v20  ;;  %v6794_v20 = vld [vmem:[%s9107_s24 + $0xb0] sm:$0xff]  }
 0x12b   : > { %v6202_v7 = vpop.f32.mrb[20].mxu0  ;;  %v7400_v27 = vadd.f32 %v6241_v24, %v1777_v22 }
 0x12c   : > { %v6203_v26 = vpop.f32.mrb[21].mxu0 }
 0x12d   : > { %v6204_v28 = vadd.f32 %v6203_v26, %v6202_v7  ;;  %v6205_v29 = vpop.f32.mrb[22].mxu0  ;;  %v6242_v30 = vpop.f32.mrb[20].mxu1  ;;  %v6768_v7 = vld [vmem:[%s9107_s24 + $0x50] sm:$0xff]   ;;  %v6769_v26 = vld [vmem:[%s9107_s24 + $0xc0] sm:$0xff]  }
 0x12e   : > { %v6206_v31 = vpop.f32.mrb[23].mxu0  ;;  %v6243_v35 = vpop.f32.mrb[21].mxu1  ;;  %6312 = vmatprep.subr.bf16.mxu0 %v6769_v26 }
 0x12f   : > { %v1782_v32 = vadd.f32 %v6204_v28, %v1717_v37  ;;  %v6207_v33 = vadd.f32 %v6206_v31, %v6205_v29  ;;  %v6244_v19 = vadd.f32 %v6243_v35, %v6242_v30  ;;  %v6245_v36 = vpop.f32.mrb[22].mxu1  ;;  %v6770_v30 = vld [vmem:[%s9107_s24 + $0x10] sm:$0xff]   ;;  %v6771_v31 = vld [vmem:[%s9107_s24 + $0x80] sm:$0xff]  }
 0x130   : > { %v6246_v41 = vpop.f32.mrb[23].mxu1  ;;  %6313 = vmatpush3.bf16.msra.mxu0 %v6771_v31 }
 0x131   : > { %v1785_v38 = vadd.f32 %v6207_v33, %v1720_v40  ;;  %v6247_v42 = vadd.f32 %v6246_v41, %v6245_v36  ;;  %v1847_v21 = vadd.f32 %v6244_v19, %v1782_v32 }
 0x133   : > { %v6208_v43 = vpop.f32.mrb[24].mxu0  ;;  %v1850_v44 = vadd.f32 %v6247_v42, %v1785_v38 }
 0x134   : > { %v6209_v45 = vpop.f32.mrb[25].mxu0 }
 0x135   : > { %v6210_v46 = vadd.f32 %v6209_v45, %v6208_v43  ;;  %v6211_v47 = vpop.f32.mrb[26].mxu0  ;;  %v6248_v48 = vpop.f32.mrb[24].mxu1 }
 0x136   : > { %v6212_v49 = vpop.f32.mrb[27].mxu0  ;;  %v6249_v54 = vpop.f32.mrb[25].mxu1 }
 0x137   : > { %v1790_v51 = vadd.f32 %v6210_v46, %v1725_v34  ;;  %v6213_v52 = vadd.f32 %v6212_v49, %v6211_v47  ;;  %v6250_v56 = vadd.f32 %v6249_v54, %v6248_v48  ;;  %v6251_v37 = vpop.f32.mrb[26].mxu1  ;;  %v6773_v54 = vld [vmem:[%s9107_s24 + $0xc8] sm:$0xff]  }
 0x138   : > { %v6252_v57 = vpop.f32.mrb[27].mxu1  ;;  %6314 = vmatprep.subr.bf16.mxu0 %v6773_v54  ;;  %v6797_v54 = vld [vmem:[%s9107_s24 + $0x108] sm:$0xff]  }
 0x139   : > { %v1793_v39 = vadd.f32 %v6213_v52, %v1728_v53  ;;  %v6253_v58 = vadd.f32 %v6252_v57, %v6251_v37  ;;  %v1855_v59 = vadd.f32 %v6250_v56, %v1790_v51  ;;  %v6772_v52 = vld [vmem:[%s9107_s24 + $0x58] sm:$0xff]   ;;  %v6775_v37 = vld [vmem:[%s9107_s24 + $0x88] sm:$0xff]   ;;  %v6777_v57 = vld [vmem:[%s9107_s24 + $0xd0] sm:$0xff]  }
 0x13a   : > { %v6774_v56 = vld [vmem:[%s9107_s24 + $0x18] sm:$0xff]   ;;  %6315 = vmatpush3.bf16.msra.mxu0 %v6775_v37 }
 0x13b   : > { %v6214_v40 = vpop.f32.mrb[28].mxu0  ;;  %v7402_v55 = vadd.f32 %v6253_v58, %v1793_v39  ;;  %v6776_v39 = vld [vmem:[%s9107_s24 + $0x60] sm:$0xff]   ;;  %6316 = vmatprep.subr.bf16.mxu0 %v6777_v57  ;;  %v6798_v57 = vld [vmem:[%s9107_s24 + $0x110] sm:$0xff]  }
 0x13c   : > { %v6215_v50 = vpop.f32.mrb[29].mxu0  ;;  %v6778_v58 = vld [vmem:[%s9107_s24 + $0x20] sm:$0xff]  }
 0x13d   : > { %v6216_v60 = vadd.f32 %v6215_v50, %v6214_v40  ;;  %v6217_v61 = vpop.f32.mrb[30].mxu0  ;;  %v6254_v63 = vpop.f32.mrb[28].mxu1 }
 0x13e   : > { %v6218_v0 = vpop.f32.mrb[31].mxu0  ;;  %v6255_v3 = vpop.f32.mrb[29].mxu1 }
 0x13f   : > { %v1798_v34 = vadd.f32 %v6216_v60, %v1733_v6  ;;  %v6219_v2 = vadd.f32 %v6218_v0, %v6217_v61  ;;  %v6256_v4 = vadd.f32 %v6255_v3, %v6254_v63  ;;  %v6257_v53 = vpop.f32.mrb[30].mxu1  ;;  %v6765_v6 = vld [vmem:[%s9107_s24] sm:$0xff]  }
 0x140   : > { %v6258_v5 = vpop.f32.mrb[31].mxu1  ;;  %6273 = vmatpush3.bf16.msra.mxu1 %v6765_v6  ;;  %v6790_v6 = vld [vmem:[%s9107_s24 + $0x38] sm:$0xff]  }
 0x141   : > { %v1801_v8 = vadd.f32 %v6219_v2, %v1736_v9  ;;  %v6259_v11 = vadd.f32 %v6258_v5, %v6257_v53  ;;  %v1863_v12 = vadd.f32 %v6256_v4, %v1798_v34  ;;  %v6766_v9 = vld [vmem:[%s9107_s24 + $0x48] sm:$0xff]  }
 0x142   : > { %6274 = vmatprep.subr.bf16.mxu1 %v6766_v9  ;;  %v6780_v53 = vld [vmem:[%s9107_s24 + $0x68] sm:$0xff]   ;;  %v7623_v9 = vld [vmem:[%s9107_s24 + $0x100] sm:$0xff]  }
 0x143   : > { %v6472_v13 = vpop.f32.mrb[32].mxu0  ;;  %v1866_v16 = vadd.f32 %v6259_v11, %v1801_v8  ;;  %v6781_v8 = vld [vmem:[%s9107_s24 + $0xd8] sm:$0xff]   ;;  %v6782_v5 = vld [vmem:[%s9107_s24 + $0x28] sm:$0xff]   ;;  %v6784_v11 = vld [vmem:[%s9107_s24 + $0x70] sm:$0xff]  }
 0x144   : > { %v1912_v14 = vadd.f32 %v6472_v13, %v1847_v21  ;;  %v1903_v15 = vpop.f32.mrb[33].mxu0  ;;  %v6786_v13 = vld [vmem:[%s9107_s24 + $0x30] sm:$0xff]  }
 0x145   : > { %v1904_v17 = vadd.f32 %v1903_v15, %v1839_v25  ;;  %v6473_v18 = vpop.f32.mrb[34].mxu0  ;;  %v6767_v25 = vld [vmem:[%s9107_s24 + $0x8] sm:$0xff]   ;;  %v6788_v15 = vld [vmem:[%s9107_s24 + $0x78] sm:$0xff]  }
 0x146   : > { %1937 = vst.msk [vmem:[#allocation3 + $0x31] sm:$0xff] %vm624_vm0, %v1912_v14  ;;  %v1915_v22 = vadd.f32 %v6473_v18, %v1850_v44  ;;  %v1906_v23 = vpop.f32.mrb[35].mxu0  ;;  %6275 = vmatpush3.bf16.msra.mxu1 %v6767_v25  ;;  %v6787_v14 = vld [vmem:[%s9107_s24 + $0xa0] sm:$0xff]   ;;  %v6792_v18 = vld [vmem:[%s9107_s24 + $0xf0] sm:$0xff]  }
 0x147   : > { %1935 = vst.msk [vmem:[#allocation3 + $0x11] sm:$0xff] %vm624_vm0, %v1904_v17  ;;  %v1907_v24 = vadd.f32 %v1906_v23, %v7400_v27  ;;  %6276 = vmatprep.subr.bf16.mxu1 %v6768_v7  ;;  %v6791_v17 = vld [vmem:[%s9107_s24 + $0xa8] sm:$0xff]   ;;  %v6796_v23 = vld [vmem:[%s9107_s24 + $0xb8] sm:$0xff]  }
 0x148   : > { %1938 = vst.msk [vmem:[#allocation3 + $0x41] sm:$0xff] %vm624_vm0, %v1915_v22  ;;  %v6795_v22 = vld [vmem:[%s9107_s24 + $0xf8] sm:$0xff]  }
 0x149   : > { %1936 = vst.msk [vmem:[#allocation3 + $0x21] sm:$0xff] %vm624_vm0, %v1907_v24  ;;  %v2144_v24 = vld [vmem:[#allocation3 + $0x90] sm:$0xff] }
 0x14a   : > { %6277 = vmatpush3.bf16.msra.mxu1 %v6770_v30  ;;  %2152 = vst.msk [vmem:[#allocation9 + $0x210] sm:$0xff] %vm624_vm0, %v2144_v24  ;;  %v2160_v25 = vld [vmem:[#allocation3 + $0x91] sm:$0xff] }
 0x14b   : > { %v6476_v28 = vpop.f32.mrb[36].mxu0  ;;  %6278 = vmatprep.subr.bf16.mxu1 %v6772_v52 }
 0x14c   : > { %v1928_v27 = vadd.f32 %v6476_v28, %v1863_v12  ;;  %v1919_v29 = vpop.f32.mrb[37].mxu0  ;;  %v6785_v12 = vld [vmem:[%s9107_s24 + $0xe0] sm:$0xff]  }
 0x14d   : > { %v2202_v32 = vld [vmem:[#allocation3 + $0x32] sm:$0xff]  ;;  %v1920_v33 = vadd.f32 %v1919_v29, %v1855_v59  ;;  %v6477_v35 = vpop.f32.mrb[38].mxu0 }
 0x14e   : > { %v2026_v19 = vld [vmem:[#allocation3 + $0x30] sm:$0xff]  ;;  %2210 = vst.msk [vmem:[#allocation9 + $0x68] sm:$0xff] %vm624_vm0, %v2202_v32  ;;  %1941 = vst.msk [vmem:[#allocation3 + $0x71] sm:$0xff] %vm624_vm0, %v1928_v27  ;;  %v1931_v38 = vadd.f32 %v6477_v35, %v1866_v16  ;;  %v1922_v41 = vpop.f32.mrb[39].mxu0  ;;  %6279 = vmatpush3.bf16.msra.mxu1 %v6774_v56  ;;  %v6789_v16 = vld [vmem:[%s9107_s24 + $0xe8] sm:$0xff]  }
 0x14f   : > { %v1962_v36 = vld [vmem:[#allocation3 + $0x31] sm:$0xff]  ;;  %2044 = vrot.lane.b32.xlu0 %v2026_v19, %s6850_s21  ;;  %1954 = vst.msk [vmem:[#allocation9 + $0xd8] sm:$0xff] %vm624_vm0, %v2026_v19  ;;  %2146 = vst.msk [vmem:[#allocation9 + $0x60] sm:$0xff] %vm624_vm0, %v2026_v19  ;;  %v7445_v45 = vld [vmem:[#allocation3 + $0x42] sm:$0xff]  ;;  %v1923_v44 = vadd.f32 %v1922_v41, %v7402_v55  ;;  %6280 = vmatprep.subr.bf16.mxu1 %v6776_v39 }
 0x150   : > { %1981 = vrot.lane.b32.xlu1 %v1962_v36, %s6850_s21  ;;  %v2024_v42 = vld [vmem:[#allocation3 + $0x10] sm:$0xff]  ;;  %2082 = vst.msk [vmem:[#allocation9 + $0xa0] sm:$0xff] %vm624_vm0, %v1962_v36  ;;  %2019 = vst.msk [vmem:[#allocation9 + $0xe0] sm:$0xff] %vm624_vm0, %v2202_v32  ;;  %v7449_v46 = vld [vmem:[#allocation3 + $0x40] sm:$0xff] }
 0x151   : > { %v1960_v21 = vld [vmem:[#allocation3 + $0x11] sm:$0xff]  ;;  %1939 = vst.msk [vmem:[#allocation3 + $0x51] sm:$0xff] %vm624_vm0, %v1920_v33  ;;  %v7451_v47 = vld [vmem:[#allocation3 + $0x41] sm:$0xff]  ;;  %1952 = vst.msk [vmem:[#allocation9 + $0x48] sm:$0xff] %vm624_vm0, %v2024_v42 }
 0x152   : > { %v7439_v43 = vld [vmem:[#allocation3 + $0x12] sm:$0xff]  ;;  %2080 = vst.msk [vmem:[#allocation9 + $0x10] sm:$0xff] %vm624_vm0, %v1960_v21  ;;  %2211 = vst.msk [vmem:[#allocation9 + $0xb0] sm:$0xff] %vm624_vm0, %v7445_v45  ;;  %v7459_v48 = vld [vmem:[#allocation3 + $0x22] sm:$0xff]  ;;  %6281 = vmatpush3.bf16.msra.mxu1 %v6778_v58 }
 0x153   : > { %2017 = vst.msk [vmem:[#allocation9 + $0x50] sm:$0xff] %vm624_vm0, %v7439_v43  ;;  %1942 = vst.msk [vmem:[#allocation3 + $0x81] sm:$0xff] %vm624_vm0, %v1931_v38  ;;  %v7462_v49 = vld [vmem:[#allocation3 + $0x20] sm:$0xff]  ;;  %2108 = vrot.lane.b32.xlu0 %v2202_v32, %s6850_s21  ;;  %v6779_v59 = vld [vmem:[%s9107_s24 + $0x90] sm:$0xff]   ;;  %6282 = vmatprep.subr.bf16.mxu1 %v6780_v53 }
 0x154   : > { %v7464_v51 = vld [vmem:[#allocation3 + $0x21] sm:$0xff]  ;;  %1955 = vst.msk [vmem:[#allocation9 + $0x120] sm:$0xff] %vm624_vm0, %v7449_v46  ;;  %2083 = vst.msk [vmem:[#allocation9 + $0xe8] sm:$0xff] %vm624_vm0, %v7451_v47  ;;  %2171 = vrot.lane.b32.xlu1 %v1962_v36, %s6850_s21  ;;  %6317 = vmatpush3.bf16.msra.mxu0 %v6779_v59 }
 0x155   : > { %2147 = vst.msk [vmem:[#allocation9 + $0xa8] sm:$0xff] %vm624_vm0, %v7449_v46  ;;  %2020 = vst.msk [vmem:[#allocation9 + $0x128] sm:$0xff] %vm624_vm0, %v7445_v45  ;;  %v7511_v40 = vld [vmem:[#allocation3 + $0x72] sm:$0xff]  ;;  %6318 = vmatprep.subr.bf16.mxu0 %v6781_v8 }
 0x156   : > { %2209 = vst.msk [vmem:[#allocation9 + $0x20] sm:$0xff] %vm624_vm0, %v7459_v48  ;;  %1940 = vst.msk [vmem:[#allocation3 + $0x61] sm:$0xff] %vm624_vm0, %v1923_v44  ;;  %v7513_v50 = vld [vmem:[#allocation3 + $0x70] sm:$0xff]  ;;  %6283 = vmatpush3.bf16.msra.mxu1 %v6782_v5 }
 0x157   : > { %2018 = vst.msk [vmem:[#allocation9 + $0x98] sm:$0xff] %vm624_vm0, %v7459_v48  ;;  %2081 = vst.msk [vmem:[#allocation9 + $0x58] sm:$0xff] %vm624_vm0, %v7464_v51  ;;  %v7515_v55 = vld [vmem:[#allocation3 + $0x71] sm:$0xff]  ;;  %2040 = vrot.lane.b32.xlu0 %v2024_v42, %s6850_s21  ;;  %6284 = vmatprep.subr.bf16.mxu1 %v6784_v11 }
 0x158   : > { %1953 = vst.msk [vmem:[#allocation9 + $0x90] sm:$0xff] %vm624_vm0, %v7462_v49  ;;  %2145 = vst.msk [vmem:[#allocation9 + $0x18] sm:$0xff] %vm624_vm0, %v7462_v49  ;;  %v7519_v60 = vld [vmem:[#allocation3 + $0x52] sm:$0xff]  ;;  %1977 = vrot.lane.b32.xlu1 %v1960_v21, %s6850_s21  ;;  %6319 = vmatpush3.bf16.msra.mxu0 %v6783_v10 }
 0x159   : > { %2214 = vst.msk [vmem:[#allocation9 + $0x188] sm:$0xff] %vm624_vm0, %v7511_v40  ;;  %v7523_v61 = vld [vmem:[#allocation3 + $0x51] sm:$0xff]  ;;  %2023 = vst.msk [vmem:[#allocation9 + $0x200] sm:$0xff] %vm624_vm0, %v7511_v40  ;;  %6320 = vmatprep.subr.bf16.mxu0 %v6785_v12 }
 0x15a   : > { %v7525_v62 = vld [vmem:[#allocation3 + $0x50] sm:$0xff]  ;;  %1958 = vst.msk [vmem:[#allocation9 + $0x1f8] sm:$0xff] %vm624_vm0, %v7513_v50  ;;  %2150 = vst.msk [vmem:[#allocation9 + $0x180] sm:$0xff] %vm624_vm0, %v7513_v50  ;;  %v7537_v63 = vld [vmem:[#allocation3 + $0x82] sm:$0xff]  ;;  %6285 = vmatpush3.bf16.msra.mxu1 %v6786_v13 }
 0x15b   : > { %2086 = vst.msk [vmem:[#allocation9 + $0x1c0] sm:$0xff] %vm624_vm0, %v7515_v55  ;;  %2212 = vst.msk [vmem:[#allocation9 + $0xf8] sm:$0xff] %vm624_vm0, %v7519_v60  ;;  %v7539_v0 = vld [vmem:[#allocation3 + $0x80] sm:$0xff]  ;;  %2104 = vrot.lane.b32.xlu0 %v7439_v43, %s6850_s21  ;;  %6286 = vmatprep.subr.bf16.mxu1 %v6788_v15 }
 0x15c   : > { %v7541_v34 = vld [vmem:[#allocation3 + $0x81] sm:$0xff]  ;;  %1956 = vst.msk [vmem:[#allocation9 + $0x168] sm:$0xff] %vm624_vm0, %v7525_v62  ;;  %2148 = vst.msk [vmem:[#allocation9 + $0xf0] sm:$0xff] %vm624_vm0, %v7525_v62  ;;  %2046 = vrot.lane.b32.xlu1 %v7449_v46, %s6850_s21  ;;  %6321 = vmatpush3.bf16.msra.mxu0 %v6787_v14 }
 0x15d   : > { %2021 = vst.msk [vmem:[#allocation9 + $0x170] sm:$0xff] %vm624_vm0, %v7519_v60  ;;  %2084 = vst.msk [vmem:[#allocation9 + $0x130] sm:$0xff] %vm624_vm0, %v7523_v61  ;;  %v7553_v2 = vld [vmem:[#allocation3 + $0x62] sm:$0xff]  ;;  %6322 = vmatprep.subr.bf16.mxu0 %v6789_v16 }
 0x15e   : > { %2215 = vst.msk [vmem:[#allocation9 + $0x1d0] sm:$0xff] %vm624_vm0, %v7537_v63  ;;  %v2029_v3 = vld [vmem:[#allocation3 + $0x60] sm:$0xff]  ;;  %2151 = vst.msk [vmem:[#allocation9 + $0x1c8] sm:$0xff] %vm624_vm0, %v7539_v0  ;;  %6287 = vmatpush3.bf16.msra.mxu1 %v6790_v6 }
 0x15f   : > { %v7555_v4 = vld [vmem:[#allocation3 + $0x61] sm:$0xff]  ;;  %2087 = vst.msk [vmem:[#allocation9 + $0x208] sm:$0xff] %vm624_vm0, %v7541_v34  ;;  %2213 = vst.msk [vmem:[#allocation9 + $0x140] sm:$0xff] %vm624_vm0, %v7553_v2  ;;  %1983 = vrot.lane.b32.xlu0 %v7451_v47, %s6850_s21  ;;  %6478 = vmatprep.subr.bf16.mxu1 %v7623_v9 }
 0x160   : > { %2022 = vst.msk [vmem:[#allocation9 + $0x1b8] sm:$0xff] %vm624_vm0, %v7553_v2  ;;  %1957 = vst.msk [vmem:[#allocation9 + $0x1b0] sm:$0xff] %vm624_vm0, %v2029_v3  ;;  %2110 = vrot.lane.b32.xlu1 %v7445_v45, %s6850_s21  ;;  %6323 = vmatpush3.bf16.msra.mxu0 %v6791_v17 }
 0x161   : > { %2149 = vst.msk [vmem:[#allocation9 + $0x138] sm:$0xff] %vm624_vm0, %v2029_v3  ;;  %2085 = vst.msk [vmem:[#allocation9 + $0x178] sm:$0xff] %vm624_vm0, %v7555_v4  ;;  %6324 = vmatprep.subr.bf16.mxu0 %v6792_v18 }
 0x163   : > { %2173 = vrot.lane.b32.xlu0 %v7451_v47, %s6850_s21 }
 0x164   : > { %2106 = vrot.lane.b32.xlu1 %v7459_v48, %s6850_s21  ;;  %6325 = vmatpush3.bf16.msra.mxu0 %v6794_v20 }
 0x165   : > { %6326 = vmatprep.subr.bf16.mxu0 %v6795_v22 }
 0x167   : > { %2042 = vrot.lane.b32.xlu0 %v7462_v49, %s6850_s21  ;;  %v2217_v49 = vld [vmem:[#allocation9] sm:$0xff] }
 0x168   : > { %1985 = vrot.lane.b32.xlu1 %v7523_v61, %s6850_s21  ;;  %6327 = vmatpush3.bf16.msra.mxu0 %v6796_v23 }
 0x16b   : > { %1979 = vrot.lane.b32.xlu0 %v7464_v51, %s6850_s21 }
 0x16c   : > { %2175 = vrot.lane.b32.xlu1 %v7523_v61, %s6850_s21 }
 0x16f   : > { %2169 = vrot.lane.b32.xlu0 %v7464_v51, %s6850_s21 }
 0x170   : > { %2054 = vrot.lane.b32.xlu1 %v7539_v0, %s6850_s21 }
 0x173   : > { %2052 = vrot.lane.b32.xlu0 %v7513_v50, %s6850_s21 }
 0x174   : > { %2050 = vrot.lane.b32.xlu1 %v2029_v3, %s6850_s21 }
 0x177   : > { %2048 = vrot.lane.b32.xlu0 %v7525_v62, %s6850_s21 }
 0x178   : > { %1989 = vrot.lane.b32.xlu1 %v7515_v55, %s6850_s21 }
 0x17b   : > { %1987 = vrot.lane.b32.xlu0 %v7555_v4, %s6850_s21 }
 0x17c   : > { %2179 = vrot.lane.b32.xlu1 %v7515_v55, %s6850_s21 }
 0x17f   : > { %2177 = vrot.lane.b32.xlu0 %v7555_v4, %s6850_s21  ;;  %v6799_v4 = vld [vmem:[%s9107_s24 + $0x118] sm:$0xff]  }
 0x180   : > { %2114 = vrot.lane.b32.xlu1 %v7553_v2, %s6850_s21 }
 0x183   : > { %2112 = vrot.lane.b32.xlu0 %v7519_v60, %s6850_s21 }
 0x184   : > { %2183 = vrot.lane.b32.xlu1 %v2160_v25, %s6850_s21 }
 0x187   : > { %2181 = vrot.lane.b32.xlu0 %v7541_v34, %s6850_s21 }
 0x188   : > { %2118 = vrot.lane.b32.xlu1 %v7537_v63, %s6850_s21 }
 0x18b   : > { %2116 = vrot.lane.b32.xlu0 %v7511_v40, %s6850_s21 }
 0x1c1   : > { %v2045_v7 = vpop.permute.xlu0 %2044 }
 0x1c2   : > { %v1982_v26 = vpop.permute.xlu1 %1981  ;;  %2066 = vst.msk [vmem:[#allocation9 + $0x98] sm:$0xff] %vm1999_vm2, %v2045_v7 }
 0x1c3   : > { %2003 = vst.msk [vmem:[#allocation9 + $0xd8] sm:$0xff] %vm1999_vm2, %v1982_v26 }
 0x1c5   : > { %v2109_v28 = vpop.permute.xlu0 %2108 }
 0x1c6   : > { %v2172_v27 = vpop.permute.xlu1 %2171  ;;  %2130 = vst.msk [vmem:[#allocation9 + $0xa0] sm:$0xff] %vm1999_vm2, %v2109_v28 }
 0x1c7   : > { %2194 = vst.msk [vmem:[#allocation9 + $0x60] sm:$0xff] %vm1999_vm2, %v2172_v27 }
 0x1c9   : > { %v2041_v29 = vpop.permute.xlu0 %2040  ;;  %v2228_v52 = vld [vmem:[#allocation9 + $0x98] sm:$0xff] }
 0x1ca   : > { %v1978_v30 = vpop.permute.xlu1 %1977  ;;  %2064 = vst.msk [vmem:[#allocation9 + $0x8] sm:$0xff] %vm1999_vm2, %v2041_v29  ;;  %v2232_v0 = vld [vmem:[#allocation9 + $0xd8] sm:$0xff] }
 0x1cb   : > { %2001 = vst.msk [vmem:[#allocation9 + $0x48] sm:$0xff] %vm1999_vm2, %v1978_v30  ;;  %v2221_v30 = vld [vmem:[#allocation9 + $0x20] sm:$0xff] }
 0x1cd   : > { %v2105_v1 = vpop.permute.xlu0 %2104  ;;  %v2229_v17 = vld [vmem:[#allocation9 + $0xa0] sm:$0xff] }
 0x1ce   : > { %v2047_v31 = vpop.permute.xlu1 %2046  ;;  %2128 = vst.msk [vmem:[#allocation9 + $0x10] sm:$0xff] %vm1999_vm2, %v2105_v1  ;;  %v2225_v60 = vld [vmem:[#allocation9 + $0x60] sm:$0xff] }
 0x1cf   : > { %2067 = vst.msk [vmem:[#allocation9 + $0xe0] sm:$0xff] %vm1999_vm2, %v2047_v31 }
 0x1d1   : > { %v1984_v32 = vpop.permute.xlu0 %1983  ;;  %v2218_v44 = vld [vmem:[#allocation9 + $0x8] sm:$0xff] }
 0x1d2   : > { %v2111_v33 = vpop.permute.xlu1 %2110  ;;  %2004 = vst.msk [vmem:[#allocation9 + $0x120] sm:$0xff] %vm1999_vm2, %v1984_v32  ;;  %v2222_v21 = vld [vmem:[#allocation9 + $0x48] sm:$0xff] }
 0x1d3   : > { %2131 = vst.msk [vmem:[#allocation9 + $0xe8] sm:$0xff] %vm1999_vm2, %v2111_v33  ;;  %v2257_v51 = vpack.c.bf16 %v2222_v21, %v2217_v49  ;;  %v2226_v33 = vld [vmem:[#allocation9 + $0x68] sm:$0xff]  ;;  %v3119_v21 = vld [vmem:[#allocation4 + $0x92] sm:$0xff] }
 0x1d5   : > { %v2174_v35 = vpop.permute.xlu0 %2173  ;;  %v2219_v63 = vld [vmem:[#allocation9 + $0x10] sm:$0xff] }
 0x1d6   : > { %v2107_v19 = vpop.permute.xlu1 %2106  ;;  %2195 = vst.msk [vmem:[#allocation9 + $0xa8] sm:$0xff] %vm1999_vm2, %v2174_v35  ;;  %v2233_v47 = vld [vmem:[#allocation9 + $0xe0] sm:$0xff]  ;;  %v2261_v35 = vpack.c.bf16 %v2226_v33, %v2221_v30 }
 0x1d7   : > { %2129 = vst.msk [vmem:[#allocation9 + $0x58] sm:$0xff] %vm1999_vm2, %v2107_v19  ;;  %v2263_v56 = vpack.c.bf16 %v2233_v47, %v2228_v52 }
 0x1d9   : > { %v2043_v36 = vpop.permute.xlu0 %2042  ;;  %v2237_v18 = vld [vmem:[#allocation9 + $0x120] sm:$0xff] }
 0x1da   : > { %v1986_v38 = vpop.permute.xlu1 %1985  ;;  %2065 = vst.msk [vmem:[#allocation9 + $0x50] sm:$0xff] %vm1999_vm2, %v2043_v36  ;;  %v2234_v10 = vld [vmem:[#allocation9 + $0xe8] sm:$0xff] }
 0x1db   : > { %2005 = vst.msk [vmem:[#allocation9 + $0x168] sm:$0xff] %vm1999_vm2, %v1986_v38 }
 0x1dd   : > { %v1980_v41 = vpop.permute.xlu0 %1979  ;;  %v2230_v3 = vld [vmem:[#allocation9 + $0xa8] sm:$0xff] }
 0x1de   : > { %v2176_v42 = vpop.permute.xlu1 %2175  ;;  %2002 = vst.msk [vmem:[#allocation9 + $0x90] sm:$0xff] %vm1999_vm2, %v1980_v41  ;;  %v2224_v58 = vld [vmem:[#allocation9 + $0x58] sm:$0xff] }
 0x1df   : > { %2196 = vst.msk [vmem:[#allocation9 + $0xf0] sm:$0xff] %vm1999_vm2, %v2176_v42  ;;  %v2259_v34 = vpack.c.bf16 %v2224_v58, %v2219_v63  ;;  %v2804_v58 = vld [vmem:[#allocation4 + $0x1] sm:$0xff] }
 0x1e0   : > { %2820 = vrot.lane.b32.xlu0 %v2804_v58, %s6851_s2 }
 0x1e1   : > { %v2170_v43 = vpop.permute.xlu0 %2169  ;;  %v2223_v46 = vld [vmem:[#allocation9 + $0x50] sm:$0xff] }
 0x1e2   : > { %v2055_v45 = vpop.permute.xlu1 %2054  ;;  %2193 = vst.msk [vmem:[#allocation9 + $0x18] sm:$0xff] %vm1999_vm2, %v2170_v43  ;;  %v2258_v48 = vpack.c.bf16 %v2223_v46, %v2218_v44  ;;  %v2242_v11 = vld [vmem:[#allocation9 + $0x168] sm:$0xff]  ;;  %v2236_v43 = vld [vmem:[#allocation9 + $0xf8] sm:$0xff]  ;;  %v2241_v44 = vld [vmem:[#allocation9 + $0x140] sm:$0xff] }
 0x1e3   : > { %2071 = vst.msk [vmem:[#allocation9 + $0x200] sm:$0xff] %vm1999_vm2, %v2055_v45  ;;  %v2267_v20 = vpack.c.bf16 %v2242_v11, %v2237_v18 }
 0x1e4   : > { %2616 = vmatprep.mubr.bf16.mxu1 %v2258_v48  ;;  %v2231_v48 = vld [vmem:[#allocation9 + $0xb0] sm:$0xff] }
 0x1e5   : > { %v2053_v37 = vpop.permute.xlu0 %2052  ;;  %2617 = vmatmul.mubr.bf16.vlgmr.msra.gmra.mrb[32].mxu1 %v2257_v51  ;;  %v2227_v59 = vld [vmem:[#allocation9 + $0x90] sm:$0xff]  ;;  %v2266_v49 = vpack.c.bf16 %v2236_v43, %v2231_v48  ;;  %v2246_v51 = vld [vmem:[#allocation9 + $0x188] sm:$0xff] }
 0x1e6   : > { %v2051_v39 = vpop.permute.xlu1 %2050  ;;  %2070 = vst.msk [vmem:[#allocation9 + $0x1b8] sm:$0xff] %vm1999_vm2, %v2053_v37  ;;  %2624 = vmatprep.mubr.bf16.mxu1 %v2263_v56  ;;  %6479 = vmatpush3.bf16.msra.mxu1 %v7623_v9  ;;  %v2235_v61 = vld [vmem:[#allocation9 + $0xf0] sm:$0xff]  ;;  %v2262_v2 = vpack.c.bf16 %v2232_v0, %v2227_v59  ;;  %v2264_v9 = vpack.c.bf16 %v2234_v10, %v2229_v17 }
 0x1e7   : > { %2069 = vst.msk [vmem:[#allocation9 + $0x170] sm:$0xff] %vm1999_vm2, %v2051_v39  ;;  %6480 = vmatprep.subr.bf16.mxu1 %v6797_v54  ;;  %v2265_v53 = vpack.c.bf16 %v2235_v61, %v2230_v3  ;;  %v2271_v52 = vpack.c.bf16 %v2246_v51, %v2241_v44  ;;  %v2251_v37 = vld [vmem:[#allocation9 + $0x1d0] sm:$0xff]  ;;  %v2256_v39 = vld [vmem:[#allocation9 + $0x218] sm:$0xff] }
 0x1e8   : > { %v3023_v59 = vld [vmem:[#allocation4 + $0x90] sm:$0xff] }
 0x1e9   : > { %v2049_v40 = vpop.permute.xlu0 %2048  ;;  %v2220_v55 = vld [vmem:[#allocation9 + $0x18] sm:$0xff]  ;;  %3046 = vrot.lane.b32.xlu1 %v3023_v59, %s6850_s21 }
 0x1ea   : > { %v1990_v50 = vpop.permute.xlu1 %1989  ;;  %2068 = vst.msk [vmem:[#allocation9 + $0x128] sm:$0xff] %vm1999_vm2, %v2049_v40  ;;  %v2260_v62 = vpack.c.bf16 %v2225_v60, %v2220_v55  ;;  %6481 = vmatpush3.bf16.msra.mxu1 %v6797_v54  ;;  %v2253_v22 = vld [vmem:[#allocation9 + $0x200] sm:$0xff] }
 0x1eb   : > { %2007 = vst.msk [vmem:[#allocation9 + $0x1f8] sm:$0xff] %vm1999_vm2, %v1990_v50  ;;  %6482 = vmatprep.subr.bf16.mxu1 %v6798_v57  ;;  %v2853_v40 = vld [vmem:[#allocation4 + $0x2] sm:$0xff]  ;;  %v3071_v50 = vld [vmem:[#allocation4 + $0x91] sm:$0xff] }
 0x1ec   : > { %2681 = vmatprep.mubr.bf16.mxu0 %v2260_v62  ;;  %2869 = vrot.lane.b32.xlu0 %v2853_v40, %s6850_s21  ;;  %v2788_v55 = vld [vmem:[#allocation4] sm:$0xff] }
 0x1ed   : > { %v1988_v8 = vpop.permute.xlu0 %1987  ;;  %2682 = vmatmul.mubr.bf16.vlgmr.msra.gmra.mrb[40].mxu0 %v2259_v34  ;;  %2625 = vmatmul.mubr.bf16.gmra.mrb[36].mxu1 %v2262_v2  ;;  %v2248_v16 = vld [vmem:[#allocation9 + $0x1b8] sm:$0xff]  ;;  %2796 = vst.msk [vmem:[#allocation9] sm:$0xff] %vm646_vm3, %v2788_v55  ;;  %v7766_v2 = vld [vmem:[%s9085_s9] ss:$0 sm:$0xff] }
 0x1ee   : > { %v2180_v5 = vpop.permute.xlu1 %2179  ;;  %2006 = vst.msk [vmem:[#allocation9 + $0x1b0] sm:$0xff] %vm1999_vm2, %v1988_v8  ;;  %2689 = vmatprep.mubr.bf16.mxu0 %v2265_v53  ;;  %6483 = vmatpush3.bf16.msra.mxu1 %v6798_v57  ;;  %v2243_v15 = vld [vmem:[#allocation9 + $0x170] sm:$0xff]  ;;  %v2273_v23 = vpack.c.bf16 %v2253_v22, %v2248_v16  ;;  %v2276_v57 = vpack.c.bf16 %v2256_v39, %v2251_v37 }
 0x1ef   : > { %2198 = vst.msk [vmem:[#allocation9 + $0x180] sm:$0xff] %vm1999_vm2, %v2180_v5  ;;  %6484 = vmatprep.subr.bf16.mxu1 %v6799_v4  ;;  %3094 = vrot.lane.b32.xlu1 %v3071_v50, %s9099_s23 }
 0x1f1   : > { %v2178_v12 = vpop.permute.xlu0 %2177  ;;  %v2238_v14 = vld [vmem:[#allocation9 + $0x128] sm:$0xff] }
 0x1f2   : > { %v2115_v13 = vpop.permute.xlu1 %2114  ;;  %2197 = vst.msk [vmem:[#allocation9 + $0x138] sm:$0xff] %vm1999_vm2, %v2178_v12  ;;  %v2268_v6 = vpack.c.bf16 %v2243_v15, %v2238_v14  ;;  %6485 = vmatpush3.bf16.msra.mxu1 %v6799_v4  ;;  %v2252_v31 = vld [vmem:[#allocation9 + $0x1f8] sm:$0xff] }
 0x1f3   : > { %2133 = vst.msk [vmem:[#allocation9 + $0x178] sm:$0xff] %vm1999_vm2, %v2115_v13 }
 0x1f4   : > { %2632 = vmatprep.mubr.bf16.mxu1 %v2268_v6 }
 0x1f5   : > { %v2113_v24 = vpop.permute.xlu0 %2112  ;;  %2690 = vmatmul.mubr.bf16.gmra.mrb[44].mxu0 %v2264_v9  ;;  %2633 = vmatmul.mubr.bf16.gmra.mrb[40].mxu1 %v2267_v20  ;;  %v2247_v7 = vld [vmem:[#allocation9 + $0x1b0] sm:$0xff] }
 0x1f6   : > { %v2184_v25 = vpop.permute.xlu1 %2183  ;;  %2132 = vst.msk [vmem:[#allocation9 + $0x130] sm:$0xff] %vm1999_vm2, %v2113_v24  ;;  %2640 = vmatprep.mubr.bf16.mxu1 %v2273_v23  ;;  %v2245_v29 = vld [vmem:[#allocation9 + $0x180] sm:$0xff]  ;;  %v2272_v32 = vpack.c.bf16 %v2252_v31, %v2247_v7 }
 0x1f7   : > { %2200 = vst.msk [vmem:[#allocation9 + $0x210] sm:$0xff] %vm1999_vm2, %v2184_v25 }
 0x1f9   : > { %v2182_v26 = vpop.permute.xlu0 %2181  ;;  %v2240_v27 = vld [vmem:[#allocation9 + $0x138] sm:$0xff] }
 0x1fa   : > { %v2119_v28 = vpop.permute.xlu1 %2118  ;;  %2199 = vst.msk [vmem:[#allocation9 + $0x1c8] sm:$0xff] %vm1999_vm2, %v2182_v26  ;;  %v2270_v1 = vpack.c.bf16 %v2245_v29, %v2240_v27  ;;  %v2244_v38 = vld [vmem:[#allocation9 + $0x178] sm:$0xff] }
 0x1fb   : > { %2135 = vst.msk [vmem:[#allocation9 + $0x208] sm:$0xff] %vm1999_vm2, %v2119_v28 }
 0x1fc   : > { %2697 = vmatprep.mubr.bf16.mxu0 %v2270_v1 }
 0x1fd   : > { %v2117_v19 = vpop.permute.xlu0 %2116  ;;  %2641 = vmatmul.mubr.bf16.gmra.mrb[44].mxu1 %v2272_v32  ;;  %v2239_v36 = vld [vmem:[#allocation9 + $0x130] sm:$0xff] }
 0x1fe   : > { %2134 = vst.msk [vmem:[#allocation9 + $0x1c0] sm:$0xff] %vm1999_vm2, %v2117_v19  ;;  %6486 = vmatprep.mubr.msk.bf16.mxu1 %vm624_vm0, %v2261_v35  ;;  %v2269_v41 = vpack.c.bf16 %v2244_v38, %v2239_v36  ;;  %v2255_v42 = vld [vmem:[#allocation9 + $0x210] sm:$0xff]  ;;  %vm3768_vm2 = vcmask 917248  }
 0x200   : > { %2698 = vmatmul.mubr.bf16.gmra.mrb[48].mxu0 %v2269_v41 }
 0x201   : > { %v2250_v45 = vld [vmem:[#allocation9 + $0x1c8] sm:$0xff] }
 0x202   : > { %v2254_v46 = vld [vmem:[#allocation9 + $0x208] sm:$0xff]  ;;  %v2275_v47 = vpack.c.bf16 %v2255_v42, %v2250_v45 }
 0x203   : > { %3127 = vst.msk [vmem:[#allocation9 + $0x208] sm:$0xff] %vm646_vm3, %v3119_v21 }
 0x204   : > { %2705 = vmatprep.mubr.bf16.mxu0 %v2275_v47 }
 0x205   : > { %6487 = vmatmul.mubr.msk.bf16.vlgmr.msra.gmra.mrb[48].mxu1 %vm624_vm0, %v2266_v49  ;;  %v2249_v54 = vld [vmem:[#allocation9 + $0x1c0] sm:$0xff] }
 0x206   : > { %6490 = vmatprep.mubr.msk.bf16.mxu1 %vm624_vm0, %v2271_v52  ;;  %v2274_v56 = vpack.c.bf16 %v2254_v46, %v2249_v54 }
 0x208   : > { %2706 = vmatmul.mubr.bf16.gmra.mrb[52].mxu0 %v2274_v56 }
 0x20d   : > { %6491 = vmatmul.mubr.msk.bf16.gmra.mrb[52].mxu1 %vm624_vm0, %v2276_v57 }
 0x252   : > { %v2821_v44 = vpop.permute.xlu0 %2820 }
 0x253   : > { %2845 = vst.msk [vmem:[#allocation9] sm:$0xff] %vm2844_vm5, %v2821_v44  ;;  %v6805_v44 = vld [vmem:[%s9108_s29 + $0x10] sm:$0xff]  }
 0x25e   : > { %v2870_v37 = vpop.permute.xlu0 %2869 }
 0x25f   : > { %2894 = vst.msk [vmem:[#allocation9] sm:$0xff] %vm2893_vm6, %v2870_v37  ;;  %v6814_v37 = vld [vmem:[%s9108_s29 + $0x78] sm:$0xff]  }
 0x2b8   : > { %v6288_v60 = vpop.f32.mrb[32].mxu1 }
 0x2b9   : > { %v6289_v61 = vpop.f32.mrb[33].mxu1 }
 0x2ba   : > { %v6290_v62 = vadd.f32 %v6289_v61, %v6288_v60  ;;  %v6291_v63 = vpop.f32.mrb[34].mxu1 }
 0x2bb   : > { %v6292_v0 = vpop.f32.mrb[35].mxu1 }
 0x2bc   : > { %v6293_v34 = vadd.f32 %v6292_v0, %v6291_v63  ;;  %v2619_v5 = vadd.f32 %v6290_v62, %v7766_v2 }
 0x2be   : > { %v2622_v16 = vadd.f32 %v6293_v34, %v7766_v2 }
 0x2c0   : > { %v6294_v3 = vpop.f32.mrb[36].mxu1  ;;  %v6328_v4 = vpop.f32.mrb[40].mxu0 }
 0x2c1   : > { %v6295_v53 = vpop.f32.mrb[37].mxu1  ;;  %v6329_v8 = vpop.f32.mrb[41].mxu0 }
 0x2c2   : > { %v6296_v10 = vadd.f32 %v6295_v53, %v6294_v3  ;;  %v6330_v11 = vadd.f32 %v6329_v8, %v6328_v4  ;;  %v6297_v12 = vpop.f32.mrb[38].mxu1  ;;  %v6331_v13 = vpop.f32.mrb[42].mxu0 }
 0x2c3   : > { %v6298_v14 = vpop.f32.mrb[39].mxu1  ;;  %v6332_v15 = vpop.f32.mrb[43].mxu0 }
 0x2c4   : > { %v6299_v6 = vadd.f32 %v6298_v14, %v6297_v12  ;;  %v6333_v17 = vadd.f32 %v6332_v15, %v6331_v13  ;;  %v2684_v18 = vadd.f32 %v6330_v11, %v2619_v5  ;;  %v2627_v25 = vadd.f32 %v6296_v10, %v7766_v2 }
 0x2c6   : > { %v2687_v9 = vadd.f32 %v6333_v17, %v2622_v16  ;;  %v2630_v1 = vadd.f32 %v6299_v6, %v7766_v2 }
 0x2c8   : > { %v6300_v20 = vpop.f32.mrb[40].mxu1  ;;  %v6334_v22 = vpop.f32.mrb[44].mxu0 }
 0x2c9   : > { %v6301_v23 = vpop.f32.mrb[41].mxu1  ;;  %v6335_v24 = vpop.f32.mrb[45].mxu0 }
 0x2ca   : > { %v6302_v7 = vadd.f32 %v6301_v23, %v6300_v20  ;;  %v6336_v26 = vadd.f32 %v6335_v24, %v6334_v22  ;;  %v6303_v28 = vpop.f32.mrb[42].mxu1  ;;  %v6337_v27 = vpop.f32.mrb[46].mxu0 }
 0x2cb   : > { %v6304_v29 = vpop.f32.mrb[43].mxu1  ;;  %v6338_v30 = vpop.f32.mrb[47].mxu0 }
 0x2cc   : > { %v6305_v31 = vadd.f32 %v6304_v29, %v6303_v28  ;;  %v6339_v32 = vadd.f32 %v6338_v30, %v6337_v27  ;;  %v2692_v33 = vadd.f32 %v6336_v26, %v2627_v25  ;;  %v2635_v46 = vadd.f32 %v6302_v7, %v7766_v2  ;;  %v6800_v28 = vld [vmem:[%s9108_s29 + $0x40] sm:$0xff]   ;;  %v6802_v29 = vld [vmem:[%s9108_s29 + $0x48] sm:$0xff]  }
 0x2cd   : > { %v6801_v27 = vld [vmem:[%s9108_s29] sm:$0xff]   ;;  %6360 = vmatprep.subr.bf16.mxu0 %v6800_v28  ;;  %6640 = vmatprep.subr.bf16.mxu1 %v6800_v28 }
 0x2ce   : > { %v2695_v35 = vadd.f32 %v6339_v32, %v2630_v1  ;;  %v2638_v51 = vadd.f32 %v6305_v31, %v7766_v2  ;;  %6361 = vmatpush3.bf16.msra.mxu0 %v6801_v27  ;;  %v6803_v1 = vld [vmem:[%s9108_s29 + $0x8] sm:$0xff]   ;;  %6648 = vmatpush3.bf16.msra.mxu1 %v6801_v27 }
 0x2cf   : > { %6362 = vmatprep.subr.bf16.mxu0 %v6802_v29  ;;  %6641 = vmatprep.subr.bf16.mxu1 %v6802_v29 }
 0x2d0   : > { %v6306_v19 = vpop.f32.mrb[44].mxu1 }
 0x2d1   : > { %v6307_v36 = vpop.f32.mrb[45].mxu1 }
 0x2d2   : > { %v6308_v38 = vadd.f32 %v6307_v36, %v6306_v19  ;;  %v6309_v41 = vpop.f32.mrb[46].mxu1  ;;  %6363 = vmatpush3.bf16.msra.mxu0 %v6803_v1  ;;  %6649 = vmatpush3.bf16.msra.mxu1 %v6803_v1 }
 0x2d3   : > { %v6310_v42 = vpop.f32.mrb[47].mxu1  ;;  %v6340_v21 = vpop.f32.mrb[48].mxu0 }
 0x2d4   : > { %v6311_v43 = vadd.f32 %v6310_v42, %v6309_v41  ;;  %v6341_v45 = vpop.f32.mrb[49].mxu0  ;;  %v2643_v63 = vadd.f32 %v6308_v38, %v7766_v2 }
 0x2d5   : > { %v6342_v47 = vadd.f32 %v6341_v45, %v6340_v21  ;;  %v6343_v48 = vpop.f32.mrb[50].mxu0  ;;  %v6804_v45 = vld [vmem:[%s9108_s29 + $0x50] sm:$0xff]  }
 0x2d6   : > { %v6344_v49 = vpop.f32.mrb[51].mxu0  ;;  %v2646_v4 = vadd.f32 %v6311_v43, %v7766_v2  ;;  %6364 = vmatprep.subr.bf16.mxu0 %v6804_v45  ;;  %6642 = vmatprep.subr.bf16.mxu1 %v6804_v45 }
 0x2d7   : > { %v6345_v52 = vadd.f32 %v6344_v49, %v6343_v48  ;;  %v2700_v54 = vadd.f32 %v6342_v47, %v2635_v46  ;;  %v6806_v46 = vld [vmem:[%s9108_s29 + $0x58] sm:$0xff]   ;;  %6365 = vmatpush3.bf16.msra.mxu0 %v6805_v44  ;;  %6650 = vmatpush3.bf16.msra.mxu1 %v6805_v44  ;;  %v6808_v48 = vld [vmem:[%s9108_s29 + $0x60] sm:$0xff]  }
 0x2d8   : > { %v6488_v56 = vpop.f32.mrb[48].mxu1  ;;  %v6807_v47 = vld [vmem:[%s9108_s29 + $0x18] sm:$0xff]   ;;  %6366 = vmatprep.subr.bf16.mxu0 %v6806_v46  ;;  %6643 = vmatprep.subr.bf16.mxu1 %v6806_v46  ;;  %v6809_v49 = vld [vmem:[%s9108_s29 + $0x20] sm:$0xff]  }
 0x2d9   : > { %v2757_v39 = vadd.f32 %v6488_v56, %v2692_v33  ;;  %v2748_v57 = vpop.f32.mrb[49].mxu1  ;;  %v2703_v58 = vadd.f32 %v6345_v52, %v2638_v51  ;;  %v6810_v51 = vld [vmem:[%s9108_s29 + $0x68] sm:$0xff]   ;;  %v6813_v56 = vld [vmem:[%s9108_s29 + $0x30] sm:$0xff]  }
 0x2da   : > { %v2749_v59 = vadd.f32 %v2748_v57, %v2684_v18  ;;  %v6489_v40 = vpop.f32.mrb[50].mxu1  ;;  %v6811_v52 = vld [vmem:[%s9108_s29 + $0x28] sm:$0xff]  }
 0x2db   : > { %2782 = vst.msk [vmem:[#allocation4 + $0x31] sm:$0xff] %vm646_vm3, %v2757_v39  ;;  %v2760_v50 = vadd.f32 %v6489_v40, %v2695_v35  ;;  %v6346_v55 = vpop.f32.mrb[52].mxu0  ;;  %v2751_v60 = vpop.f32.mrb[51].mxu1  ;;  %6367 = vmatpush3.bf16.msra.mxu0 %v6807_v47  ;;  %6651 = vmatpush3.bf16.msra.mxu1 %v6807_v47  ;;  %v6815_v39 = vld [vmem:[%s9108_s29 + $0x38] sm:$0xff]  }
 0x2dc   : > { %2780 = vst.msk [vmem:[#allocation4 + $0x11] sm:$0xff] %vm646_vm3, %v2749_v59  ;;  %v2752_v61 = vadd.f32 %v2751_v60, %v2687_v9  ;;  %v6347_v62 = vpop.f32.mrb[53].mxu0  ;;  %6368 = vmatprep.subr.bf16.mxu0 %v6808_v48  ;;  %6644 = vmatprep.subr.bf16.mxu1 %v6808_v48  ;;  %v8014_v59 = vld [vmem:[%s9108_s29 + $0x80] sm:$0xff]   ;;  %v8044_v40 = vpop.permute.xlu1 %3046 }
 0x2dd   : > { %2783 = vst.msk [vmem:[#allocation4 + $0x41] sm:$0xff] %vm646_vm3, %v2760_v50  ;;  %v6348_v0 = vadd.f32 %v6347_v62, %v6346_v55  ;;  %v6349_v34 = vpop.f32.mrb[54].mxu0 }
 0x2de   : > { %2781 = vst.msk [vmem:[#allocation4 + $0x21] sm:$0xff] %vm646_vm3, %v2752_v61  ;;  %v6350_v3 = vpop.f32.mrb[55].mxu0 }
 0x2df   : > { %v6351_v53 = vadd.f32 %v6350_v3, %v6349_v34  ;;  %v2708_v8 = vadd.f32 %v6348_v0, %v2643_v63  ;;  %6369 = vmatpush3.bf16.msra.mxu0 %v6809_v49  ;;  %6652 = vmatpush3.bf16.msra.mxu1 %v6809_v49 }
 0x2e0   : > { %v6492_v5 = vpop.f32.mrb[52].mxu1  ;;  %6370 = vmatprep.subr.bf16.mxu0 %v6810_v51  ;;  %6645 = vmatprep.subr.bf16.mxu1 %v6810_v51  ;;  %v8046_v50 = vpop.permute.xlu1 %3094 }
 0x2e1   : > { %v2773_v10 = vadd.f32 %v6492_v5, %v2708_v8  ;;  %v2764_v11 = vpop.f32.mrb[53].mxu1  ;;  %v2711_v12 = vadd.f32 %v6351_v53, %v2646_v4 }
 0x2e2   : > { %v7782_v13 = vld [vmem:[#allocation4 + $0x32] sm:$0xff]  ;;  %v2765_v14 = vadd.f32 %v2764_v11, %v2700_v54  ;;  %v6493_v15 = vpop.f32.mrb[54].mxu1 }
 0x2e3   : > { %v3017_v16 = vld [vmem:[#allocation4 + $0x30] sm:$0xff]  ;;  %3121 = vst.msk [vmem:[#allocation9 + $0x58] sm:$0xff] %vm646_vm3, %v7782_v13  ;;  %2786 = vst.msk [vmem:[#allocation4 + $0x71] sm:$0xff] %vm646_vm3, %v2773_v10  ;;  %v2776_v17 = vadd.f32 %v6493_v15, %v2711_v12  ;;  %v2767_v18 = vpop.f32.mrb[55].mxu1  ;;  %2987 = vrot.lane.b32.xlu0 %v7782_v13, %s6851_s2  ;;  %6371 = vmatpush3.bf16.msra.mxu0 %v6811_v52 }
 0x2e4   : > { %v3065_v6 = vld [vmem:[#allocation4 + $0x31] sm:$0xff]  ;;  %3034 = vrot.lane.b32.xlu1 %v3017_v16, %s6850_s21  ;;  %2799 = vst.msk [vmem:[#allocation9 + $0xd8] sm:$0xff] %vm646_vm3, %v3017_v16  ;;  %v7796_v20 = vld [vmem:[#allocation4 + $0x42] sm:$0xff]  ;;  %2784 = vst.msk [vmem:[#allocation4 + $0x51] sm:$0xff] %vm646_vm3, %v2765_v14  ;;  %v2768_v22 = vadd.f32 %v2767_v18, %v2703_v58  ;;  %6653 = vmatpush3.bf16.msra.mxu1 %v6811_v52 }
 0x2e5   : > { %v7790_v2 = vld [vmem:[#allocation4 + $0x10] sm:$0xff]  ;;  %2961 = vst.msk [vmem:[#allocation9 + $0x98] sm:$0xff] %vm646_vm3, %v3065_v6  ;;  %v7799_v23 = vld [vmem:[#allocation4 + $0x40] sm:$0xff]  ;;  %3122 = vst.msk [vmem:[#allocation9 + $0xa0] sm:$0xff] %vm646_vm3, %v7796_v20 }
 0x2e6   : > { %v7792_v9 = vld [vmem:[#allocation4 + $0x11] sm:$0xff]  ;;  %v7801_v24 = vld [vmem:[#allocation4 + $0x41] sm:$0xff]  ;;  %2797 = vst.msk [vmem:[#allocation9 + $0x48] sm:$0xff] %vm646_vm3, %v7790_v2  ;;  %2787 = vst.msk [vmem:[#allocation4 + $0x81] sm:$0xff] %vm646_vm3, %v2776_v17 }
 0x2e7   : > { %2959 = vst.msk [vmem:[#allocation9 + $0x8] sm:$0xff] %vm646_vm3, %v7792_v9  ;;  %v7809_v25 = vld [vmem:[#allocation4 + $0x22] sm:$0xff]  ;;  %2962 = vst.msk [vmem:[#allocation9 + $0xe0] sm:$0xff] %vm646_vm3, %v7801_v24  ;;  %2922 = vrot.lane.b32.xlu0 %v3017_v16, %s9099_s23  ;;  %v2967_v30 = vld [vmem:[#allocation4 + $0x12] sm:$0xff] }
 0x2e8   : > { %v7812_v7 = vld [vmem:[#allocation4 + $0x20] sm:$0xff]  ;;  %2800 = vst.msk [vmem:[#allocation9 + $0x120] sm:$0xff] %vm646_vm3, %v7799_v23  ;;  %3120 = vst.msk [vmem:[#allocation9 + $0x10] sm:$0xff] %vm646_vm3, %v7809_v25  ;;  %3082 = vrot.lane.b32.xlu1 %v3065_v6, %s9099_s23  ;;  %v6812_v54 = vld [vmem:[%s9108_s29 + $0x70] sm:$0xff]  }
 0x2e9   : > { %v7814_v26 = vld [vmem:[#allocation4 + $0x21] sm:$0xff]  ;;  %2785 = vst.msk [vmem:[#allocation4 + $0x61] sm:$0xff] %vm646_vm3, %v2768_v22  ;;  %2798 = vst.msk [vmem:[#allocation9 + $0x90] sm:$0xff] %vm646_vm3, %v7812_v7  ;;  %6372 = vmatprep.subr.bf16.mxu0 %v6812_v54  ;;  %6646 = vmatprep.subr.bf16.mxu1 %v6812_v54 }
 0x2ea   : > { %2960 = vst.msk [vmem:[#allocation9 + $0x50] sm:$0xff] %vm646_vm3, %v7814_v26  ;;  %v7841_v31 = vld [vmem:[#allocation4 + $0x72] sm:$0xff]  ;;  %6373 = vmatpush3.bf16.msra.mxu0 %v6813_v56  ;;  %6654 = vmatpush3.bf16.msra.mxu1 %v6813_v56  ;;  %v7969_v58 = vld [vmem:[#allocation2] sm:$0xff] }
 0x2eb   : > { %v7843_v32 = vld [vmem:[#allocation4 + $0x71] sm:$0xff]  ;;  %3125 = vst.msk [vmem:[#allocation9 + $0x178] sm:$0xff] %vm646_vm3, %v7841_v31  ;;  %2983 = vrot.lane.b32.xlu0 %v2967_v30, %s6851_s2  ;;  %6374 = vmatprep.subr.bf16.mxu0 %v6814_v37 }
 0x2ec   : > { %v7845_v33 = vld [vmem:[#allocation4 + $0x70] sm:$0xff]  ;;  %2826 = vrot.lane.b32.xlu1 %v3065_v6, %s6851_s2  ;;  %2965 = vst.msk [vmem:[#allocation9 + $0x1b8] sm:$0xff] %vm646_vm3, %v7843_v32  ;;  %6647 = vmatprep.subr.bf16.mxu1 %v6814_v37 }
 0x2ed   : > { %v7849_v35 = vld [vmem:[#allocation4 + $0x52] sm:$0xff]  ;;  %2803 = vst.msk [vmem:[#allocation9 + $0x1f8] sm:$0xff] %vm646_vm3, %v7845_v33  ;;  %v7863_v38 = vld [vmem:[#allocation4 + $0x82] sm:$0xff] }
 0x2ee   : > { %v7853_v19 = vld [vmem:[#allocation4 + $0x50] sm:$0xff]  ;;  %3123 = vst.msk [vmem:[#allocation9 + $0xe8] sm:$0xff] %vm646_vm3, %v7849_v35  ;;  %v7865_v41 = vld [vmem:[#allocation4 + $0x81] sm:$0xff]  ;;  %3126 = vst.msk [vmem:[#allocation9 + $0x1c0] sm:$0xff] %vm646_vm3, %v7863_v38  ;;  %6375 = vmatpush3.bf16.msra.mxu0 %v6815_v39  ;;  %6655 = vmatpush3.bf16.msra.mxu1 %v6815_v39 }
 0x2ef   : > { %v7855_v36 = vld [vmem:[#allocation4 + $0x51] sm:$0xff]  ;;  %2801 = vst.msk [vmem:[#allocation9 + $0x168] sm:$0xff] %vm646_vm3, %v7853_v19  ;;  %2966 = vst.msk [vmem:[#allocation9 + $0x200] sm:$0xff] %vm646_vm3, %v7865_v41  ;;  %2918 = vrot.lane.b32.xlu0 %v7790_v2, %s9099_s23  ;;  %v3022_v57 = vld [vmem:[#allocation4 + $0x80] sm:$0xff]  ;;  %6494 = vmatprep.subr.bf16.mxu1 %v8014_v59 }
 0x2f0   : > { %2963 = vst.msk [vmem:[#allocation9 + $0x128] sm:$0xff] %vm646_vm3, %v7855_v36  ;;  %v7873_v42 = vld [vmem:[#allocation4 + $0x62] sm:$0xff]  ;;  %2875 = vrot.lane.b32.xlu1 %v7782_v13, %s6850_s21  ;;  %v3130_v52 = vld [vmem:[#allocation9 + $0x10] sm:$0xff]  ;;  %v3133_v39 = vld [vmem:[#allocation9 + $0x58] sm:$0xff] }
 0x2f1   : > { %v7875_v21 = vld [vmem:[#allocation4 + $0x61] sm:$0xff]  ;;  %3124 = vst.msk [vmem:[#allocation9 + $0x130] sm:$0xff] %vm646_vm3, %v7873_v42 }
 0x2f2   : > { %v7877_v43 = vld [vmem:[#allocation4 + $0x60] sm:$0xff]  ;;  %2964 = vst.msk [vmem:[#allocation9 + $0x170] sm:$0xff] %vm646_vm3, %v7875_v21 }
 0x2f3   : > { %2802 = vst.msk [vmem:[#allocation9 + $0x1b0] sm:$0xff] %vm646_vm3, %v7877_v43  ;;  %3036 = vrot.lane.b32.xlu0 %v7799_v23, %s6850_s21 }
 0x2f4   : > { %2822 = vrot.lane.b32.xlu1 %v7792_v9, %s6851_s2  ;;  %688 = vst.msk [vmem:[#allocation5 + $0x90] sm:$0xff] %vm668_vm7, %v7969_v58  ;;  %669 = vst.msk [vmem:[#allocation5] sm:$0xff] %vm668_vm7, %v7969_v58 }
 0x2f5   : > { %689 = vst.msk [vmem:[#allocation5 + $0x98] sm:$0x3] %vm670_vm8, %v7969_v58  ;;  %671 = vst.msk [vmem:[#allocation5 + $0x8] sm:$0x3] %vm670_vm8, %v7969_v58 }
 0x2f6   : > { %672 = vst.msk [vmem:[#allocation5 + $0x10] sm:$0xff] %vm668_vm7, %v7969_v58  ;;  %674 = vst.msk [vmem:[#allocation5 + $0x20] sm:$0xff] %vm668_vm7, %v7969_v58 }
 0x2f7   : > { %3084 = vrot.lane.b32.xlu0 %v7801_v24, %s9099_s23  ;;  %673 = vst.msk [vmem:[#allocation5 + $0x18] sm:$0x3] %vm670_vm8, %v7969_v58  ;;  %675 = vst.msk [vmem:[#allocation5 + $0x28] sm:$0x3] %vm670_vm8, %v7969_v58 }
 0x2f8   : > { %2871 = vrot.lane.b32.xlu1 %v2967_v30, %s6850_s21  ;;  %676 = vst.msk [vmem:[#allocation5 + $0x30] sm:$0xff] %vm668_vm7, %v7969_v58  ;;  %678 = vst.msk [vmem:[#allocation5 + $0x40] sm:$0xff] %vm668_vm7, %v7969_v58 }
 0x2f9   : > { %677 = vst.msk [vmem:[#allocation5 + $0x38] sm:$0x3] %vm670_vm8, %v7969_v58  ;;  %679 = vst.msk [vmem:[#allocation5 + $0x48] sm:$0x3] %vm670_vm8, %v7969_v58 }
 0x2fa   : > { %680 = vst.msk [vmem:[#allocation5 + $0x50] sm:$0xff] %vm668_vm7, %v7969_v58  ;;  %682 = vst.msk [vmem:[#allocation5 + $0x60] sm:$0xff] %vm668_vm7, %v7969_v58 }
 0x2fb   : > { %3032 = vrot.lane.b32.xlu0 %v7812_v7, %s6850_s21  ;;  %681 = vst.msk [vmem:[#allocation5 + $0x58] sm:$0x3] %vm670_vm8, %v7969_v58  ;;  %683 = vst.msk [vmem:[#allocation5 + $0x68] sm:$0x3] %vm670_vm8, %v7969_v58 }
 0x2fc   : > { %2989 = vrot.lane.b32.xlu1 %v7796_v20, %s6851_s2  ;;  %684 = vst.msk [vmem:[#allocation5 + $0x70] sm:$0xff] %vm668_vm7, %v7969_v58  ;;  %686 = vst.msk [vmem:[#allocation5 + $0x80] sm:$0xff] %vm668_vm7, %v7969_v58 }
 0x2fd   : > { %685 = vst.msk [vmem:[#allocation5 + $0x78] sm:$0x3] %vm670_vm8, %v7969_v58  ;;  %687 = vst.msk [vmem:[#allocation5 + $0x88] sm:$0x3] %vm670_vm8, %v7969_v58  ;;  %vm712_vm8 = vcmask 31744  }
 0x2fe   : > { %694 = vst.msk [vmem:[#allocation6 + $0x10] sm:$0xff] %vm690_vm12, %v7969_v58  ;;  %691 = vst.msk [vmem:[#allocation6] sm:$0xff] %vm690_vm12, %v7969_v58 }
 0x2ff   : > { %3080 = vrot.lane.b32.xlu0 %v7814_v26, %s9099_s23  ;;  %695 = vst.msk [vmem:[#allocation6 + $0x18] sm:$0x3] %vm692_vm13, %v7969_v58  ;;  %693 = vst.msk [vmem:[#allocation6 + $0x8] sm:$0x3] %vm692_vm13, %v7969_v58 }
 0x300   : > { %2924 = vrot.lane.b32.xlu1 %v7799_v23, %s9099_s23  ;;  %696 = vst.msk [vmem:[#allocation6 + $0x20] sm:$0xff] %vm690_vm12, %v7969_v58  ;;  %698 = vst.msk [vmem:[#allocation6 + $0x30] sm:$0xff] %vm690_vm12, %v7969_v58 }
 0x301   : > { %697 = vst.msk [vmem:[#allocation6 + $0x28] sm:$0x3] %vm692_vm13, %v7969_v58  ;;  %699 = vst.msk [vmem:[#allocation6 + $0x38] sm:$0x3] %vm692_vm13, %v7969_v58 }
 0x302   : > { %700 = vst.msk [vmem:[#allocation6 + $0x40] sm:$0xff] %vm690_vm12, %v7969_v58  ;;  %702 = vst.msk [vmem:[#allocation6 + $0x50] sm:$0xff] %vm690_vm12, %v7969_v58 }
 0x303   : > { %2824 = vrot.lane.b32.xlu0 %v7814_v26, %s6851_s2  ;;  %701 = vst.msk [vmem:[#allocation6 + $0x48] sm:$0x3] %vm692_vm13, %v7969_v58  ;;  %703 = vst.msk [vmem:[#allocation6 + $0x58] sm:$0x3] %vm692_vm13, %v7969_v58 }
 0x304   : > { %2985 = vrot.lane.b32.xlu1 %v7809_v25, %s6851_s2  ;;  %704 = vst.msk [vmem:[#allocation6 + $0x60] sm:$0xff] %vm690_vm12, %v7969_v58  ;;  %706 = vst.msk [vmem:[#allocation6 + $0x70] sm:$0xff] %vm690_vm12, %v7969_v58 }
 0x305   : > { %705 = vst.msk [vmem:[#allocation6 + $0x68] sm:$0x3] %vm692_vm13, %v7969_v58  ;;  %707 = vst.msk [vmem:[#allocation6 + $0x78] sm:$0x3] %vm692_vm13, %v7969_v58 }
 0x306   : > { %708 = vst.msk [vmem:[#allocation6 + $0x80] sm:$0xff] %vm690_vm12, %v7969_v58  ;;  %710 = vst.msk [vmem:[#allocation6 + $0x90] sm:$0xff] %vm690_vm12, %v7969_v58 }
 0x307   : > { %2873 = vrot.lane.b32.xlu0 %v7809_v25, %s6850_s21  ;;  %709 = vst.msk [vmem:[#allocation6 + $0x88] sm:$0x3] %vm692_vm13, %v7969_v58  ;;  %711 = vst.msk [vmem:[#allocation6 + $0x98] sm:$0x3] %vm692_vm13, %v7969_v58  ;;  %vm4382_vm13 = vcmask 523712  }
 0x308   : > { %2920 = vrot.lane.b32.xlu1 %v7812_v7, %s9099_s23 }
 0x30b   : > { %2995 = vrot.lane.b32.xlu0 %v7841_v31, %s6851_s2 }
 0x30c   : > { %2834 = vrot.lane.b32.xlu1 %v7843_v32, %s6851_s2 }
 0x30f   : > { %2930 = vrot.lane.b32.xlu0 %v7845_v33, %s9099_s23 }
 0x310   : > { %2883 = vrot.lane.b32.xlu1 %v7841_v31, %s6850_s21 }
 0x313   : > { %2991 = vrot.lane.b32.xlu0 %v7849_v35, %s6851_s2 }
 0x314   : > { %3038 = vrot.lane.b32.xlu1 %v7853_v19, %s6850_s21 }
 0x317   : > { %3044 = vrot.lane.b32.xlu0 %v3022_v57, %s6850_s21 }
 0x318   : > { %3086 = vrot.lane.b32.xlu1 %v7855_v36, %s9099_s23 }
 0x31b   : > { %3092 = vrot.lane.b32.xlu0 %v7865_v41, %s9099_s23 }
 0x31c   : > { %2997 = vrot.lane.b32.xlu1 %v7863_v38, %s6851_s2 }
 0x31f   : > { %2832 = vrot.lane.b32.xlu0 %v7875_v21, %s6851_s2 }
 0x320   : > { %2932 = vrot.lane.b32.xlu1 %v3022_v57, %s9099_s23  ;;  %v6817_v57 = vld [vmem:[%s9108_s29 + $0x88] sm:$0xff]  }
 0x323   : > { %2881 = vrot.lane.b32.xlu0 %v7873_v42, %s6850_s21 }
 0x324   : > { %2830 = vrot.lane.b32.xlu1 %v7855_v36, %s6851_s2 }
 0x327   : > { %2828 = vrot.lane.b32.xlu0 %v7801_v24, %s6851_s2 }
 0x328   : > { %3042 = vrot.lane.b32.xlu1 %v7845_v33, %s6850_s21 }
 0x32b   : > { %2877 = vrot.lane.b32.xlu0 %v7796_v20, %s6850_s21 }
 0x32c   : > { %2879 = vrot.lane.b32.xlu1 %v7849_v35, %s6850_s21 }
 0x32f   : > { %3040 = vrot.lane.b32.xlu0 %v7877_v43, %s6850_s21 }
 0x330   : > { %3090 = vrot.lane.b32.xlu1 %v7843_v32, %s9099_s23 }
 0x333   : > { %3088 = vrot.lane.b32.xlu0 %v7875_v21, %s9099_s23 }
 0x334   : > { %2993 = vrot.lane.b32.xlu1 %v7873_v42, %s6851_s2 }
 0x337   : > { %2926 = vrot.lane.b32.xlu0 %v7853_v19, %s9099_s23 }
 0x338   : > { %2928 = vrot.lane.b32.xlu1 %v7877_v43, %s9099_s23  ;;  %v3833_v43 = vld [vmem:[#allocation5 + $0x92] sm:$0xff] }
 0x355   : > { %v2988_v60 = vpop.permute.xlu0 %2987 }
 0x356   : > { %v3035_v55 = vpop.permute.xlu1 %3034  ;;  %3009 = vst.msk [vmem:[#allocation9 + $0x98] sm:$0xff] %vm2844_vm5, %v2988_v60  ;;  %v3139_v60 = vld [vmem:[#allocation9 + $0xe8] sm:$0xff] }
 0x359   : > { %v2923_v62 = vpop.permute.xlu0 %2922 }
 0x35a   : > { %v3083_v61 = vpop.permute.xlu1 %3082 }
 0x35d   : > { %v2984_v0 = vpop.permute.xlu0 %2983 }
 0x35e   : > { %v2827_v63 = vpop.permute.xlu1 %2826  ;;  %3007 = vst.msk [vmem:[#allocation9 + $0x8] sm:$0xff] %vm2844_vm5, %v2984_v0  ;;  %v3136_v0 = vld [vmem:[#allocation9 + $0xa0] sm:$0xff] }
 0x35f   : > { %2848 = vst.msk [vmem:[#allocation9 + $0xd8] sm:$0xff] %vm2844_vm5, %v2827_v63  ;;  %v3142_v63 = vld [vmem:[#allocation9 + $0x130] sm:$0xff] }
 0x361   : > { %v2919_v3 = vpop.permute.xlu0 %2918 }
 0x362   : > { %v2876_v34 = vpop.permute.xlu1 %2875  ;;  %2943 = vst.msk [vmem:[#allocation9] sm:$0xff] %vm2942_vm9, %v2919_v3  ;;  %v3145_v3 = vld [vmem:[#allocation9 + $0x178] sm:$0xff] }
 0x363   : > { %2897 = vst.msk [vmem:[#allocation9 + $0xd8] sm:$0xff] %vm2893_vm6, %v2876_v34  ;;  %v3157_v34 = vpack.c.bf16 %v3139_v60, %v3136_v0 }
 0x365   : > { %v3037_v4 = vpop.permute.xlu0 %3036 }
 0x366   : > { %v2823_v53 = vpop.permute.xlu1 %2822  ;;  %3058 = vst.msk [vmem:[#allocation9 + $0x98] sm:$0xff] %vm2893_vm6, %v3037_v4 }
 0x367   : > { %2846 = vst.msk [vmem:[#allocation9 + $0x48] sm:$0xff] %vm2844_vm5, %v2823_v53 }
 0x369   : > { %v3085_v8 = vpop.permute.xlu0 %3084  ;;  %v3128_v24 = vld [vmem:[#allocation9] sm:$0xff] }
 0x36a   : > { %v2872_v5 = vpop.permute.xlu1 %2871  ;;  %3106 = vst.msk [vmem:[#allocation9 + $0x98] sm:$0xff] %vm2942_vm9, %v3085_v8  ;;  %v3148_v8 = vld [vmem:[#allocation9 + $0x1c0] sm:$0xff] }
 0x36b   : > { %2895 = vst.msk [vmem:[#allocation9 + $0x48] sm:$0xff] %vm2893_vm6, %v2872_v5  ;;  %v3151_v5 = vld [vmem:[#allocation9 + $0x208] sm:$0xff] }
 0x36d   : > { %v3033_v10 = vpop.permute.xlu0 %3032 }
 0x36e   : > { %v2990_v11 = vpop.permute.xlu1 %2989  ;;  %3056 = vst.msk [vmem:[#allocation9 + $0x8] sm:$0xff] %vm2893_vm6, %v3033_v10  ;;  %v3163_v10 = vpack.c.bf16 %v3151_v5, %v3148_v8 }
 0x36f   : > { %3010 = vst.msk [vmem:[#allocation9 + $0xe0] sm:$0xff] %vm2844_vm5, %v2990_v11 }
 0x371   : > { %v3081_v12 = vpop.permute.xlu0 %3080  ;;  %v3135_v35 = vld [vmem:[#allocation9 + $0x98] sm:$0xff] }
 0x372   : > { %v2925_v13 = vpop.permute.xlu1 %2924  ;;  %3104 = vst.msk [vmem:[#allocation9 + $0x8] sm:$0xff] %vm2942_vm9, %v3081_v12 }
 0x373   : > { %2946 = vst.msk [vmem:[#allocation9 + $0xd8] sm:$0xff] %vm2942_vm9, %v2925_v13 }
 0x375   : > { %v2825_v14 = vpop.permute.xlu0 %2824 }
 0x376   : > { %v2986_v15 = vpop.permute.xlu1 %2985  ;;  %2847 = vst.msk [vmem:[#allocation9 + $0x90] sm:$0xff] %vm2844_vm5, %v2825_v14 }
 0x377   : > { %3008 = vst.msk [vmem:[#allocation9 + $0x50] sm:$0xff] %vm2844_vm5, %v2986_v15 }
 0x378   : > { %3057 = vst.msk [vmem:[#allocation9 + $0x50] sm:$0xff] %vm2893_vm6, %v3035_v55 }
 0x379   : > { %3105 = vst.msk [vmem:[#allocation9 + $0x50] sm:$0xff] %vm2942_vm9, %v3083_v61  ;;  %v2874_v16 = vpop.permute.xlu0 %2873  ;;  %v3129_v2 = vld [vmem:[#allocation9 + $0x8] sm:$0xff] }
 0x37a   : > { %v2921_v6 = vpop.permute.xlu1 %2920  ;;  %2896 = vst.msk [vmem:[#allocation9 + $0x90] sm:$0xff] %vm2893_vm6, %v2874_v16  ;;  %v3137_v38 = vld [vmem:[#allocation9 + $0xd8] sm:$0xff] }
 0x37b   : > { %2944 = vst.msk [vmem:[#allocation9 + $0x48] sm:$0xff] %vm2942_vm9, %v2921_v6  ;;  %2945 = vst.msk [vmem:[#allocation9 + $0x90] sm:$0xff] %vm2942_vm9, %v2923_v62  ;;  %v3482_v6 = vld [vmem:[#allocation5 + $0x1] sm:$0xff] }
 0x37c   : > { %3498 = vrot.lane.b32.xlu0 %v3482_v6, %s6853_s27 }
 0x37d   : > { %v2996_v17 = vpop.permute.xlu0 %2995 }
 0x37e   : > { %v2835_v18 = vpop.permute.xlu1 %2834  ;;  %3013 = vst.msk [vmem:[#allocation9 + $0x1b8] sm:$0xff] %vm2844_vm5, %v2996_v17  ;;  %v3531_v17 = vld [vmem:[#allocation5 + $0x2] sm:$0xff] }
 0x37f   : > { %2852 = vst.msk [vmem:[#allocation9 + $0x1f8] sm:$0xff] %vm2844_vm5, %v2835_v18 }
 0x380   : > { %v3132_v9 = vld [vmem:[#allocation9 + $0x50] sm:$0xff]  ;;  %3547 = vrot.lane.b32.xlu0 %v3531_v17, %s6851_s2  ;;  %v6818_v17 = vld [vmem:[%s9080_s4] sm:$0xff]  }
 0x381   : > { %v3153_v20 = vpack.c.bf16 %v3132_v9, %v3129_v2  ;;  %v2931_v22 = vpop.permute.xlu0 %2930 }
 0x382   : > { %v2884_v23 = vpop.permute.xlu1 %2883  ;;  %v3131_v25 = vld [vmem:[#allocation9 + $0x48] sm:$0xff]  ;;  %v3134_v31 = vld [vmem:[#allocation9 + $0x90] sm:$0xff] }
 0x383   : > { %2901 = vst.msk [vmem:[#allocation9 + $0x1f8] sm:$0xff] %vm2893_vm6, %v2884_v23  ;;  %3359 = vmatprep.mubr.bf16.mxu0 %v3153_v20  ;;  %v3152_v7 = vpack.c.bf16 %v3131_v25, %v3128_v24  ;;  %v3155_v41 = vpack.c.bf16 %v3137_v38, %v3134_v31 }
 0x385   : > { %3360 = vmatmul.mubr.bf16.vlgmr.msra.gmra.mrb[56].mxu0 %v3152_v7  ;;  %v2992_v26 = vpop.permute.xlu0 %2991 }
 0x386   : > { %v3039_v28 = vpop.permute.xlu1 %3038  ;;  %3011 = vst.msk [vmem:[#allocation9 + $0x128] sm:$0xff] %vm2844_vm5, %v2992_v26 }
 0x387   : > { %3059 = vst.msk [vmem:[#allocation9 + $0xe0] sm:$0xff] %vm2893_vm6, %v3039_v28 }
 0x389   : > { %v3045_v27 = vpop.permute.xlu0 %3044 }
 0x38a   : > { %v3087_v29 = vpop.permute.xlu1 %3086  ;;  %3062 = vst.msk [vmem:[#allocation9 + $0x1b8] sm:$0xff] %vm2893_vm6, %v3045_v27 }
 0x38b   : > { %3107 = vst.msk [vmem:[#allocation9 + $0xe0] sm:$0xff] %vm2942_vm9, %v3087_v29  ;;  %v3466_v29 = vld [vmem:[#allocation5] sm:$0xff] }
 0x38c   : > { %3474 = vst.msk [vmem:[#allocation9] sm:$0xff] %vm668_vm7, %v3466_v29 }
 0x38d   : > { %v3093_v30 = vpop.permute.xlu0 %3092 }
 0x38e   : > { %v2998_v1 = vpop.permute.xlu1 %2997  ;;  %3110 = vst.msk [vmem:[#allocation9 + $0x1b8] sm:$0xff] %vm2942_vm9, %v3093_v30 }
 0x38f   : > { %3014 = vst.msk [vmem:[#allocation9 + $0x200] sm:$0xff] %vm2844_vm5, %v2998_v1 }
 0x390   : > { %3063 = vst.msk [vmem:[#allocation9 + $0x200] sm:$0xff] %vm2893_vm6, %v8044_v40  ;;  %v3154_v40 = vpack.c.bf16 %v3133_v39, %v3130_v52 }
 0x391   : > { %3111 = vst.msk [vmem:[#allocation9 + $0x200] sm:$0xff] %vm2942_vm9, %v8046_v50  ;;  %v2833_v32 = vpop.permute.xlu0 %2832 }
 0x392   : > { %v2933_v33 = vpop.permute.xlu1 %2932  ;;  %v3138_v19 = vld [vmem:[#allocation9 + $0xe0] sm:$0xff]  ;;  %2851 = vst.msk [vmem:[#allocation9 + $0x1b0] sm:$0xff] %vm2844_vm5, %v2833_v32 }
 0x393   : > { %2950 = vst.msk [vmem:[#allocation9 + $0x1f8] sm:$0xff] %vm2942_vm9, %v2933_v33  ;;  %v3156_v36 = vpack.c.bf16 %v3138_v19, %v3135_v35 }
 0x395   : > { %3367 = vmatprep.mubr.bf16.mxu0 %v3156_v36  ;;  %v2882_v42 = vpop.permute.xlu0 %2881  ;;  %v3147_v45 = vld [vmem:[#allocation9 + $0x1b8] sm:$0xff]  ;;  %v6034_v36 = vld [vmem:[%s9086_s10] ss:$0 sm:$0xff] }
 0x396   : > { %v2831_v21 = vpop.permute.xlu1 %2830  ;;  %3368 = vmatmul.mubr.bf16.gmra.mrb[60].mxu0 %v3155_v41  ;;  %2900 = vst.msk [vmem:[#allocation9 + $0x1b0] sm:$0xff] %vm2893_vm6, %v2882_v42 }
 0x397   : > { %2850 = vst.msk [vmem:[#allocation9 + $0x168] sm:$0xff] %vm2844_vm5, %v2831_v21 }
 0x398   : > { %2949 = vst.msk [vmem:[#allocation9 + $0x1b0] sm:$0xff] %vm2942_vm9, %v2931_v22  ;;  %v3150_v44 = vld [vmem:[#allocation9 + $0x200] sm:$0xff] }
 0x399   : > { %v3162_v46 = vpack.c.bf16 %v3150_v44, %v3147_v45  ;;  %3841 = vst.msk [vmem:[#allocation9 + $0x200] sm:$0xff] %vm668_vm7, %v3833_v43  ;;  %v2829_v47 = vpop.permute.xlu0 %2828 }
 0x39a   : > { %v3043_v48 = vpop.permute.xlu1 %3042  ;;  %2849 = vst.msk [vmem:[#allocation9 + $0x120] sm:$0xff] %vm2844_vm5, %v2829_v47  ;;  %v3149_v56 = vld [vmem:[#allocation9 + $0x1f8] sm:$0xff] }
 0x39b   : > { %3383 = vmatprep.mubr.bf16.mxu1 %v3162_v46 }
 0x39d   : > { %v2878_v49 = vpop.permute.xlu0 %2877 }
 0x39e   : > { %v2880_v51 = vpop.permute.xlu1 %2879  ;;  %2898 = vst.msk [vmem:[#allocation9 + $0x120] sm:$0xff] %vm2893_vm6, %v2878_v49 }
 0x39f   : > { %2899 = vst.msk [vmem:[#allocation9 + $0x168] sm:$0xff] %vm2893_vm6, %v2880_v51  ;;  %v3146_v54 = vld [vmem:[#allocation9 + $0x1b0] sm:$0xff] }
 0x3a0   : > { %v3161_v37 = vpack.c.bf16 %v3149_v56, %v3146_v54 }
 0x3a1   : > { %v3041_v50 = vpop.permute.xlu0 %3040 }
 0x3a2   : > { %3384 = vmatmul.mubr.bf16.vlgmr.msra.gmra.mrb[56].mxu1 %v3161_v37  ;;  %v3091_v55 = vpop.permute.xlu1 %3090  ;;  %3060 = vst.msk [vmem:[#allocation9 + $0x128] sm:$0xff] %vm2893_vm6, %v3041_v50 }
 0x3a3   : > { %6495 = vmatpush3.bf16.msra.mxu1 %v8014_v59  ;;  %6498 = vmatprep.mubr.msk.bf16.mxu1 %vm646_vm3, %v3154_v40  ;;  %v3160_v59 = vpack.c.bf16 %v3145_v3, %v3142_v63 }
 0x3a4   : > { %6496 = vmatprep.subr.bf16.mxu1 %v6817_v57 }
 0x3a5   : > { %v3089_v61 = vpop.permute.xlu0 %3088 }
 0x3a6   : > { %v2994_v62 = vpop.permute.xlu1 %2993  ;;  %3108 = vst.msk [vmem:[#allocation9 + $0x128] sm:$0xff] %vm2942_vm9, %v3089_v61 }
 0x3a7   : > { %3012 = vst.msk [vmem:[#allocation9 + $0x170] sm:$0xff] %vm2844_vm5, %v2994_v62  ;;  %6497 = vmatpush3.bf16.msra.mxu1 %v6817_v57  ;;  %vm4136_vm5 = vcmask 195712  }
 0x3a8   : > { %3061 = vst.msk [vmem:[#allocation9 + $0x170] sm:$0xff] %vm2893_vm6, %v3043_v48  ;;  %vm4508_vm6 = vcmask 1043456  }
 0x3a9   : > { %3109 = vst.msk [vmem:[#allocation9 + $0x170] sm:$0xff] %vm2942_vm9, %v3091_v55  ;;  %v2927_v4 = vpop.permute.xlu0 %2926 }
 0x3aa   : > { %6499 = vmatmul.mubr.msk.bf16.vlgmr.msra.gmra.mrb[60].mxu1 %vm646_vm3, %v3157_v34  ;;  %v2929_v53 = vpop.permute.xlu1 %2928  ;;  %2947 = vst.msk [vmem:[#allocation9 + $0x120] sm:$0xff] %vm2942_vm9, %v2927_v4 }
 0x3ab   : > { %2948 = vst.msk [vmem:[#allocation9 + $0x168] sm:$0xff] %vm2942_vm9, %v2929_v53  ;;  %6502 = vmatprep.mubr.msk.bf16.mxu1 %vm646_vm3, %v3160_v59  ;;  %vm714_vm9 = vcmask 25600  }
 0x3ad   : > { %v3141_v11 = vld [vmem:[#allocation9 + $0x128] sm:$0xff] }
 0x3b0   : > { %v3144_v12 = vld [vmem:[#allocation9 + $0x170] sm:$0xff] }
 0x3b1   : > { %v3159_v13 = vpack.c.bf16 %v3144_v12, %v3141_v11  ;;  %v3140_v14 = vld [vmem:[#allocation9 + $0x120] sm:$0xff] }
 0x3b2   : > { %6503 = vmatmul.mubr.msk.bf16.gmra.mrb[64].mxu1 %vm646_vm3, %v3163_v10  ;;  %v3143_v15 = vld [vmem:[#allocation9 + $0x168] sm:$0xff]  ;;  %vm3817_vm3 = vcmask 1048448  }
 0x3b3   : > { %3375 = vmatprep.mubr.bf16.mxu0 %v3159_v13  ;;  %v3158_v16 = vpack.c.bf16 %v3143_v15, %v3140_v14 }
 0x3b5   : > { %3376 = vmatmul.mubr.bf16.gmra.mrb[64].mxu0 %v3158_v16 }
 0x3ee   : > { %v3499_v35 = vpop.permute.xlu0 %3498 }
 0x3ef   : > { %3523 = vst.msk [vmem:[#allocation9] sm:$0xff] %vm3522_vm10, %v3499_v35  ;;  %v6825_v35 = vld [vmem:[%s9080_s4 + $0x38] sm:$0xff]  }
 0x3f2   : > { %v3548_v41 = vpop.permute.xlu0 %3547 }
 0x3f3   : > { %3572 = vst.msk [vmem:[#allocation9] sm:$0xff] %vm3571_vm11, %v3548_v41 }
 0x458   : > { %v6376_v18 = vpop.f32.mrb[56].mxu0 }
 0x459   : > { %v6377_v2 = vpop.f32.mrb[57].mxu0 }
 0x45a   : > { %v6378_v9 = vadd.f32 %v6377_v2, %v6376_v18  ;;  %v6379_v20 = vpop.f32.mrb[58].mxu0  ;;  %v6857_v2 = vmov 0  }
 0x45b   : > { %v6380_v22 = vpop.f32.mrb[59].mxu0  ;;  %3957 = vmatprep.subr.bf16.mxu1 %v6857_v2  ;;  %6690 = vset.pattern.permute.xlu0 %v6857_v2 }
 0x45c   : > { %v6381_v23 = vadd.f32 %v6380_v22, %v6379_v20  ;;  %v3362_v21 = vadd.f32 %v6378_v9, %v6034_v36  ;;  %3958 = vmatpush1.bf16.msra.mxu1 %v6818_v17  ;;  %6691 = vset.pattern.permute.xlu1 %v6857_v2 }
 0x45d   : > { %3959 = vmatprep.subr.bf16.mxu1 %v6857_v2 }
 0x45e   : > { %v3365_v48 = vadd.f32 %v6381_v23, %v6034_v36  ;;  %v6819_v23 = vld [vmem:[%s9080_s4 + $0x8] sm:$0xff]  }
 0x460   : > { %3960 = vmatpush1.bf16.msra.mxu1 %v6819_v23 }
 0x461   : > { %3961 = vmatprep.subr.bf16.mxu1 %v6857_v2 }
 0x469   : > { %v6382_v24 = vpop.f32.mrb[60].mxu0 }
 0x46a   : > { %v6383_v25 = vpop.f32.mrb[61].mxu0 }
 0x46b   : > { %v6384_v7 = vadd.f32 %v6383_v25, %v6382_v24  ;;  %v6385_v26 = vpop.f32.mrb[62].mxu0 }
 0x46c   : > { %v6386_v28 = vpop.f32.mrb[63].mxu0 }
 0x46d   : > { %v6387_v27 = vadd.f32 %v6386_v28, %v6385_v26  ;;  %v3370_v38 = vadd.f32 %v6384_v7, %v6034_v36  ;;  %v6820_v26 = vld [vmem:[%s9080_s4 + $0x10] sm:$0xff]  }
 0x46e   : > { %3962 = vmatpush1.bf16.msra.mxu1 %v6820_v26 }
 0x46f   : > { %v3373_v44 = vadd.f32 %v6387_v27, %v6034_v36  ;;  %3963 = vmatprep.subr.bf16.mxu1 %v6857_v2 }
 0x475   : > { %v6394_v30 = vpop.f32.mrb[56].mxu1 }
 0x476   : > { %v6395_v1 = vpop.f32.mrb[57].mxu1 }
 0x477   : > { %v6396_v31 = vadd.f32 %v6395_v1, %v6394_v30  ;;  %v6397_v32 = vpop.f32.mrb[58].mxu1  ;;  %v6821_v30 = vld [vmem:[%s9080_s4 + $0x18] sm:$0xff]   ;;  %v6822_v1 = vld [vmem:[%s9080_s4 + $0x20] sm:$0xff]  }
 0x478   : > { %v6398_v33 = vpop.f32.mrb[59].mxu1  ;;  %3964 = vmatpush1.bf16.msra.mxu1 %v6821_v30 }
 0x479   : > { %v6399_v19 = vadd.f32 %v6398_v33, %v6397_v32  ;;  %v3386_v54 = vadd.f32 %v6396_v31, %v6034_v36  ;;  %3965 = vmatprep.subr.bf16.mxu1 %v6857_v2  ;;  %v6823_v32 = vld [vmem:[%s9080_s4 + $0x28] sm:$0xff]   ;;  %v6824_v33 = vld [vmem:[%s9080_s4 + $0x30] sm:$0xff]  }
 0x47b   : > { %v3389_v57 = vadd.f32 %v6399_v19, %v6034_v36 }
 0x47c   : > { %3966 = vmatpush1.bf16.msra.mxu1 %v6822_v1 }
 0x47d   : > { %v6500_v42 = vpop.f32.mrb[60].mxu1  ;;  %3967 = vmatprep.subr.bf16.mxu1 %v6857_v2 }
 0x47e   : > { %v3435_v43 = vadd.f32 %v6500_v42, %v3370_v38  ;;  %v3426_v45 = vpop.f32.mrb[61].mxu1 }
 0x47f   : > { %v3427_v46 = vadd.f32 %v3426_v45, %v3362_v21  ;;  %v6501_v47 = vpop.f32.mrb[62].mxu1  ;;  %v3735_v45 = vld [vmem:[#allocation5 + $0x90] sm:$0xff] }
 0x480   : > { %3460 = vst.msk [vmem:[#allocation5 + $0x31] sm:$0xff] %vm668_vm7, %v3435_v43  ;;  %v3438_v49 = vadd.f32 %v6501_v47, %v3373_v44  ;;  %v3429_v51 = vpop.f32.mrb[63].mxu1  ;;  %3968 = vmatpush1.bf16.msra.mxu1 %v6823_v32  ;;  %v3784_v44 = vld [vmem:[#allocation5 + $0x91] sm:$0xff] }
 0x481   : > { %3458 = vst.msk [vmem:[#allocation5 + $0x11] sm:$0xff] %vm668_vm7, %v3427_v46  ;;  %v3430_v52 = vadd.f32 %v3429_v51, %v3365_v48  ;;  %3969 = vmatprep.subr.bf16.mxu1 %v6857_v2 }
 0x482   : > { %3461 = vst.msk [vmem:[#allocation5 + $0x41] sm:$0xff] %vm668_vm7, %v3438_v49 }
 0x483   : > { %3459 = vst.msk [vmem:[#allocation5 + $0x21] sm:$0xff] %vm668_vm7, %v3430_v52 }
 0x484   : > { %3970 = vmatpush1.bf16.msra.mxu1 %v6824_v33 }
 0x485   : > { %v6504_v56 = vpop.f32.mrb[64].mxu1  ;;  %3971 = vmatprep.subr.bf16.mxu1 %v6857_v2 }
 0x486   : > { %v3451_v37 = vadd.f32 %v6504_v56, %v3386_v54  ;;  %v3442_v39 = vpop.f32.mrb[65].mxu1 }
 0x487   : > { %v3827_v40 = vld [vmem:[#allocation5 + $0x32] sm:$0xff]  ;;  %v6505_v50 = vpop.f32.mrb[66].mxu1 }
 0x488   : > { %v3729_v55 = vld [vmem:[#allocation5 + $0x30] sm:$0xff]  ;;  %3835 = vst.msk [vmem:[#allocation9 + $0x50] sm:$0xff] %vm668_vm7, %v3827_v40  ;;  %3464 = vst.msk [vmem:[#allocation5 + $0x71] sm:$0xff] %vm668_vm7, %v3451_v37  ;;  %v3454_v60 = vadd.f32 %v6505_v50, %v3389_v57  ;;  %v6388_v61 = vpop.f32.mrb[64].mxu0  ;;  %v3445_v62 = vpop.f32.mrb[67].mxu1  ;;  %3972 = vmatpush1.bf16.msra.mxu1 %v6825_v35 }
 0x489   : > { %3746 = vrot.lane.b32.xlu1 %v3729_v55, %s9099_s23  ;;  %3600 = vrot.lane.b32.xlu0 %v3729_v55, %s6854_s0  ;;  %v3580_v63 = vld [vmem:[#allocation5 + $0x10] sm:$0xff]  ;;  %3477 = vst.msk [vmem:[#allocation9 + $0xd8] sm:$0xff] %vm668_vm7, %v3729_v55  ;;  %v8122_v0 = vld [vmem:[#allocation5 + $0x42] sm:$0xff]  ;;  %v6389_v34 = vpop.f32.mrb[65].mxu0 }
 0x48a   : > { %v8124_v3 = vld [vmem:[#allocation5 + $0x40] sm:$0xff]  ;;  %3475 = vst.msk [vmem:[#allocation9 + $0x48] sm:$0xff] %vm668_vm7, %v3580_v63  ;;  %3836 = vst.msk [vmem:[#allocation9 + $0x98] sm:$0xff] %vm668_vm7, %v8122_v0  ;;  %v6390_v4 = vadd.f32 %v6389_v34, %v6388_v61  ;;  %v6391_v53 = vpop.f32.mrb[66].mxu0  ;;  %v3778_v10 = vld [vmem:[#allocation5 + $0x31] sm:$0xff]  ;;  %3973 = vmatprep.subr.bf16.mxu1 %v6857_v2 }
 0x48b   : > { %v8129_v59 = vld [vmem:[#allocation5 + $0x22] sm:$0xff]  ;;  %3465 = vst.msk [vmem:[#allocation5 + $0x81] sm:$0xff] %vm668_vm7, %v3454_v60  ;;  %3478 = vst.msk [vmem:[#allocation9 + $0x120] sm:$0xff] %vm668_vm7, %v8124_v3  ;;  %v6392_v5 = vpop.f32.mrb[67].mxu0  ;;  %v3629_v24 = vld [vmem:[#allocation5 + $0x11] sm:$0xff] }
 0x48c   : > { %v8132_v8 = vld [vmem:[#allocation5 + $0x20] sm:$0xff]  ;;  %3834 = vst.msk [vmem:[#allocation9 + $0x8] sm:$0xff] %vm668_vm7, %v8129_v59  ;;  %v3378_v11 = vadd.f32 %v6390_v4, %v6034_v36  ;;  %v6393_v12 = vadd.f32 %v6392_v5, %v6391_v53  ;;  %v3678_v29 = vld [vmem:[#allocation5 + $0x12] sm:$0xff] }
 0x48d   : > { %3476 = vst.msk [vmem:[#allocation9 + $0x90] sm:$0xff] %vm668_vm7, %v8132_v8  ;;  %3795 = vrot.lane.b32.xlu1 %v3778_v10, %s6855_s20  ;;  %3649 = vrot.lane.b32.xlu0 %v3778_v10, %s6850_s21  ;;  %v3779_v31 = vld [vmem:[#allocation5 + $0x41] sm:$0xff] }
 0x48e   : > { %v3443_v13 = vadd.f32 %v3442_v39, %v3378_v11  ;;  %v3381_v14 = vadd.f32 %v6393_v12, %v6034_v36  ;;  %v3630_v19 = vld [vmem:[#allocation5 + $0x21] sm:$0xff] }
 0x48f   : > { %v8142_v15 = vld [vmem:[#allocation5 + $0x72] sm:$0xff]  ;;  %v6826_v36 = vld [vmem:[%s9080_s4 + $0x40] sm:$0xff]  }
 0x490   : > { %v8144_v16 = vld [vmem:[#allocation5 + $0x70] sm:$0xff]  ;;  %3839 = vst.msk [vmem:[#allocation9 + $0x170] sm:$0xff] %vm668_vm7, %v8142_v15  ;;  %3462 = vst.msk [vmem:[#allocation5 + $0x51] sm:$0xff] %vm668_vm7, %v3443_v13  ;;  %v3446_v6 = vadd.f32 %v3445_v62, %v3381_v14  ;;  %3974 = vmatpush1.bf16.msra.mxu1 %v6826_v36 }
 0x491   : > { %3698 = vrot.lane.b32.xlu0 %v3827_v40, %s6856_s26  ;;  %3504 = vrot.lane.b32.xlu1 %v3778_v10, %s6853_s27  ;;  %3481 = vst.msk [vmem:[#allocation9 + $0x1f8] sm:$0xff] %vm668_vm7, %v8144_v16  ;;  %v3845_v20 = vld [vmem:[#allocation9 + $0x50] sm:$0xff] }
 0x492   : > { %v8156_v18 = vld [vmem:[#allocation5 + $0x82] sm:$0xff]  ;;  %3463 = vst.msk [vmem:[#allocation5 + $0x61] sm:$0xff] %vm668_vm7, %v3446_v6  ;;  %v3782_v38 = vld [vmem:[#allocation5 + $0x71] sm:$0xff] }
 0x493   : > { %3840 = vst.msk [vmem:[#allocation9 + $0x1b8] sm:$0xff] %vm668_vm7, %v8156_v18  ;;  %v3843_v9 = vld [vmem:[#allocation9 + $0x8] sm:$0xff]  ;;  %v3587_v42 = vld [vmem:[#allocation5 + $0x80] sm:$0xff] }
 0x494   : > { %v3859_v22 = vpack.c.bf16 %v3845_v20, %v3843_v9  ;;  %v3636_v43 = vld [vmem:[#allocation5 + $0x81] sm:$0xff] }
 0x495   : > { %3553 = vrot.lane.b32.xlu1 %v3827_v40, %s6851_s2  ;;  %3596 = vrot.lane.b32.xlu0 %v3580_v63, %s6854_s0 }
 0x496   : > { %6067 = vmatprep.mubr.msk.bf16.mxu1 %vm668_vm7, %v3859_v22 }
 0x497   : > { %v3731_v25 = vld [vmem:[#allocation5 + $0x50] sm:$0xff] }
 0x498   : > { %v8167_v7 = vld [vmem:[#allocation5 + $0x52] sm:$0xff]  ;;  %3479 = vst.msk [vmem:[#allocation9 + $0x168] sm:$0xff] %vm668_vm7, %v3731_v25 }
 0x499   : > { %3645 = vrot.lane.b32.xlu0 %v3629_v24, %s6850_s21  ;;  %3500 = vrot.lane.b32.xlu1 %v3629_v24, %s6853_s27  ;;  %3837 = vst.msk [vmem:[#allocation9 + $0xe0] sm:$0xff] %vm668_vm7, %v8167_v7  ;;  %v8177_v28 = vld [vmem:[#allocation5 + $0x60] sm:$0xff]  ;;  %v3780_v41 = vld [vmem:[#allocation5 + $0x51] sm:$0xff] }
 0x49a   : > { %v8179_v27 = vld [vmem:[#allocation5 + $0x62] sm:$0xff]  ;;  %3480 = vst.msk [vmem:[#allocation9 + $0x1b0] sm:$0xff] %vm668_vm7, %v8177_v28  ;;  %v3853_v1 = vld [vmem:[#allocation9 + $0x170] sm:$0xff] }
 0x49b   : > { %3838 = vst.msk [vmem:[#allocation9 + $0x128] sm:$0xff] %vm668_vm7, %v8179_v27  ;;  %v3781_v21 = vld [vmem:[#allocation5 + $0x61] sm:$0xff] }
 0x49d   : > { %3694 = vrot.lane.b32.xlu0 %v3678_v29, %s6856_s26  ;;  %3549 = vrot.lane.b32.xlu1 %v3678_v29, %s6851_s2 }
 0x4a0   : > { %v3849_v11 = vld [vmem:[#allocation9 + $0xe0] sm:$0xff] }
 0x4a1   : > { %3748 = vrot.lane.b32.xlu0 %v8124_v3, %s9099_s23  ;;  %3602 = vrot.lane.b32.xlu1 %v8124_v3, %s6854_s0 }
 0x4a5   : > { %3797 = vrot.lane.b32.xlu0 %v3779_v31, %s6855_s20  ;;  %3651 = vrot.lane.b32.xlu1 %v3779_v31, %s6850_s21 }
 0x4a9   : > { %3506 = vrot.lane.b32.xlu0 %v3779_v31, %s6853_s27  ;;  %3700 = vrot.lane.b32.xlu1 %v8122_v0, %s6856_s26 }
 0x4ad   : > { %3555 = vrot.lane.b32.xlu0 %v8122_v0, %s6851_s2  ;;  %3598 = vrot.lane.b32.xlu1 %v8132_v8, %s6854_s0 }
 0x4b1   : > { %3744 = vrot.lane.b32.xlu0 %v8132_v8, %s9109_s14  ;;  %3647 = vrot.lane.b32.xlu1 %v3630_v19, %s6850_s21 }
 0x4b5   : > { %3793 = vrot.lane.b32.xlu0 %v3630_v19, %s6855_s20  ;;  %3696 = vrot.lane.b32.xlu1 %v8129_v59, %s6856_s26 }
 0x4b9   : > { %3502 = vrot.lane.b32.xlu0 %v3630_v19, %s6853_s27  ;;  %3754 = vrot.lane.b32.xlu1 %v8144_v16, %s9109_s14 }
 0x4bd   : > { %3551 = vrot.lane.b32.xlu0 %v8129_v59, %s6851_s2  ;;  %3803 = vrot.lane.b32.xlu1 %v3782_v38, %s6855_s20 }
 0x4c1   : > { %3608 = vrot.lane.b32.xlu0 %v8144_v16, %s6854_s0  ;;  %3512 = vrot.lane.b32.xlu1 %v3782_v38, %s6853_s27 }
 0x4c5   : > { %3657 = vrot.lane.b32.xlu0 %v3782_v38, %s6850_s21  ;;  %3561 = vrot.lane.b32.xlu1 %v8142_v15, %s6851_s2 }
 0x4c9   : > { %3706 = vrot.lane.b32.xlu0 %v8142_v15, %s6856_s26  ;;  %3750 = vrot.lane.b32.xlu1 %v3731_v25, %s9109_s14  ;;  %v3847_v15 = vld [vmem:[#allocation9 + $0x98] sm:$0xff] }
 0x4ca   : > { %v3861_v17 = vpack.c.bf16 %v3849_v11, %v3847_v15 }
 0x4cd   : > { %3604 = vrot.lane.b32.xlu0 %v3731_v25, %s6854_s0  ;;  %3799 = vrot.lane.b32.xlu1 %v3780_v41, %s6855_s20 }
 0x4d1   : > { %3653 = vrot.lane.b32.xlu0 %v3780_v41, %s6850_s21  ;;  %3508 = vrot.lane.b32.xlu1 %v3780_v41, %s6853_s27 }
 0x4d5   : > { %3702 = vrot.lane.b32.xlu0 %v8167_v7, %s6856_s26  ;;  %3557 = vrot.lane.b32.xlu1 %v8167_v7, %s6851_s2  ;;  %v3851_v7 = vld [vmem:[#allocation9 + $0x128] sm:$0xff] }
 0x4d6   : > { %v3863_v31 = vpack.c.bf16 %v3853_v1, %v3851_v7 }
 0x4d9   : > { %3752 = vrot.lane.b32.xlu0 %v8177_v28, %s9109_s14  ;;  %3610 = vrot.lane.b32.xlu1 %v3587_v42, %s6854_s0 }
 0x4dd   : > { %3801 = vrot.lane.b32.xlu0 %v3781_v21, %s6855_s20  ;;  %3659 = vrot.lane.b32.xlu1 %v3636_v43, %s6850_s21 }
 0x4e1   : > { %3510 = vrot.lane.b32.xlu0 %v3781_v21, %s6853_s27  ;;  %3606 = vrot.lane.b32.xlu1 %v8177_v28, %s6854_s0 }
 0x4e5   : > { %3559 = vrot.lane.b32.xlu0 %v8179_v27, %s6851_s2  ;;  %3655 = vrot.lane.b32.xlu1 %v3781_v21, %s6850_s21 }
 0x4e9   : > { %3756 = vrot.lane.b32.xlu0 %v3587_v42, %s9109_s14  ;;  %3704 = vrot.lane.b32.xlu1 %v8179_v27, %s6856_s26 }
 0x4ed   : > { %3805 = vrot.lane.b32.xlu0 %v3636_v43, %s6855_s20  ;;  %3708 = vrot.lane.b32.xlu1 %v8156_v18, %s6856_s26  ;;  %s6859_s26 = smov 56  }
 0x4f1   : > { %3758 = vrot.lane.b32.xlu1 %v3735_v45, %s9109_s14  ;;  %s6861_s14 = smov 40  }
 0x4f5   : > { %3807 = vrot.lane.b32.xlu1 %v3784_v44, %s6855_s20  ;;  %s6858_s20 = smov 8  }
 0x4fb   : > { %v3747_v46 = vpop.permute.xlu1 %3746  ;;  %v3601_v47 = vpop.permute.xlu0 %3600 }
 0x4ff   : > { %v3796_v48 = vpop.permute.xlu1 %3795  ;;  %v3650_v49 = vpop.permute.xlu0 %3649 }
 0x503   : > { %v3699_v51 = vpop.permute.xlu0 %3698  ;;  %v3505_v52 = vpop.permute.xlu1 %3504 }
 0x504   : > { %3526 = vst.msk [vmem:[#allocation9 + $0xd8] sm:$0xff] %vm3522_vm10, %v3505_v52 }
 0x507   : > { %v3554_v54 = vpop.permute.xlu1 %3553  ;;  %v3597_v56 = vpop.permute.xlu0 %3596 }
 0x508   : > { %3575 = vst.msk [vmem:[#allocation9 + $0xd8] sm:$0xff] %vm3571_vm11, %v3554_v54 }
 0x509   : > { %3621 = vst.msk [vmem:[#allocation9] sm:$0xff] %vm3620_vm14, %v3597_v56 }
 0x50b   : > { %v3646_v37 = vpop.permute.xlu0 %3645  ;;  %v3501_v58 = vpop.permute.xlu1 %3500 }
 0x50c   : > { %3670 = vst.msk [vmem:[#allocation9] sm:$0xff] %vm3669_vm15, %v3646_v37 }
 0x50d   : > { %3524 = vst.msk [vmem:[#allocation9 + $0x48] sm:$0xff] %vm3522_vm10, %v3501_v58 }
 0x50f   : > { %v3695_v39 = vpop.permute.xlu0 %3694  ;;  %v3550_v57 = vpop.permute.xlu1 %3549 }
 0x510   : > { %3719 = vst.msk [vmem:[#allocation9] sm:$0xff] %vm3718_vm1, %v3695_v39 }
 0x511   : > { %3573 = vst.msk [vmem:[#allocation9 + $0x48] sm:$0xff] %vm3571_vm11, %v3550_v57  ;;  %v4047_v57 = vld [vmem:[#allocation6 + $0x1] sm:$0xff] }
 0x512   : > { %4063 = vrot.lane.b32.xlu0 %v4047_v57, %s6858_s20 }
 0x513   : > { %v3749_v40 = vpop.permute.xlu0 %3748  ;;  %v3603_v50 = vpop.permute.xlu1 %3602 }
 0x514   : > { %3624 = vst.msk [vmem:[#allocation9 + $0xd8] sm:$0xff] %vm3620_vm14, %v3603_v50  ;;  %v4096_v50 = vld [vmem:[#allocation6 + $0x2] sm:$0xff] }
 0x516   : > { %4112 = vrot.lane.b32.xlu0 %v4096_v50, %s6853_s27  ;;  %v4398_v50 = vld [vmem:[#allocation6 + $0x92] sm:$0xff] }
 0x517   : > { %v3798_v55 = vpop.permute.xlu0 %3797  ;;  %v3652_v60 = vpop.permute.xlu1 %3651 }
 0x518   : > { %3673 = vst.msk [vmem:[#allocation9 + $0xd8] sm:$0xff] %vm3669_vm15, %v3652_v60  ;;  %v4031_v60 = vld [vmem:[#allocation6] sm:$0xff] }
 0x51b   : > { %v3507_v61 = vpop.permute.xlu0 %3506  ;;  %v3701_v62 = vpop.permute.xlu1 %3700 }
 0x51c   : > { %3527 = vst.msk [vmem:[#allocation9 + $0x120] sm:$0xff] %vm3522_vm10, %v3507_v61 }
 0x51d   : > { %3722 = vst.msk [vmem:[#allocation9 + $0xd8] sm:$0xff] %vm3718_vm1, %v3701_v62 }
 0x51f   : > { %v3556_v63 = vpop.permute.xlu0 %3555  ;;  %v3599_v0 = vpop.permute.xlu1 %3598 }
 0x520   : > { %3576 = vst.msk [vmem:[#allocation9 + $0x120] sm:$0xff] %vm3571_vm11, %v3556_v63  ;;  %v8379_v63 = vld [vmem:[%s9087_s11] ss:$0 sm:$0xff] }
 0x521   : > { %3622 = vst.msk [vmem:[#allocation9 + $0x48] sm:$0xff] %vm3620_vm14, %v3599_v0 }
 0x523   : > { %v3745_v34 = vpop.permute.xlu0 %3744  ;;  %v3648_v3 = vpop.permute.xlu1 %3647 }
 0x524   : > { %3769 = vst.msk [vmem:[#allocation9] sm:$0xff] %vm3768_vm2, %v3745_v34 }
 0x525   : > { %3671 = vst.msk [vmem:[#allocation9 + $0x48] sm:$0xff] %vm3669_vm15, %v3648_v3 }
 0x527   : > { %v3794_v59 = vpop.permute.xlu0 %3793  ;;  %v3697_v4 = vpop.permute.xlu1 %3696 }
 0x528   : > { %3818 = vst.msk [vmem:[#allocation9] sm:$0xff] %vm3817_vm3, %v3794_v59 }
 0x529   : > { %3720 = vst.msk [vmem:[#allocation9 + $0x48] sm:$0xff] %vm3718_vm1, %v3697_v4 }
 0x52a   : > { %3770 = vst.msk [vmem:[#allocation9 + $0x48] sm:$0xff] %vm3768_vm2, %v3747_v46 }
 0x52b   : > { %3819 = vst.msk [vmem:[#allocation9 + $0x48] sm:$0xff] %vm3817_vm3, %v3796_v48  ;;  %v3503_v53 = vpop.permute.xlu0 %3502  ;;  %v8325_v8 = vpop.permute.xlu1 %3754  ;;  %v3857_v48 = vld [vmem:[#allocation9 + $0x200] sm:$0xff] }
 0x52c   : > { %3525 = vst.msk [vmem:[#allocation9 + $0x90] sm:$0xff] %vm3522_vm10, %v3503_v53 }
 0x52f   : > { %v3552_v5 = vpop.permute.xlu0 %3551  ;;  %v8328_v10 = vpop.permute.xlu1 %3803  ;;  %v3842_v12 = vld [vmem:[#allocation9] sm:$0xff] }
 0x530   : > { %3574 = vst.msk [vmem:[#allocation9 + $0x90] sm:$0xff] %vm3571_vm11, %v3552_v5 }
 0x531   : > { %3623 = vst.msk [vmem:[#allocation9 + $0x90] sm:$0xff] %vm3620_vm14, %v3601_v47  ;;  %v3855_v47 = vld [vmem:[#allocation9 + $0x1b8] sm:$0xff] }
 0x532   : > { %v3844_v13 = vld [vmem:[#allocation9 + $0x48] sm:$0xff]  ;;  %3672 = vst.msk [vmem:[#allocation9 + $0x90] sm:$0xff] %vm3669_vm15, %v3650_v49  ;;  %v3865_v56 = vpack.c.bf16 %v3857_v48, %v3855_v47 }
 0x533   : > { %v3858_v14 = vpack.c.bf16 %v3844_v13, %v3842_v12  ;;  %3721 = vst.msk [vmem:[#allocation9 + $0x90] sm:$0xff] %vm3718_vm1, %v3699_v51  ;;  %v3609_v16 = vpop.permute.xlu0 %3608  ;;  %v3513_v6 = vpop.permute.xlu1 %3512 }
 0x534   : > { %3771 = vst.msk [vmem:[#allocation9 + $0x90] sm:$0xff] %vm3768_vm2, %v3749_v40  ;;  %v4300_v40 = vld [vmem:[#allocation6 + $0x90] sm:$0xff] }
 0x535   : > { %3530 = vst.msk [vmem:[#allocation9 + $0x1f8] sm:$0xff] %vm3522_vm10, %v3513_v6  ;;  %3990 = vmatmul.mubr.bf16.vlgmr.msra.gmra.mrb[68].mxu1 %v3858_v14  ;;  %4323 = vrot.lane.b32.xlu1 %v4300_v40, %s6854_s0 }
 0x536   : > { %3820 = vst.msk [vmem:[#allocation9 + $0x90] sm:$0xff] %vm3817_vm3, %v3798_v55  ;;  %6068 = vmatprep.mubr.msk.bf16.mxu1 %vm668_vm7, %v3861_v17  ;;  %v4349_v55 = vld [vmem:[#allocation6 + $0x91] sm:$0xff] }
 0x537   : > { %v3658_v18 = vpop.permute.xlu0 %3657  ;;  %v3562_v2 = vpop.permute.xlu1 %3561  ;;  %4039 = vst.msk [vmem:[#allocation9] sm:$0xff] %vm690_vm12, %v4031_v60 }
 0x538   : > { %3579 = vst.msk [vmem:[#allocation9 + $0x1f8] sm:$0xff] %vm3571_vm11, %v3562_v2 }
 0x539   : > { %4372 = vrot.lane.b32.xlu1 %v4349_v55, %s6859_s26  ;;  %v8484_v55 = vld [vmem:[#allocation2] sm:$0xff] }
 0x53a   : > { %720 = vst.msk [vmem:[#allocation7 + $0x30] sm:$0xff] %vm712_vm8, %v8484_v55  ;;  %713 = vst.msk [vmem:[#allocation7] sm:$0xff] %vm712_vm8, %v8484_v55 }
 0x53b   : > { %v3707_v9 = vpop.permute.xlu0 %3706  ;;  %v3751_v20 = vpop.permute.xlu1 %3750  ;;  %721 = vst.msk [vmem:[#allocation7 + $0x38] sm:$0x3] %vm714_vm9, %v8484_v55  ;;  %715 = vst.msk [vmem:[#allocation7 + $0x8] sm:$0x3] %vm714_vm9, %v8484_v55 }
 0x53c   : > { %3772 = vst.msk [vmem:[#allocation9 + $0xd8] sm:$0xff] %vm3768_vm2, %v3751_v20 }
 0x53d   : > { %v3846_v27 = vld [vmem:[#allocation9 + $0x90] sm:$0xff]  ;;  %716 = vst.msk [vmem:[#allocation7 + $0x10] sm:$0xff] %vm712_vm8, %v8484_v55  ;;  %718 = vst.msk [vmem:[#allocation7 + $0x20] sm:$0xff] %vm712_vm8, %v8484_v55 }
 0x53e   : > { %717 = vst.msk [vmem:[#allocation7 + $0x18] sm:$0x3] %vm714_vm9, %v8484_v55  ;;  %719 = vst.msk [vmem:[#allocation7 + $0x28] sm:$0x3] %vm714_vm9, %v8484_v55 }
 0x53f   : > { %v3605_v22 = vpop.permute.xlu0 %3604  ;;  %v3800_v23 = vpop.permute.xlu1 %3799  ;;  %722 = vst.msk [vmem:[#allocation7 + $0x40] sm:$0xff] %vm712_vm8, %v8484_v55  ;;  %724 = vst.msk [vmem:[#allocation7 + $0x50] sm:$0xff] %vm712_vm8, %v8484_v55 }
 0x540   : > { %3625 = vst.msk [vmem:[#allocation9 + $0x120] sm:$0xff] %vm3620_vm14, %v3605_v22 }
 0x541   : > { %3821 = vst.msk [vmem:[#allocation9 + $0xd8] sm:$0xff] %vm3817_vm3, %v3800_v23  ;;  %v6827_v23 = vld [vmem:[%s9081_s5] sm:$0xff]  }
 0x542   : > { %6506 = vmatprep.subr.bf16.mxu0 %v6827_v23  ;;  %723 = vst.msk [vmem:[#allocation7 + $0x48] sm:$0x3] %vm714_vm9, %v8484_v55  ;;  %725 = vst.msk [vmem:[#allocation7 + $0x58] sm:$0x3] %vm714_vm9, %v8484_v55 }
 0x543   : > { %v3654_v24 = vpop.permute.xlu0 %3653  ;;  %v3509_v25 = vpop.permute.xlu1 %3508  ;;  %6507 = vmatpush3.bf16.msra.mxu0 %v6827_v23  ;;  %726 = vst.msk [vmem:[#allocation7 + $0x60] sm:$0xff] %vm712_vm8, %v8484_v55  ;;  %728 = vst.msk [vmem:[#allocation7 + $0x70] sm:$0xff] %vm712_vm8, %v8484_v55 }
 0x544   : > { %3674 = vst.msk [vmem:[#allocation9 + $0x120] sm:$0xff] %vm3669_vm15, %v3654_v24 }
 0x545   : > { %3528 = vst.msk [vmem:[#allocation9 + $0x168] sm:$0xff] %vm3522_vm10, %v3509_v25 }
 0x546   : > { %727 = vst.msk [vmem:[#allocation7 + $0x68] sm:$0x3] %vm714_vm9, %v8484_v55  ;;  %729 = vst.msk [vmem:[#allocation7 + $0x78] sm:$0x3] %vm714_vm9, %v8484_v55 }
 0x547   : > { %v3703_v26 = vpop.permute.xlu0 %3702  ;;  %v3558_v28 = vpop.permute.xlu1 %3557  ;;  %730 = vst.msk [vmem:[#allocation7 + $0x80] sm:$0xff] %vm712_vm8, %v8484_v55  ;;  %732 = vst.msk [vmem:[#allocation7 + $0x90] sm:$0xff] %vm712_vm8, %v8484_v55 }
 0x548   : > { %v3848_v29 = vld [vmem:[#allocation9 + $0xd8] sm:$0xff]  ;;  %3723 = vst.msk [vmem:[#allocation9 + $0x120] sm:$0xff] %vm3718_vm1, %v3703_v26 }
 0x549   : > { %3577 = vst.msk [vmem:[#allocation9 + $0x168] sm:$0xff] %vm3571_vm11, %v3558_v28  ;;  %v3860_v30 = vpack.c.bf16 %v3848_v29, %v3846_v27  ;;  %v6828_v28 = vld [vmem:[%s9081_s5 + $0x8] sm:$0xff]  }
 0x54a   : > { %6508 = vmatprep.subr.bf16.mxu0 %v6828_v28  ;;  %731 = vst.msk [vmem:[#allocation7 + $0x88] sm:$0x3] %vm714_vm9, %v8484_v55  ;;  %733 = vst.msk [vmem:[#allocation7 + $0x98] sm:$0x3] %vm714_vm9, %v8484_v55  ;;  %vm4888_vm9 = vcmask 228544  }
 0x54b   : > { %3998 = vmatmul.mubr.bf16.gmra.mrb[72].mxu1 %v3860_v30  ;;  %v3753_v32 = vpop.permute.xlu0 %3752  ;;  %v3611_v33 = vpop.permute.xlu1 %3610  ;;  %6509 = vmatpush3.bf16.msra.mxu0 %v6828_v28 }
 0x54c   : > { %6069 = vmatprep.mubr.msk.bf16.mxu1 %vm668_vm7, %v3863_v31  ;;  %3773 = vst.msk [vmem:[#allocation9 + $0x120] sm:$0xff] %vm3768_vm2, %v3753_v32  ;;  %v6829_v31 = vld [vmem:[%s9081_s5 + $0x10] sm:$0xff]  }
 0x54d   : > { %3628 = vst.msk [vmem:[#allocation9 + $0x1f8] sm:$0xff] %vm3620_vm14, %v3611_v33  ;;  %6510 = vmatprep.subr.bf16.mxu0 %v6829_v31 }
 0x54f   : > { %v3802_v35 = vpop.permute.xlu0 %3801  ;;  %v3660_v19 = vpop.permute.xlu1 %3659  ;;  %6511 = vmatpush3.bf16.msra.mxu0 %v6829_v31 }
 0x550   : > { %3822 = vst.msk [vmem:[#allocation9 + $0x120] sm:$0xff] %vm3817_vm3, %v3802_v35 }
 0x551   : > { %3677 = vst.msk [vmem:[#allocation9 + $0x1f8] sm:$0xff] %vm3669_vm15, %v3660_v19 }
 0x553   : > { %v3511_v36 = vpop.permute.xlu0 %3510  ;;  %v3607_v38 = vpop.permute.xlu1 %3606 }
 0x554   : > { %3529 = vst.msk [vmem:[#allocation9 + $0x1b0] sm:$0xff] %vm3522_vm10, %v3511_v36  ;;  %vm4234_vm10 = vcmask 326912  }
 0x555   : > { %3626 = vst.msk [vmem:[#allocation9 + $0x168] sm:$0xff] %vm3620_vm14, %v3607_v38 }
 0x557   : > { %v3560_v41 = vpop.permute.xlu0 %3559  ;;  %v3656_v42 = vpop.permute.xlu1 %3655  ;;  %v3850_v49 = vld [vmem:[#allocation9 + $0x120] sm:$0xff] }
 0x558   : > { %3578 = vst.msk [vmem:[#allocation9 + $0x1b0] sm:$0xff] %vm3571_vm11, %v3560_v41  ;;  %vm4283_vm11 = vcmask 392512  }
 0x559   : > { %3675 = vst.msk [vmem:[#allocation9 + $0x168] sm:$0xff] %vm3669_vm15, %v3656_v42 }
 0x55a   : > { %3627 = vst.msk [vmem:[#allocation9 + $0x1b0] sm:$0xff] %vm3620_vm14, %v3609_v16  ;;  %vm4431_vm14 = vcmask 589312  }
 0x55b   : > { %3676 = vst.msk [vmem:[#allocation9 + $0x1b0] sm:$0xff] %vm3669_vm15, %v3658_v18  ;;  %v3757_v21 = vpop.permute.xlu0 %3756  ;;  %v3705_v43 = vpop.permute.xlu1 %3704  ;;  %vm4495_vm15 = vcmask 588800  }
 0x55c   : > { %3725 = vst.msk [vmem:[#allocation9 + $0x1b0] sm:$0xff] %vm3718_vm1, %v3707_v9  ;;  %3724 = vst.msk [vmem:[#allocation9 + $0x168] sm:$0xff] %vm3718_vm1, %v3705_v43 }
 0x55d   : > { %3775 = vst.msk [vmem:[#allocation9 + $0x1b0] sm:$0xff] %vm3768_vm2, %v3757_v21  ;;  %3774 = vst.msk [vmem:[#allocation9 + $0x168] sm:$0xff] %vm3768_vm2, %v8325_v8  ;;  %v6830_v21 = vld [vmem:[%s9081_s5 + $0x18] sm:$0xff]  }
 0x55e   : > { %3823 = vst.msk [vmem:[#allocation9 + $0x168] sm:$0xff] %vm3817_vm3, %v8328_v10  ;;  %6512 = vmatprep.subr.bf16.mxu0 %v6830_v21 }
 0x55f   : > { %v3806_v45 = vpop.permute.xlu0 %3805  ;;  %v3709_v44 = vpop.permute.xlu1 %3708  ;;  %6513 = vmatpush3.bf16.msra.mxu0 %v6830_v21 }
 0x560   : > { %3824 = vst.msk [vmem:[#allocation9 + $0x1b0] sm:$0xff] %vm3817_vm3, %v3806_v45  ;;  %v6831_v45 = vld [vmem:[%s9081_s5 + $0x20] ss:$0 sps:$4 sm:$0xff]  }
 0x561   : > { %3726 = vst.msk [vmem:[#allocation9 + $0x1f8] sm:$0xff] %vm3718_vm1, %v3709_v44  ;;  %6656 = vmatprep.subr.msk.bf16.mxu0 %vm4508_vm6, %v6831_v45  ;;  %vm4642_vm1 = vcmask 64544  }
 0x563   : > { %v3759_v46 = vpop.permute.xlu1 %3758 }
 0x564   : > { %3776 = vst.msk [vmem:[#allocation9 + $0x1f8] sm:$0xff] %vm3768_vm2, %v3759_v46  ;;  %v4510_v46 = vsel %vm4508_vm6, %v6831_v45, 0  ;;  %vm4691_vm2 = vcmask 97344   ;;  %vm4740_vm6 = vcmask 130144  }
 0x565   : > { %v3852_v51 = vld [vmem:[#allocation9 + $0x168] sm:$0xff]  ;;  %6515 = vmatpush3.bf16.msra.mxu0 %v4510_v46 }
 0x566   : > { %v3862_v52 = vpack.c.bf16 %v3852_v51, %v3850_v49 }
 0x567   : > { %v3808_v54 = vpop.permute.xlu1 %3807  ;;  %v3854_v37 = vld [vmem:[#allocation9 + $0x1b0] sm:$0xff] }
 0x568   : > { %3825 = vst.msk [vmem:[#allocation9 + $0x1f8] sm:$0xff] %vm3817_vm3, %v3808_v54  ;;  %4006 = vmatmul.mubr.bf16.gmra.mrb[76].mxu1 %v3862_v52  ;;  %vm5047_vm3 = vcmask 1041408  }
 0x569   : > { %6070 = vmatprep.mubr.msk.bf16.mxu1 %vm668_vm7, %v3865_v56  ;;  %vm4185_vm7 = vcmask 261312  }
 0x56f   : > { %v3856_v58 = vld [vmem:[#allocation9 + $0x1f8] sm:$0xff] }
 0x570   : > { %v3864_v39 = vpack.c.bf16 %v3856_v58, %v3854_v37 }
 0x572   : > { %4014 = vmatmul.mubr.bf16.gmra.mrb[80].mxu1 %v3864_v39 }
 0x584   : > { %v4064_v61 = vpop.permute.xlu0 %4063 }
 0x585   : > { %4088 = vst.msk [vmem:[#allocation9] sm:$0xff] %vm4087_vm4, %v4064_v61 }
 0x588   : > { %v4113_v62 = vpop.permute.xlu0 %4112 }
 0x589   : > { %4137 = vst.msk [vmem:[#allocation9] sm:$0xff] %vm4136_vm5, %v4113_v62 }
 0x5a7   : > { %v8471_v54 = vpop.permute.xlu1 %4323 }
 0x5ab   : > { %v8476_v37 = vpop.permute.xlu1 %4372 }
 0x608   : > { %v3991_v0 = vpop.f32.mrb[68].mxu1 }
 0x609   : > { %v3992_v34 = vadd.f32 %v8379_v63, %v3991_v0  ;;  %v3993_v3 = vpop.f32.mrb[69].mxu1 }
 0x60a   : > { %v3994_v59 = vpop.f32.mrb[70].mxu1 }
 0x60b   : > { %4023 = vst.msk [vmem:[#allocation6 + $0x11] sm:$0xff] %vm690_vm12, %v3992_v34  ;;  %v3995_v4 = vadd.f32 %v8379_v63, %v3994_v59  ;;  %v3996_v53 = vpop.f32.mrb[71].mxu1 }
 0x60d   : > { %4024 = vst.msk [vmem:[#allocation6 + $0x21] sm:$0xff] %vm690_vm12, %v3995_v4 }
 0x612   : > { %v4145_v8 = vld [vmem:[#allocation6 + $0x10] sm:$0xff] }
 0x613   : > { %v4048_v5 = vld [vmem:[#allocation6 + $0x11] sm:$0xff]  ;;  %4161 = vrot.lane.b32.xlu0 %v4145_v8, %s6860_s30  ;;  %4040 = vst.msk [vmem:[#allocation9 + $0x48] sm:$0xff] %vm690_vm12, %v4145_v8 }
 0x614   : > { %4065 = vrot.lane.b32.xlu1 %v4048_v5, %s6858_s20  ;;  %v4146_v10 = vld [vmem:[#allocation6 + $0x20] sm:$0xff]  ;;  %v4097_v11 = vld [vmem:[#allocation6 + $0x12] sm:$0xff] }
 0x615   : > { %4041 = vst.msk [vmem:[#allocation9 + $0x90] sm:$0xff] %vm690_vm12, %v4146_v10  ;;  %v4049_v13 = vld [vmem:[#allocation6 + $0x21] sm:$0xff] }
 0x616   : > { %v4098_v18 = vld [vmem:[#allocation6 + $0x22] sm:$0xff] }
 0x617   : > { %4210 = vrot.lane.b32.xlu0 %v4048_v5, %s6851_s2 }
 0x618   : > { %4114 = vrot.lane.b32.xlu1 %v4097_v11, %s6853_s27 }
 0x61b   : > { %4259 = vrot.lane.b32.xlu0 %v4097_v11, %s6861_s14 }
 0x61c   : > { %4163 = vrot.lane.b32.xlu1 %v4146_v10, %s6860_s30 }
 0x61e   : > { %v3999_v12 = vpop.f32.mrb[72].mxu1 }
 0x61f   : > { %v4000_v14 = vadd.f32 %v8379_v63, %v3999_v12  ;;  %v4001_v15 = vpop.f32.mrb[73].mxu1  ;;  %4067 = vrot.lane.b32.xlu0 %v4049_v13, %s6858_s20 }
 0x620   : > { %4212 = vrot.lane.b32.xlu1 %v4049_v13, %s6851_s2  ;;  %v4002_v16 = vpop.f32.mrb[74].mxu1 }
 0x621   : > { %4025 = vst.msk [vmem:[#allocation6 + $0x31] sm:$0xff] %vm690_vm12, %v4000_v14  ;;  %v4003_v6 = vadd.f32 %v8379_v63, %v4002_v16  ;;  %v4004_v17 = vpop.f32.mrb[75].mxu1 }
 0x623   : > { %4026 = vst.msk [vmem:[#allocation6 + $0x41] sm:$0xff] %vm690_vm12, %v4003_v6  ;;  %4116 = vrot.lane.b32.xlu0 %v4098_v18, %s6853_s27 }
 0x624   : > { %4261 = vrot.lane.b32.xlu1 %v4098_v18, %s6861_s14 }
 0x627   : > { %4309 = vrot.lane.b32.xlu0 %v4146_v10, %s6854_s0 }
 0x628   : > { %v4050_v2 = vld [vmem:[#allocation6 + $0x31] sm:$0xff] }
 0x629   : > { %v4294_v9 = vld [vmem:[#allocation6 + $0x30] sm:$0xff]  ;;  %4069 = vrot.lane.b32.xlu1 %v4050_v2, %s6858_s20 }
 0x62a   : > { %4042 = vst.msk [vmem:[#allocation9 + $0xd8] sm:$0xff] %vm690_vm12, %v4294_v9  ;;  %v4148_v20 = vld [vmem:[#allocation6 + $0x40] sm:$0xff]  ;;  %v4099_v22 = vld [vmem:[#allocation6 + $0x32] sm:$0xff] }
 0x62b   : > { %4358 = vrot.lane.b32.xlu0 %v4049_v13, %s6859_s26  ;;  %4043 = vst.msk [vmem:[#allocation9 + $0x120] sm:$0xff] %vm690_vm12, %v4148_v20  ;;  %v4197_v30 = vld [vmem:[#allocation6 + $0x41] sm:$0xff] }
 0x62c   : > { %v4246_v1 = vld [vmem:[#allocation6 + $0x42] sm:$0xff] }
 0x62d   : > { %4118 = vrot.lane.b32.xlu1 %v4099_v22, %s6853_s27 }
 0x62f   : > { %4407 = vrot.lane.b32.xlu0 %v4098_v18, %s6850_s21 }
 0x631   : > { %4311 = vrot.lane.b32.xlu1 %v4294_v9, %s6854_s0 }
 0x633   : > { %4165 = vrot.lane.b32.xlu0 %v4294_v9, %s6860_s30 }
 0x635   : > { %4360 = vrot.lane.b32.xlu1 %v4050_v2, %s6859_s26 }
 0x637   : > { %4214 = vrot.lane.b32.xlu0 %v4050_v2, %s6851_s2 }
 0x639   : > { %4409 = vrot.lane.b32.xlu1 %v4099_v22, %s6850_s21 }
 0x63b   : > { %4263 = vrot.lane.b32.xlu0 %v4099_v22, %s6861_s14  ;;  %v4007_v24 = vpop.f32.mrb[76].mxu1 }
 0x63c   : > { %v4008_v25 = vadd.f32 %v8379_v63, %v4007_v24  ;;  %v4009_v7 = vpop.f32.mrb[77].mxu1 }
 0x63d   : > { %4167 = vrot.lane.b32.xlu1 %v4148_v20, %s6860_s30  ;;  %v4010_v26 = vpop.f32.mrb[78].mxu1 }
 0x63e   : > { %4027 = vst.msk [vmem:[#allocation6 + $0x51] sm:$0xff] %vm690_vm12, %v4008_v25  ;;  %v4011_v27 = vadd.f32 %v8379_v63, %v4010_v26  ;;  %v4012_v29 = vpop.f32.mrb[79].mxu1 }
 0x63f   : > { %4313 = vrot.lane.b32.xlu0 %v4148_v20, %s6854_s0 }
 0x640   : > { %4028 = vst.msk [vmem:[#allocation6 + $0x61] sm:$0xff] %vm690_vm12, %v4011_v27 }
 0x641   : > { %4216 = vrot.lane.b32.xlu1 %v4197_v30, %s6851_s2 }
 0x643   : > { %4362 = vrot.lane.b32.xlu0 %v4197_v30, %s6859_s26 }
 0x645   : > { %4265 = vrot.lane.b32.xlu1 %v4246_v1, %s6861_s14  ;;  %v4015_v32 = vpop.f32.mrb[80].mxu1  ;;  %v4296_v33 = vld [vmem:[#allocation6 + $0x50] sm:$0xff] }
 0x646   : > { %v4016_v35 = vadd.f32 %v8379_v63, %v4015_v32  ;;  %v4017_v19 = vpop.f32.mrb[81].mxu1  ;;  %4044 = vst.msk [vmem:[#allocation9 + $0x168] sm:$0xff] %vm690_vm12, %v4296_v33  ;;  %v4345_v43 = vld [vmem:[#allocation6 + $0x51] sm:$0xff] }
 0x647   : > { %4071 = vrot.lane.b32.xlu0 %v4197_v30, %s6858_s20  ;;  %v4018_v36 = vpop.f32.mrb[82].mxu1  ;;  %v4150_v38 = vld [vmem:[#allocation6 + $0x60] sm:$0xff]  ;;  %v4394_v47 = vld [vmem:[#allocation6 + $0x52] sm:$0xff] }
 0x648   : > { %4029 = vst.msk [vmem:[#allocation6 + $0x71] sm:$0xff] %vm690_vm12, %v4016_v35  ;;  %v4019_v41 = vadd.f32 %v8379_v63, %v4018_v36  ;;  %v4020_v42 = vpop.f32.mrb[83].mxu1  ;;  %4045 = vst.msk [vmem:[#allocation9 + $0x1b0] sm:$0xff] %vm690_vm12, %v4150_v38  ;;  %v4053_v48 = vld [vmem:[#allocation6 + $0x61] sm:$0xff] }
 0x649   : > { %4315 = vrot.lane.b32.xlu1 %v4296_v33, %s6854_s0  ;;  %v4102_v49 = vld [vmem:[#allocation6 + $0x62] sm:$0xff] }
 0x64a   : > { %4030 = vst.msk [vmem:[#allocation6 + $0x81] sm:$0xff] %vm690_vm12, %v4019_v41 }
 0x64b   : > { %4411 = vrot.lane.b32.xlu0 %v4246_v1, %s6850_s21 }
 0x64d   : > { %4364 = vrot.lane.b32.xlu1 %v4345_v43, %s6859_s26 }
 0x64f   : > { %4120 = vrot.lane.b32.xlu0 %v4246_v1, %s6853_s27  ;;  %v4298_v44 = vld [vmem:[#allocation6 + $0x70] sm:$0xff] }
 0x650   : > { %4046 = vst.msk [vmem:[#allocation9 + $0x1f8] sm:$0xff] %vm690_vm12, %v4298_v44  ;;  %v4054_v51 = vld [vmem:[#allocation6 + $0x71] sm:$0xff]  ;;  %vm4333_vm12 = vcmask 458112  }
 0x651   : > { %4073 = vrot.lane.b32.xlu1 %v4345_v43, %s6858_s20  ;;  %v4103_v52 = vld [vmem:[#allocation6 + $0x72] sm:$0xff]  ;;  %v4152_v56 = vld [vmem:[#allocation6 + $0x80] sm:$0xff] }
 0x652   : > { %v4201_v58 = vld [vmem:[#allocation6 + $0x81] sm:$0xff] }
 0x653   : > { %4169 = vrot.lane.b32.xlu0 %v4296_v33, %s6860_s30  ;;  %v4250_v39 = vld [vmem:[#allocation6 + $0x82] sm:$0xff] }
 0x655   : > { %4413 = vrot.lane.b32.xlu1 %v4394_v47, %s6850_s21 }
 0x657   : > { %4218 = vrot.lane.b32.xlu0 %v4345_v43, %s6851_s2 }
 0x659   : > { %4122 = vrot.lane.b32.xlu1 %v4394_v47, %s6853_s27 }
 0x65b   : > { %4267 = vrot.lane.b32.xlu0 %v4394_v47, %s6861_s14 }
 0x65d   : > { %4171 = vrot.lane.b32.xlu1 %v4150_v38, %s6860_s30 }
 0x65f   : > { %4075 = vrot.lane.b32.xlu0 %v4053_v48, %s6858_s20 }
 0x661   : > { %4220 = vrot.lane.b32.xlu1 %v4053_v48, %s6851_s2 }
 0x663   : > { %4124 = vrot.lane.b32.xlu0 %v4102_v49, %s6853_s27 }
 0x665   : > { %4269 = vrot.lane.b32.xlu1 %v4102_v49, %s6861_s14 }
 0x667   : > { %4317 = vrot.lane.b32.xlu0 %v4150_v38, %s6854_s0 }
 0x669   : > { %4077 = vrot.lane.b32.xlu1 %v4054_v51, %s6858_s20 }
 0x66b   : > { %4366 = vrot.lane.b32.xlu0 %v4053_v48, %s6859_s26 }
 0x66d   : > { %4126 = vrot.lane.b32.xlu1 %v4103_v52, %s6853_s27 }
 0x66f   : > { %4415 = vrot.lane.b32.xlu0 %v4102_v49, %s6850_s21 }
 0x671   : > { %4319 = vrot.lane.b32.xlu1 %v4298_v44, %s6854_s0 }
 0x673   : > { %4173 = vrot.lane.b32.xlu0 %v4298_v44, %s6860_s30 }
 0x675   : > { %4368 = vrot.lane.b32.xlu1 %v4054_v51, %s6859_s26 }
 0x677   : > { %4222 = vrot.lane.b32.xlu0 %v4054_v51, %s6851_s2 }
 0x679   : > { %4417 = vrot.lane.b32.xlu1 %v4103_v52, %s6850_s21 }
 0x67b   : > { %4271 = vrot.lane.b32.xlu0 %v4103_v52, %s6861_s14 }
 0x67d   : > { %4175 = vrot.lane.b32.xlu1 %v4152_v56, %s6860_s30 }
 0x67f   : > { %4321 = vrot.lane.b32.xlu0 %v4152_v56, %s6854_s0  ;;  %s6863_s0 = smov 28  }
 0x681   : > { %4224 = vrot.lane.b32.xlu1 %v4201_v58, %s6851_s2 }
 0x683   : > { %4370 = vrot.lane.b32.xlu0 %v4201_v58, %s6859_s26  ;;  %s6868_s26 = smov 6  }
 0x685   : > { %v4162_v57 = vpop.permute.xlu0 %4161  ;;  %4273 = vrot.lane.b32.xlu1 %v4250_v39, %s6861_s14  ;;  %s6869_s14 = smov 10  }
 0x686   : > { %v4066_v40 = vpop.permute.xlu1 %4065  ;;  %4186 = vst.msk [vmem:[#allocation9] sm:$0xff] %vm4185_vm7, %v4162_v57 }
 0x687   : > { %4089 = vst.msk [vmem:[#allocation9 + $0x48] sm:$0xff] %vm4087_vm4, %v4066_v40  ;;  %4419 = vrot.lane.b32.xlu0 %v4250_v39, %s6850_s21 }
 0x689   : > { %v4211_v60 = vpop.permute.xlu0 %4210  ;;  %4421 = vrot.lane.b32.xlu1 %v4398_v50, %s6850_s21  ;;  %s6862_s21 = smov 4  }
 0x68a   : > { %v4115_v61 = vpop.permute.xlu1 %4114  ;;  %4235 = vst.msk [vmem:[#allocation9] sm:$0xff] %vm4234_vm10, %v4211_v60 }
 0x68b   : > { %4138 = vst.msk [vmem:[#allocation9 + $0x48] sm:$0xff] %vm4136_vm5, %v4115_v61 }
 0x68d   : > { %v4260_v62 = vpop.permute.xlu0 %4259 }
 0x68e   : > { %v4164_v63 = vpop.permute.xlu1 %4163  ;;  %4284 = vst.msk [vmem:[#allocation9] sm:$0xff] %vm4283_vm11, %v4260_v62 }
 0x68f   : > { %4187 = vst.msk [vmem:[#allocation9 + $0x48] sm:$0xff] %vm4185_vm7, %v4164_v63 }
 0x691   : > { %v4068_v0 = vpop.permute.xlu0 %4067 }
 0x692   : > { %v4213_v34 = vpop.permute.xlu1 %4212  ;;  %4090 = vst.msk [vmem:[#allocation9 + $0x90] sm:$0xff] %vm4087_vm4, %v4068_v0 }
 0x693   : > { %4236 = vst.msk [vmem:[#allocation9 + $0x48] sm:$0xff] %vm4234_vm10, %v4213_v34 }
 0x695   : > { %v4117_v3 = vpop.permute.xlu0 %4116 }
 0x696   : > { %v4262_v59 = vpop.permute.xlu1 %4261  ;;  %4139 = vst.msk [vmem:[#allocation9 + $0x90] sm:$0xff] %vm4136_vm5, %v4117_v3 }
 0x697   : > { %4285 = vst.msk [vmem:[#allocation9 + $0x48] sm:$0xff] %vm4283_vm11, %v4262_v59 }
 0x699   : > { %v4310_v4 = vpop.permute.xlu0 %4309 }
 0x69a   : > { %4334 = vst.msk [vmem:[#allocation9] sm:$0xff] %vm4333_vm12, %v4310_v4 }
 0x69b   : > { %v4070_v53 = vpop.permute.xlu1 %4069 }
 0x69c   : > { %4091 = vst.msk [vmem:[#allocation9 + $0xd8] sm:$0xff] %vm4087_vm4, %v4070_v53  ;;  %v4602_v53 = vld [vmem:[#allocation7 + $0x1] sm:$0xff] }
 0x69d   : > { %v4359_v8 = vpop.permute.xlu0 %4358  ;;  %4618 = vrot.lane.b32.xlu0 %v4602_v53, %s6862_s21 }
 0x69e   : > { %4383 = vst.msk [vmem:[#allocation9] sm:$0xff] %vm4382_vm13, %v4359_v8  ;;  %v4855_v8 = vld [vmem:[#allocation7 + $0x90] sm:$0xff] }
 0x69f   : > { %v4119_v5 = vpop.permute.xlu1 %4118  ;;  %4878 = vrot.lane.b32.xlu1 %v4855_v8, %s6860_s30 }
 0x6a0   : > { %4140 = vst.msk [vmem:[#allocation9 + $0xd8] sm:$0xff] %vm4136_vm5, %v4119_v5  ;;  %v4904_v5 = vld [vmem:[#allocation7 + $0x91] sm:$0xff] }
 0x6a1   : > { %v4408_v10 = vpop.permute.xlu0 %4407 }
 0x6a2   : > { %4432 = vst.msk [vmem:[#allocation9] sm:$0xff] %vm4431_vm14, %v4408_v10 }
 0x6a3   : > { %v4312_v11 = vpop.permute.xlu1 %4311  ;;  %4927 = vrot.lane.b32.xlu1 %v4904_v5, %s6863_s0 }
 0x6a4   : > { %4335 = vst.msk [vmem:[#allocation9 + $0x48] sm:$0xff] %vm4333_vm12, %v4312_v11 }
 0x6a5   : > { %v4166_v12 = vpop.permute.xlu0 %4165 }
 0x6a6   : > { %4188 = vst.msk [vmem:[#allocation9 + $0x90] sm:$0xff] %vm4185_vm7, %v4166_v12  ;;  %v8603_v12 = vld [vmem:[%s9088_s12] ss:$0 sm:$0xff] }
 0x6a7   : > { %v4361_v13 = vpop.permute.xlu1 %4360 }
 0x6a8   : > { %4384 = vst.msk [vmem:[#allocation9 + $0x48] sm:$0xff] %vm4382_vm13, %v4361_v13 }
 0x6a9   : > { %v4215_v14 = vpop.permute.xlu0 %4214  ;;  %v4440_v2 = vld [vmem:[#allocation9] sm:$0xff] }
 0x6aa   : > { %4237 = vst.msk [vmem:[#allocation9 + $0x90] sm:$0xff] %vm4234_vm10, %v4215_v14 }
 0x6ab   : > { %v4410_v15 = vpop.permute.xlu1 %4409 }
 0x6ac   : > { %4433 = vst.msk [vmem:[#allocation9 + $0x48] sm:$0xff] %vm4431_vm14, %v4410_v15 }
 0x6ad   : > { %v4264_v16 = vpop.permute.xlu0 %4263 }
 0x6ae   : > { %4286 = vst.msk [vmem:[#allocation9 + $0x90] sm:$0xff] %vm4283_vm11, %v4264_v16 }
 0x6af   : > { %v4168_v6 = vpop.permute.xlu1 %4167 }
 0x6b0   : > { %4189 = vst.msk [vmem:[#allocation9 + $0xd8] sm:$0xff] %vm4185_vm7, %v4168_v6 }
 0x6b1   : > { %v4314_v17 = vpop.permute.xlu0 %4313 }
 0x6b2   : > { %4336 = vst.msk [vmem:[#allocation9 + $0x90] sm:$0xff] %vm4333_vm12, %v4314_v17 }
 0x6b3   : > { %v4217_v18 = vpop.permute.xlu1 %4216  ;;  %v4441_v9 = vld [vmem:[#allocation9 + $0x48] sm:$0xff] }
 0x6b4   : > { %4238 = vst.msk [vmem:[#allocation9 + $0xd8] sm:$0xff] %vm4234_vm10, %v4217_v18  ;;  %v4448_v20 = vpack.c.bf16 %v4441_v9, %v4440_v2 }
 0x6b5   : > { %v4363_v22 = vpop.permute.xlu0 %4362 }
 0x6b6   : > { %4385 = vst.msk [vmem:[#allocation9 + $0x90] sm:$0xff] %vm4382_vm13, %v4363_v22  ;;  %6516 = vmatprep.mubr.msk.bf16.mxu0 %vm4495_vm15, %v4448_v20 }
 0x6b7   : > { %v4266_v23 = vpop.permute.xlu1 %4265 }
 0x6b8   : > { %4287 = vst.msk [vmem:[#allocation9 + $0xd8] sm:$0xff] %vm4283_vm11, %v4266_v23 }
 0x6b9   : > { %v4072_v24 = vpop.permute.xlu0 %4071 }
 0x6ba   : > { %4092 = vst.msk [vmem:[#allocation9 + $0x120] sm:$0xff] %vm4087_vm4, %v4072_v24 }
 0x6bb   : > { %v4316_v25 = vpop.permute.xlu1 %4315 }
 0x6bc   : > { %4337 = vst.msk [vmem:[#allocation9 + $0xd8] sm:$0xff] %vm4333_vm12, %v4316_v25 }
 0x6bd   : > { %v4412_v7 = vpop.permute.xlu0 %4411 }
 0x6be   : > { %4434 = vst.msk [vmem:[#allocation9 + $0x90] sm:$0xff] %vm4431_vm14, %v4412_v7 }
 0x6bf   : > { %v4365_v26 = vpop.permute.xlu1 %4364 }
 0x6c0   : > { %4386 = vst.msk [vmem:[#allocation9 + $0xd8] sm:$0xff] %vm4382_vm13, %v4365_v26 }
 0x6c1   : > { %v4121_v28 = vpop.permute.xlu0 %4120 }
 0x6c2   : > { %4141 = vst.msk [vmem:[#allocation9 + $0x120] sm:$0xff] %vm4136_vm5, %v4121_v28 }
 0x6c3   : > { %v4074_v27 = vpop.permute.xlu1 %4073 }
 0x6c4   : > { %4093 = vst.msk [vmem:[#allocation9 + $0x168] sm:$0xff] %vm4087_vm4, %v4074_v27 }
 0x6c5   : > { %v4170_v29 = vpop.permute.xlu0 %4169  ;;  %v4442_v35 = vld [vmem:[#allocation9 + $0x90] sm:$0xff] }
 0x6c6   : > { %4190 = vst.msk [vmem:[#allocation9 + $0x120] sm:$0xff] %vm4185_vm7, %v4170_v29 }
 0x6c7   : > { %v4414_v30 = vpop.permute.xlu1 %4413 }
 0x6c8   : > { %4435 = vst.msk [vmem:[#allocation9 + $0xd8] sm:$0xff] %vm4431_vm14, %v4414_v30 }
 0x6c9   : > { %v4219_v1 = vpop.permute.xlu0 %4218 }
 0x6ca   : > { %4239 = vst.msk [vmem:[#allocation9 + $0x120] sm:$0xff] %vm4234_vm10, %v4219_v1 }
 0x6cb   : > { %v4123_v31 = vpop.permute.xlu1 %4122 }
 0x6cc   : > { %4142 = vst.msk [vmem:[#allocation9 + $0x168] sm:$0xff] %vm4136_vm5, %v4123_v31 }
 0x6cd   : > { %v4268_v32 = vpop.permute.xlu0 %4267 }
 0x6ce   : > { %4288 = vst.msk [vmem:[#allocation9 + $0x120] sm:$0xff] %vm4283_vm11, %v4268_v32 }
 0x6cf   : > { %v4172_v33 = vpop.permute.xlu1 %4171  ;;  %v4443_v19 = vld [vmem:[#allocation9 + $0xd8] sm:$0xff] }
 0x6d0   : > { %4191 = vst.msk [vmem:[#allocation9 + $0x168] sm:$0xff] %vm4185_vm7, %v4172_v33  ;;  %v4449_v36 = vpack.c.bf16 %v4443_v19, %v4442_v35 }
 0x6d1   : > { %v4076_v38 = vpop.permute.xlu0 %4075 }
 0x6d2   : > { %4094 = vst.msk [vmem:[#allocation9 + $0x1b0] sm:$0xff] %vm4087_vm4, %v4076_v38  ;;  %6517 = vmatmul.mubr.msk.bf16.vlgmr.msra.gmra.mrb[68].mxu0 %vm4495_vm15, %v4449_v36 }
 0x6d3   : > { %v4221_v41 = vpop.permute.xlu1 %4220 }
 0x6d4   : > { %4240 = vst.msk [vmem:[#allocation9 + $0x168] sm:$0xff] %vm4234_vm10, %v4221_v41 }
 0x6d5   : > { %v4125_v42 = vpop.permute.xlu0 %4124 }
 0x6d6   : > { %4143 = vst.msk [vmem:[#allocation9 + $0x1b0] sm:$0xff] %vm4136_vm5, %v4125_v42 }
 0x6d7   : > { %v4270_v21 = vpop.permute.xlu1 %4269 }
 0x6d8   : > { %4289 = vst.msk [vmem:[#allocation9 + $0x168] sm:$0xff] %vm4283_vm11, %v4270_v21 }
 0x6d9   : > { %v4318_v43 = vpop.permute.xlu0 %4317 }
 0x6da   : > { %4338 = vst.msk [vmem:[#allocation9 + $0x120] sm:$0xff] %vm4333_vm12, %v4318_v43 }
 0x6db   : > { %v4078_v45 = vpop.permute.xlu1 %4077 }
 0x6dc   : > { %4095 = vst.msk [vmem:[#allocation9 + $0x1f8] sm:$0xff] %vm4087_vm4, %v4078_v45  ;;  %vm734_vm4 = vcmask 15360  }
 0x6dd   : > { %v4367_v44 = vpop.permute.xlu0 %4366  ;;  %742 = vst.msk [vmem:[#allocation8 + $0x30] sm:$0xff] %vm734_vm4, %v8484_v55  ;;  %735 = vst.msk [vmem:[#allocation8] sm:$0xff] %vm734_vm4, %v8484_v55 }
 0x6de   : > { %4387 = vst.msk [vmem:[#allocation9 + $0x120] sm:$0xff] %vm4382_vm13, %v4367_v44  ;;  %v6832_v44 = vld [vmem:[%s9082_s6] sm:$0xff]  }
 0x6df   : > { %v4127_v46 = vpop.permute.xlu1 %4126  ;;  %6524 = vmatprep.subr.bf16.mxu0 %v6832_v44  ;;  %738 = vst.msk [vmem:[#allocation8 + $0x10] sm:$0xff] %vm734_vm4, %v8484_v55  ;;  %740 = vst.msk [vmem:[#allocation8 + $0x20] sm:$0xff] %vm734_vm4, %v8484_v55 }
 0x6e0   : > { %4144 = vst.msk [vmem:[#allocation9 + $0x1f8] sm:$0xff] %vm4136_vm5, %v4127_v46  ;;  %6525 = vmatpush3.bf16.msra.mxu0 %v6832_v44  ;;  %v6833_v46 = vld [vmem:[%s9082_s6 + $0x8] sm:$0xff]   ;;  %vm736_vm5 = vcmask 9216  }
 0x6e1   : > { %v4416_v47 = vpop.permute.xlu0 %4415  ;;  %6526 = vmatprep.subr.bf16.mxu0 %v6833_v46  ;;  %743 = vst.msk [vmem:[#allocation8 + $0x38] sm:$0x3] %vm736_vm5, %v8484_v55  ;;  %737 = vst.msk [vmem:[#allocation8 + $0x8] sm:$0x3] %vm736_vm5, %v8484_v55 }
 0x6e2   : > { %4436 = vst.msk [vmem:[#allocation9 + $0x120] sm:$0xff] %vm4431_vm14, %v4416_v47 }
 0x6e3   : > { %v4320_v48 = vpop.permute.xlu1 %4319  ;;  %739 = vst.msk [vmem:[#allocation8 + $0x18] sm:$0x3] %vm736_vm5, %v8484_v55  ;;  %741 = vst.msk [vmem:[#allocation8 + $0x28] sm:$0x3] %vm736_vm5, %v8484_v55 }
 0x6e4   : > { %4339 = vst.msk [vmem:[#allocation9 + $0x168] sm:$0xff] %vm4333_vm12, %v4320_v48  ;;  %6527 = vmatpush3.bf16.msra.mxu0 %v6833_v46  ;;  %v6834_v48 = vld [vmem:[%s9082_s6 + $0x10] ss:$0 sps:$4 sm:$0x33]  }
 0x6e5   : > { %v4174_v49 = vpop.permute.xlu0 %4173  ;;  %6657 = vmatprep.subr.msk.bf16.mxu0 %vm5047_vm3, %v6834_v48  ;;  %744 = vst.msk [vmem:[#allocation8 + $0x40] sm:$0xff] %vm734_vm4, %v8484_v55  ;;  %746 = vst.msk [vmem:[#allocation8 + $0x50] sm:$0xff] %vm734_vm4, %v8484_v55 }
 0x6e6   : > { %4192 = vst.msk [vmem:[#allocation9 + $0x1b0] sm:$0xff] %vm4185_vm7, %v4174_v49  ;;  %v5049_v49 = vsel %vm5047_vm3, %v6834_v48, 0  ;;  %vm5377_vm3 = vcmask 97360  }
 0x6e7   : > { %v4369_v51 = vpop.permute.xlu1 %4368  ;;  %745 = vst.msk [vmem:[#allocation8 + $0x48] sm:$0x3] %vm736_vm5, %v8484_v55  ;;  %747 = vst.msk [vmem:[#allocation8 + $0x58] sm:$0x3] %vm736_vm5, %v8484_v55 }
 0x6e8   : > { %4388 = vst.msk [vmem:[#allocation9 + $0x168] sm:$0xff] %vm4382_vm13, %v4369_v51  ;;  %6529 = vmatpush3.bf16.msra.mxu0 %v5049_v49 }
 0x6e9   : > { %v4223_v52 = vpop.permute.xlu0 %4222  ;;  %v4444_v50 = vld [vmem:[#allocation9 + $0x120] sm:$0xff]  ;;  %748 = vst.msk [vmem:[#allocation8 + $0x60] sm:$0xff] %vm734_vm4, %v8484_v55  ;;  %750 = vst.msk [vmem:[#allocation8 + $0x70] sm:$0xff] %vm734_vm4, %v8484_v55 }
 0x6ea   : > { %4241 = vst.msk [vmem:[#allocation9 + $0x1b0] sm:$0xff] %vm4234_vm10, %v4223_v52 }
 0x6eb   : > { %v4418_v56 = vpop.permute.xlu1 %4417  ;;  %749 = vst.msk [vmem:[#allocation8 + $0x68] sm:$0x3] %vm736_vm5, %v8484_v55  ;;  %751 = vst.msk [vmem:[#allocation8 + $0x78] sm:$0x3] %vm736_vm5, %v8484_v55 }
 0x6ec   : > { %4437 = vst.msk [vmem:[#allocation9 + $0x168] sm:$0xff] %vm4431_vm14, %v4418_v56 }
 0x6ed   : > { %v4272_v58 = vpop.permute.xlu0 %4271  ;;  %752 = vst.msk [vmem:[#allocation8 + $0x80] sm:$0xff] %vm734_vm4, %v8484_v55  ;;  %754 = vst.msk [vmem:[#allocation8 + $0x90] sm:$0xff] %vm734_vm4, %v8484_v55 }
 0x6ee   : > { %4290 = vst.msk [vmem:[#allocation9 + $0x1b0] sm:$0xff] %vm4283_vm11, %v4272_v58 }
 0x6ef   : > { %v4176_v39 = vpop.permute.xlu1 %4175  ;;  %753 = vst.msk [vmem:[#allocation8 + $0x88] sm:$0x3] %vm736_vm5, %v8484_v55  ;;  %755 = vst.msk [vmem:[#allocation8 + $0x98] sm:$0x3] %vm736_vm5, %v8484_v55  ;;  %vm5476_vm5 = vcmask 130160  }
 0x6f0   : > { %4193 = vst.msk [vmem:[#allocation9 + $0x1f8] sm:$0xff] %vm4185_vm7, %v4176_v39  ;;  %vm4789_vm7 = vcmask 162944  }
 0x6f1   : > { %v4322_v57 = vpop.permute.xlu0 %4321 }
 0x6f2   : > { %4340 = vst.msk [vmem:[#allocation9 + $0x1b0] sm:$0xff] %vm4333_vm12, %v4322_v57 }
 0x6f3   : > { %v4225_v40 = vpop.permute.xlu1 %4224  ;;  %v4445_v60 = vld [vmem:[#allocation9 + $0x168] sm:$0xff] }
 0x6f4   : > { %4242 = vst.msk [vmem:[#allocation9 + $0x1f8] sm:$0xff] %vm4234_vm10, %v4225_v40  ;;  %v4450_v61 = vpack.c.bf16 %v4445_v60, %v4444_v50  ;;  %v4953_v60 = vld [vmem:[#allocation7 + $0x92] sm:$0xff]  ;;  %vm4937_vm10 = vcmask 261344  }
 0x6f5   : > { %v4371_v62 = vpop.permute.xlu0 %4370 }
 0x6f6   : > { %4389 = vst.msk [vmem:[#allocation9 + $0x1b0] sm:$0xff] %vm4382_vm13, %v4371_v62  ;;  %6520 = vmatprep.mubr.msk.bf16.mxu0 %vm4495_vm15, %v4450_v61 }
 0x6f7   : > { %v4274_v63 = vpop.permute.xlu1 %4273 }
 0x6f8   : > { %4291 = vst.msk [vmem:[#allocation9 + $0x1f8] sm:$0xff] %vm4283_vm11, %v4274_v63  ;;  %vm4986_vm11 = vcmask 294144  }
 0x6f9   : > { %4341 = vst.msk [vmem:[#allocation9 + $0x1f8] sm:$0xff] %vm4333_vm12, %v8471_v54  ;;  %v4420_v0 = vpop.permute.xlu0 %4419  ;;  %v4651_v54 = vld [vmem:[#allocation7 + $0x2] sm:$0xff]  ;;  %vm5034_vm12 = vcmask 293888  }
 0x6fa   : > { %4390 = vst.msk [vmem:[#allocation9 + $0x1f8] sm:$0xff] %vm4382_vm13, %v8476_v37  ;;  %4667 = vrot.lane.b32.xlu0 %v4651_v54, %s6858_s20  ;;  %v4586_v37 = vld [vmem:[#allocation7] sm:$0xff]  ;;  %vm5181_vm13 = vcmask 31760  }
 0x6fb   : > { %4438 = vst.msk [vmem:[#allocation9 + $0x1b0] sm:$0xff] %vm4431_vm14, %v4420_v0  ;;  %v4422_v34 = vpop.permute.xlu1 %4421 }
 0x6fc   : > { %4439 = vst.msk [vmem:[#allocation9 + $0x1f8] sm:$0xff] %vm4431_vm14, %v4422_v34  ;;  %vm5230_vm14 = vcmask 48160  }
 0x6fd   : > { %4594 = vst.msk [vmem:[#allocation9] sm:$0xff] %vm712_vm8, %v4586_v37 }
 0x702   : > { %v4446_v3 = vld [vmem:[#allocation9 + $0x1b0] sm:$0xff] }
 0x703   : > { %v4447_v59 = vld [vmem:[#allocation9 + $0x1f8] sm:$0xff] }
 0x704   : > { %v4451_v4 = vpack.c.bf16 %v4447_v59, %v4446_v3 }
 0x706   : > { %6521 = vmatmul.mubr.msk.bf16.gmra.mrb[72].mxu0 %vm4495_vm15, %v4451_v4  ;;  %vm5578_vm15 = vcmask 1040384  }
 0x70f   : > { %v4619_v10 = vpop.permute.xlu0 %4618 }
 0x710   : > { %4643 = vst.msk [vmem:[#allocation9] sm:$0xff] %vm4642_vm1, %v4619_v10 }
 0x711   : > { %v8689_v40 = vpop.permute.xlu1 %4878 }
 0x715   : > { %v8695_v50 = vpop.permute.xlu1 %4927 }
 0x76c   : > { %v4668_v11 = vpop.permute.xlu0 %4667 }
 0x76d   : > { %4692 = vst.msk [vmem:[#allocation9] sm:$0xff] %vm4691_vm2, %v4668_v11 }
 0x7a5   : > { %v6518_v13 = vpop.f32.mrb[68].mxu0 }
 0x7a6   : > { %v4555_v14 = vadd.f32 %v6518_v13, %v8603_v12  ;;  %v4546_v15 = vpop.f32.mrb[69].mxu0 }
 0x7a7   : > { %v4547_v16 = vadd.f32 %v8603_v12, %v4546_v15  ;;  %v6519_v6 = vpop.f32.mrb[70].mxu0 }
 0x7a8   : > { %4580 = vst.msk [vmem:[#allocation7 + $0x31] sm:$0xff] %vm712_vm8, %v4555_v14  ;;  %v4558_v17 = vadd.f32 %v6519_v6, %v8603_v12  ;;  %v4549_v18 = vpop.f32.mrb[71].mxu0 }
 0x7a9   : > { %4578 = vst.msk [vmem:[#allocation7 + $0x11] sm:$0xff] %vm712_vm8, %v4547_v16  ;;  %v4550_v2 = vadd.f32 %v8603_v12, %v4549_v18 }
 0x7aa   : > { %4581 = vst.msk [vmem:[#allocation7 + $0x41] sm:$0xff] %vm712_vm8, %v4558_v17 }
 0x7ab   : > { %4579 = vst.msk [vmem:[#allocation7 + $0x21] sm:$0xff] %vm712_vm8, %v4550_v2 }
 0x7af   : > { %v4702_v9 = vld [vmem:[#allocation7 + $0x30] sm:$0xff] }
 0x7b0   : > { %v4605_v20 = vld [vmem:[#allocation7 + $0x31] sm:$0xff]  ;;  %4720 = vrot.lane.b32.xlu0 %v4702_v9, %s6864_s3  ;;  %4597 = vst.msk [vmem:[#allocation9 + $0xd8] sm:$0xff] %vm712_vm8, %v4702_v9 }
 0x7b1   : > { %4624 = vrot.lane.b32.xlu1 %v4605_v20, %s6862_s21  ;;  %v4700_v22 = vld [vmem:[#allocation7 + $0x10] sm:$0xff]  ;;  %v4850_v23 = vld [vmem:[#allocation7 + $0x40] sm:$0xff] }
 0x7b2   : > { %4595 = vst.msk [vmem:[#allocation9 + $0x48] sm:$0xff] %vm712_vm8, %v4700_v22  ;;  %v4701_v24 = vld [vmem:[#allocation7 + $0x20] sm:$0xff]  ;;  %4598 = vst.msk [vmem:[#allocation9 + $0x120] sm:$0xff] %vm712_vm8, %v4850_v23  ;;  %v4654_v25 = vld [vmem:[#allocation7 + $0x32] sm:$0xff] }
 0x7b3   : > { %4596 = vst.msk [vmem:[#allocation9 + $0x90] sm:$0xff] %vm712_vm8, %v4701_v24  ;;  %v4749_v7 = vld [vmem:[#allocation7 + $0x11] sm:$0xff]  ;;  %v4899_v28 = vld [vmem:[#allocation7 + $0x41] sm:$0xff] }
 0x7b4   : > { %4769 = vrot.lane.b32.xlu0 %v4605_v20, %s6853_s27  ;;  %v4798_v26 = vld [vmem:[#allocation7 + $0x12] sm:$0xff]  ;;  %v4948_v27 = vld [vmem:[#allocation7 + $0x42] sm:$0xff] }
 0x7b5   : > { %4673 = vrot.lane.b32.xlu1 %v4654_v25, %s6858_s20  ;;  %v4604_v33 = vld [vmem:[#allocation7 + $0x21] sm:$0xff] }
 0x7b6   : > { %v4653_v38 = vld [vmem:[#allocation7 + $0x22] sm:$0xff] }
 0x7b8   : > { %4818 = vrot.lane.b32.xlu0 %v4654_v25, %s6865_s28 }
 0x7b9   : > { %4866 = vrot.lane.b32.xlu1 %v4702_v9, %s6860_s30 }
 0x7bc   : > { %4716 = vrot.lane.b32.xlu0 %v4700_v22, %s6864_s3 }
 0x7bd   : > { %4915 = vrot.lane.b32.xlu1 %v4605_v20, %s6863_s0 }
 0x7c0   : > { %4765 = vrot.lane.b32.xlu0 %v4749_v7, %s6853_s27 }
 0x7c1   : > { %4964 = vrot.lane.b32.xlu1 %v4654_v25, %s6851_s2 }
 0x7c4   : > { %4814 = vrot.lane.b32.xlu0 %v4798_v26, %s6865_s28 }
 0x7c5   : > { %4620 = vrot.lane.b32.xlu1 %v4749_v7, %s6862_s21 }
 0x7c8   : > { %4868 = vrot.lane.b32.xlu0 %v4850_v23, %s6860_s30 }
 0x7c9   : > { %4669 = vrot.lane.b32.xlu1 %v4798_v26, %s6858_s20 }
 0x7cc   : > { %4917 = vrot.lane.b32.xlu0 %v4899_v28, %s6863_s0 }
 0x7cd   : > { %4722 = vrot.lane.b32.xlu1 %v4850_v23, %s6864_s3 }
 0x7d0   : > { %4626 = vrot.lane.b32.xlu0 %v4899_v28, %s6862_s21 }
 0x7d1   : > { %4771 = vrot.lane.b32.xlu1 %v4899_v28, %s6853_s27 }
 0x7d4   : > { %4966 = vrot.lane.b32.xlu0 %v4948_v27, %s6851_s2 }
 0x7d5   : > { %4820 = vrot.lane.b32.xlu1 %v4948_v27, %s6865_s28 }
 0x7d8   : > { %4675 = vrot.lane.b32.xlu0 %v4948_v27, %s6858_s20 }
 0x7d9   : > { %4718 = vrot.lane.b32.xlu1 %v4701_v24, %s6864_s3  ;;  %v6522_v29 = vpop.f32.mrb[72].mxu0 }
 0x7da   : > { %v4571_v30 = vadd.f32 %v6522_v29, %v8603_v12  ;;  %v4562_v1 = vpop.f32.mrb[73].mxu0 }
 0x7db   : > { %v4563_v31 = vadd.f32 %v8603_v12, %v4562_v1  ;;  %v6523_v32 = vpop.f32.mrb[74].mxu0 }
 0x7dc   : > { %4584 = vst.msk [vmem:[#allocation7 + $0x71] sm:$0xff] %vm712_vm8, %v4571_v30  ;;  %v4574_v35 = vadd.f32 %v6523_v32, %v8603_v12  ;;  %v4565_v19 = vpop.f32.mrb[75].mxu0  ;;  %4622 = vrot.lane.b32.xlu0 %v4604_v33, %s6862_s21 }
 0x7dd   : > { %4767 = vrot.lane.b32.xlu1 %v4604_v33, %s6853_s27  ;;  %4582 = vst.msk [vmem:[#allocation7 + $0x51] sm:$0xff] %vm712_vm8, %v4563_v31  ;;  %v4566_v36 = vadd.f32 %v8603_v12, %v4565_v19 }
 0x7de   : > { %4585 = vst.msk [vmem:[#allocation7 + $0x81] sm:$0xff] %vm712_vm8, %v4574_v35 }
 0x7df   : > { %4583 = vst.msk [vmem:[#allocation7 + $0x61] sm:$0xff] %vm712_vm8, %v4566_v36 }
 0x7e0   : > { %4671 = vrot.lane.b32.xlu0 %v4653_v38, %s6858_s20 }
 0x7e1   : > { %4816 = vrot.lane.b32.xlu1 %v4653_v38, %s6865_s28 }
 0x7e3   : > { %v4609_v41 = vld [vmem:[#allocation7 + $0x71] sm:$0xff] }
 0x7e4   : > { %v4853_v42 = vld [vmem:[#allocation7 + $0x70] sm:$0xff]  ;;  %4864 = vrot.lane.b32.xlu0 %v4701_v24, %s6860_s30 }
 0x7e5   : > { %4632 = vrot.lane.b32.xlu1 %v4609_v41, %s6862_s21  ;;  %v4851_v21 = vld [vmem:[#allocation7 + $0x50] sm:$0xff]  ;;  %4601 = vst.msk [vmem:[#allocation9 + $0x1f8] sm:$0xff] %vm712_vm8, %v4853_v42  ;;  %v4854_v52 = vld [vmem:[#allocation7 + $0x80] sm:$0xff] }
 0x7e6   : > { %4599 = vst.msk [vmem:[#allocation9 + $0x168] sm:$0xff] %vm712_vm8, %v4851_v21  ;;  %v4852_v43 = vld [vmem:[#allocation7 + $0x60] sm:$0xff]  ;;  %v4658_v45 = vld [vmem:[#allocation7 + $0x72] sm:$0xff] }
 0x7e7   : > { %4600 = vst.msk [vmem:[#allocation9 + $0x1b0] sm:$0xff] %vm712_vm8, %v4852_v43  ;;  %v4900_v47 = vld [vmem:[#allocation7 + $0x51] sm:$0xff]  ;;  %v4903_v56 = vld [vmem:[#allocation7 + $0x81] sm:$0xff]  ;;  %vm4838_vm8 = vcmask 195744  }
 0x7e8   : > { %4913 = vrot.lane.b32.xlu0 %v4604_v33, %s6863_s0  ;;  %v4802_v51 = vld [vmem:[#allocation7 + $0x52] sm:$0xff]  ;;  %v4608_v58 = vld [vmem:[#allocation7 + $0x61] sm:$0xff] }
 0x7e9   : > { %4681 = vrot.lane.b32.xlu1 %v4658_v45, %s6858_s20  ;;  %v4657_v39 = vld [vmem:[#allocation7 + $0x62] sm:$0xff] }
 0x7ea   : > { %v4805_v57 = vld [vmem:[#allocation7 + $0x82] sm:$0xff] }
 0x7ec   : > { %4962 = vrot.lane.b32.xlu0 %v4653_v38, %s6851_s2 }
 0x7ed   : > { %4874 = vrot.lane.b32.xlu1 %v4853_v42, %s6860_s30 }
 0x7f0   : > { %4728 = vrot.lane.b32.xlu0 %v4853_v42, %s6864_s3 }
 0x7f1   : > { %4923 = vrot.lane.b32.xlu1 %v4609_v41, %s6863_s0 }
 0x7f4   : > { %4777 = vrot.lane.b32.xlu0 %v4609_v41, %s6853_s27 }
 0x7f5   : > { %4972 = vrot.lane.b32.xlu1 %v4658_v45, %s6851_s2 }
 0x7f8   : > { %4826 = vrot.lane.b32.xlu0 %v4658_v45, %s6865_s28 }
 0x7f9   : > { %4870 = vrot.lane.b32.xlu1 %v4851_v21, %s6860_s30 }
 0x7fc   : > { %4724 = vrot.lane.b32.xlu0 %v4851_v21, %s6864_s3 }
 0x7fd   : > { %4919 = vrot.lane.b32.xlu1 %v4900_v47, %s6863_s0 }
 0x800   : > { %4773 = vrot.lane.b32.xlu0 %v4900_v47, %s6853_s27 }
 0x801   : > { %4628 = vrot.lane.b32.xlu1 %v4900_v47, %s6862_s21 }
 0x804   : > { %4822 = vrot.lane.b32.xlu0 %v4802_v51, %s6865_s28 }
 0x805   : > { %4968 = vrot.lane.b32.xlu1 %v4802_v51, %s6851_s2 }
 0x808   : > { %4876 = vrot.lane.b32.xlu0 %v4854_v52, %s6860_s30 }
 0x809   : > { %4677 = vrot.lane.b32.xlu1 %v4802_v51, %s6858_s20 }
 0x80c   : > { %4925 = vrot.lane.b32.xlu0 %v4903_v56, %s6863_s0 }
 0x80d   : > { %4730 = vrot.lane.b32.xlu1 %v4854_v52, %s6864_s3 }
 0x810   : > { %4630 = vrot.lane.b32.xlu0 %v4608_v58, %s6862_s21 }
 0x811   : > { %4779 = vrot.lane.b32.xlu1 %v4903_v56, %s6853_s27 }
 0x814   : > { %4679 = vrot.lane.b32.xlu0 %v4657_v39, %s6858_s20 }
 0x815   : > { %4828 = vrot.lane.b32.xlu1 %v4805_v57, %s6865_s28 }
 0x818   : > { %4872 = vrot.lane.b32.xlu0 %v4852_v43, %s6860_s30  ;;  %s6867_s30 = smov 14  }
 0x819   : > { %4726 = vrot.lane.b32.xlu1 %v4852_v43, %s6864_s3 }
 0x81c   : > { %4921 = vrot.lane.b32.xlu0 %v4608_v58, %s6863_s0 }
 0x81d   : > { %4775 = vrot.lane.b32.xlu1 %v4608_v58, %s6853_s27 }
 0x820   : > { %4970 = vrot.lane.b32.xlu0 %v4657_v39, %s6851_s2 }
 0x821   : > { %4824 = vrot.lane.b32.xlu1 %v4657_v39, %s6865_s28 }
 0x822   : > { %v8699_v61 = vpop.permute.xlu0 %4720 }
 0x823   : > { %v4625_v62 = vpop.permute.xlu1 %4624 }
 0x824   : > { %4646 = vst.msk [vmem:[#allocation9 + $0xd8] sm:$0xff] %vm4642_vm1, %v4625_v62  ;;  %4974 = vrot.lane.b32.xlu0 %v4805_v57, %s6851_s2 }
 0x825   : > { %4976 = vrot.lane.b32.xlu1 %v4953_v60, %s6851_s2  ;;  %s6866_s2 = smov 2  }
 0x826   : > { %v4770_v63 = vpop.permute.xlu0 %4769 }
 0x827   : > { %v4674_v0 = vpop.permute.xlu1 %4673 }
 0x828   : > { %4695 = vst.msk [vmem:[#allocation9 + $0xd8] sm:$0xff] %vm4691_vm2, %v4674_v0 }
 0x82a   : > { %v4819_v34 = vpop.permute.xlu0 %4818 }
 0x82b   : > { %v4867_v3 = vpop.permute.xlu1 %4866 }
 0x82e   : > { %v4717_v4 = vpop.permute.xlu0 %4716 }
 0x82f   : > { %v4916_v59 = vpop.permute.xlu1 %4915  ;;  %4741 = vst.msk [vmem:[#allocation9] sm:$0xff] %vm4740_vm6, %v4717_v4 }
 0x832   : > { %v4766_v55 = vpop.permute.xlu0 %4765 }
 0x833   : > { %v4965_v53 = vpop.permute.xlu1 %4964  ;;  %4790 = vst.msk [vmem:[#allocation9] sm:$0xff] %vm4789_vm7, %v4766_v55  ;;  %v5394_v55 = vld [vmem:[#allocation8 + $0x90] sm:$0xff] }
 0x834   : > { %5417 = vrot.lane.b32.xlu1 %v5394_v55, %s6864_s3 }
 0x836   : > { %v4815_v8 = vpop.permute.xlu0 %4814 }
 0x837   : > { %v4621_v54 = vpop.permute.xlu1 %4620  ;;  %4839 = vst.msk [vmem:[#allocation9] sm:$0xff] %vm4838_vm8, %v4815_v8  ;;  %v5190_v8 = vld [vmem:[#allocation8 + $0x2] sm:$0xff] }
 0x838   : > { %4644 = vst.msk [vmem:[#allocation9 + $0x48] sm:$0xff] %vm4642_vm1, %v4621_v54  ;;  %v5443_v54 = vld [vmem:[#allocation8 + $0x91] sm:$0xff] }
 0x839   : > { %5466 = vrot.lane.b32.xlu1 %v5443_v54, %s6867_s30 }
 0x83a   : > { %v4869_v5 = vpop.permute.xlu0 %4868 }
 0x83b   : > { %v4670_v37 = vpop.permute.xlu1 %4669 }
 0x83c   : > { %4693 = vst.msk [vmem:[#allocation9 + $0x48] sm:$0xff] %vm4691_vm2, %v4670_v37 }
 0x83e   : > { %v4918_v10 = vpop.permute.xlu0 %4917 }
 0x83f   : > { %v4723_v11 = vpop.permute.xlu1 %4722 }
 0x840   : > { %4744 = vst.msk [vmem:[#allocation9 + $0xd8] sm:$0xff] %vm4740_vm6, %v4723_v11  ;;  %v6081_v11 = vld [vmem:[%s9089_s13] ss:$0 sm:$0xff] }
 0x842   : > { %v4627_v12 = vpop.permute.xlu0 %4626 }
 0x843   : > { %v4772_v13 = vpop.permute.xlu1 %4771  ;;  %4647 = vst.msk [vmem:[#allocation9 + $0x120] sm:$0xff] %vm4642_vm1, %v4627_v12 }
 0x844   : > { %4793 = vst.msk [vmem:[#allocation9 + $0xd8] sm:$0xff] %vm4789_vm7, %v4772_v13 }
 0x846   : > { %v4967_v14 = vpop.permute.xlu0 %4966 }
 0x847   : > { %v4821_v15 = vpop.permute.xlu1 %4820 }
 0x848   : > { %4842 = vst.msk [vmem:[#allocation9 + $0xd8] sm:$0xff] %vm4838_vm8, %v4821_v15 }
 0x84a   : > { %v4676_v16 = vpop.permute.xlu0 %4675 }
 0x84b   : > { %v4719_v6 = vpop.permute.xlu1 %4718  ;;  %4696 = vst.msk [vmem:[#allocation9 + $0x120] sm:$0xff] %vm4691_vm2, %v4676_v16 }
 0x84c   : > { %4742 = vst.msk [vmem:[#allocation9 + $0x48] sm:$0xff] %vm4740_vm6, %v4719_v6 }
 0x84e   : > { %v4623_v17 = vpop.permute.xlu0 %4622 }
 0x84f   : > { %v4768_v18 = vpop.permute.xlu1 %4767  ;;  %4645 = vst.msk [vmem:[#allocation9 + $0x90] sm:$0xff] %vm4642_vm1, %v4623_v17 }
 0x850   : > { %4791 = vst.msk [vmem:[#allocation9 + $0x48] sm:$0xff] %vm4789_vm7, %v4768_v18 }
 0x852   : > { %v4672_v2 = vpop.permute.xlu0 %4671 }
 0x853   : > { %v4817_v9 = vpop.permute.xlu1 %4816  ;;  %4694 = vst.msk [vmem:[#allocation9 + $0x90] sm:$0xff] %vm4691_vm2, %v4672_v2 }
 0x854   : > { %4840 = vst.msk [vmem:[#allocation9 + $0x48] sm:$0xff] %vm4838_vm8, %v4817_v9 }
 0x855   : > { %4743 = vst.msk [vmem:[#allocation9 + $0x90] sm:$0xff] %vm4740_vm6, %v8699_v61 }
 0x856   : > { %4890 = vst.msk [vmem:[#allocation9 + $0x48] sm:$0xff] %vm4888_vm9, %v4867_v3  ;;  %v4865_v20 = vpop.permute.xlu0 %4864 }
 0x857   : > { %4792 = vst.msk [vmem:[#allocation9 + $0x90] sm:$0xff] %vm4789_vm7, %v4770_v63  ;;  %v4633_v22 = vpop.permute.xlu1 %4632 }
 0x858   : > { %4939 = vst.msk [vmem:[#allocation9 + $0x48] sm:$0xff] %vm4937_vm10, %v4916_v59 }
 0x859   : > { %4841 = vst.msk [vmem:[#allocation9 + $0x90] sm:$0xff] %vm4838_vm8, %v4819_v34 }
 0x85a   : > { %4988 = vst.msk [vmem:[#allocation9 + $0x48] sm:$0xff] %vm4986_vm11, %v4965_v53  ;;  %v4914_v23 = vpop.permute.xlu0 %4913  ;;  %v5141_v53 = vld [vmem:[#allocation8 + $0x1] sm:$0xff] }
 0x85b   : > { %4891 = vst.msk [vmem:[#allocation9 + $0x90] sm:$0xff] %vm4888_vm9, %v4869_v5  ;;  %4889 = vst.msk [vmem:[#allocation9] sm:$0xff] %vm4888_vm9, %v4865_v20  ;;  %v4682_v24 = vpop.permute.xlu1 %4681  ;;  %5157 = vrot.lane.b32.xlu0 %v5141_v53, %s6866_s2  ;;  %v5125_v5 = vld [vmem:[#allocation8] sm:$0xff] }
 0x85c   : > { %4650 = vst.msk [vmem:[#allocation9 + $0x1f8] sm:$0xff] %vm4642_vm1, %v4633_v22 }
 0x85d   : > { %4940 = vst.msk [vmem:[#allocation9 + $0x90] sm:$0xff] %vm4937_vm10, %v4918_v10  ;;  %4938 = vst.msk [vmem:[#allocation9] sm:$0xff] %vm4937_vm10, %v4914_v23 }
 0x85e   : > { %4989 = vst.msk [vmem:[#allocation9 + $0x90] sm:$0xff] %vm4986_vm11, %v4967_v14  ;;  %v4963_v25 = vpop.permute.xlu0 %4962 }
 0x85f   : > { %4699 = vst.msk [vmem:[#allocation9 + $0x1f8] sm:$0xff] %vm4691_vm2, %v4682_v24  ;;  %v8774_v7 = vpop.permute.xlu1 %4874  ;;  %5206 = vrot.lane.b32.xlu0 %v5190_v8, %s6862_s21 }
 0x860   : > { %4987 = vst.msk [vmem:[#allocation9] sm:$0xff] %vm4986_vm11, %v4963_v25 }
 0x861   : > { %v4996_v1 = vld [vmem:[#allocation9 + $0x48] sm:$0xff] }
 0x862   : > { %v4729_v26 = vpop.permute.xlu0 %4728 }
 0x863   : > { %v4924_v28 = vpop.permute.xlu1 %4923 }
 0x865   : > { %v4997_v46 = vld [vmem:[#allocation9 + $0x90] sm:$0xff] }
 0x866   : > { %v4778_v27 = vpop.permute.xlu0 %4777 }
 0x867   : > { %v4973_v29 = vpop.permute.xlu1 %4972  ;;  %v4995_v30 = vld [vmem:[#allocation9] sm:$0xff] }
 0x868   : > { %v5003_v31 = vpack.c.bf16 %v4996_v1, %v4995_v30  ;;  %5133 = vst.msk [vmem:[#allocation9] sm:$0xff] %vm734_vm4, %v5125_v5 }
 0x86a   : > { %6530 = vmatprep.mubr.msk.bf16.mxu0 %vm5034_vm12, %v5003_v31  ;;  %v4827_v32 = vpop.permute.xlu0 %4826 }
 0x86b   : > { %v4871_v33 = vpop.permute.xlu1 %4870 }
 0x86c   : > { %4892 = vst.msk [vmem:[#allocation9 + $0xd8] sm:$0xff] %vm4888_vm9, %v4871_v33 }
 0x86e   : > { %v4725_v35 = vpop.permute.xlu0 %4724 }
 0x86f   : > { %v4920_v19 = vpop.permute.xlu1 %4919  ;;  %4745 = vst.msk [vmem:[#allocation9 + $0x120] sm:$0xff] %vm4740_vm6, %v4725_v35 }
 0x870   : > { %4941 = vst.msk [vmem:[#allocation9 + $0xd8] sm:$0xff] %vm4937_vm10, %v4920_v19 }
 0x872   : > { %v4774_v36 = vpop.permute.xlu0 %4773 }
 0x873   : > { %v4629_v38 = vpop.permute.xlu1 %4628  ;;  %4794 = vst.msk [vmem:[#allocation9 + $0x120] sm:$0xff] %vm4789_vm7, %v4774_v36 }
 0x874   : > { %4648 = vst.msk [vmem:[#allocation9 + $0x168] sm:$0xff] %vm4642_vm1, %v4629_v38 }
 0x876   : > { %v4823_v41 = vpop.permute.xlu0 %4822 }
 0x877   : > { %v4969_v42 = vpop.permute.xlu1 %4968  ;;  %4843 = vst.msk [vmem:[#allocation9 + $0x120] sm:$0xff] %vm4838_vm8, %v4823_v41 }
 0x878   : > { %4990 = vst.msk [vmem:[#allocation9 + $0xd8] sm:$0xff] %vm4986_vm11, %v4969_v42 }
 0x87a   : > { %v4877_v21 = vpop.permute.xlu0 %4876 }
 0x87b   : > { %v4678_v43 = vpop.permute.xlu1 %4677 }
 0x87c   : > { %4697 = vst.msk [vmem:[#allocation9 + $0x168] sm:$0xff] %vm4691_vm2, %v4678_v43 }
 0x87e   : > { %v4926_v45 = vpop.permute.xlu0 %4925 }
 0x87f   : > { %v4731_v44 = vpop.permute.xlu1 %4730  ;;  %v4998_v47 = vld [vmem:[#allocation9 + $0xd8] sm:$0xff] }
 0x880   : > { %4748 = vst.msk [vmem:[#allocation9 + $0x1f8] sm:$0xff] %vm4740_vm6, %v4731_v44  ;;  %v5004_v48 = vpack.c.bf16 %v4998_v47, %v4997_v46  ;;  %v6836_v46 = vld [vmem:[%s9083_s7 + $0x8] ss:$0 sps:$4 sm:$0x11]  }
 0x881   : > { %v5580_v47 = vsel %vm5578_vm15, %v6836_v46, 0 }
 0x882   : > { %6531 = vmatmul.mubr.msk.bf16.vlgmr.msra.gmra.mrb[76].mxu0 %vm5034_vm12, %v5004_v48  ;;  %v4631_v49 = vpop.permute.xlu0 %4630 }
 0x883   : > { %v4780_v51 = vpop.permute.xlu1 %4779  ;;  %4649 = vst.msk [vmem:[#allocation9 + $0x1b0] sm:$0xff] %vm4642_vm1, %v4631_v49  ;;  %vm5279_vm1 = vcmask 64560  }
 0x884   : > { %4797 = vst.msk [vmem:[#allocation9 + $0x1f8] sm:$0xff] %vm4789_vm7, %v4780_v51 }
 0x886   : > { %v4680_v52 = vpop.permute.xlu0 %4679 }
 0x887   : > { %v4829_v56 = vpop.permute.xlu1 %4828  ;;  %4698 = vst.msk [vmem:[#allocation9 + $0x1b0] sm:$0xff] %vm4691_vm2, %v4680_v52  ;;  %vm5328_vm2 = vcmask 80960  }
 0x888   : > { %4846 = vst.msk [vmem:[#allocation9 + $0x1f8] sm:$0xff] %vm4838_vm8, %v4829_v56 }
 0x889   : > { %4747 = vst.msk [vmem:[#allocation9 + $0x1b0] sm:$0xff] %vm4740_vm6, %v4729_v26 }
 0x88a   : > { %4896 = vst.msk [vmem:[#allocation9 + $0x1f8] sm:$0xff] %vm4888_vm9, %v8689_v40  ;;  %v4873_v58 = vpop.permute.xlu0 %4872 }
 0x88b   : > { %4796 = vst.msk [vmem:[#allocation9 + $0x1b0] sm:$0xff] %vm4789_vm7, %v4778_v27  ;;  %v4727_v39 = vpop.permute.xlu1 %4726 }
 0x88c   : > { %4945 = vst.msk [vmem:[#allocation9 + $0x1f8] sm:$0xff] %vm4937_vm10, %v8695_v50 }
 0x88d   : > { %4845 = vst.msk [vmem:[#allocation9 + $0x1b0] sm:$0xff] %vm4838_vm8, %v4827_v32 }
 0x88e   : > { %4895 = vst.msk [vmem:[#allocation9 + $0x1b0] sm:$0xff] %vm4888_vm9, %v4877_v21  ;;  %4893 = vst.msk [vmem:[#allocation9 + $0x120] sm:$0xff] %vm4888_vm9, %v4873_v58  ;;  %v4922_v57 = vpop.permute.xlu0 %4921 }
 0x88f   : > { %4746 = vst.msk [vmem:[#allocation9 + $0x168] sm:$0xff] %vm4740_vm6, %v4727_v39  ;;  %v4776_v60 = vpop.permute.xlu1 %4775  ;;  %vm5525_vm6 = vcmask 146560  }
 0x890   : > { %4944 = vst.msk [vmem:[#allocation9 + $0x1b0] sm:$0xff] %vm4937_vm10, %v4926_v45  ;;  %4942 = vst.msk [vmem:[#allocation9 + $0x120] sm:$0xff] %vm4937_vm10, %v4922_v57  ;;  %v6835_v45 = vld [vmem:[%s9083_s7] sm:$0xff]  }
 0x891   : > { %4795 = vst.msk [vmem:[#allocation9 + $0x168] sm:$0xff] %vm4789_vm7, %v4776_v60  ;;  %6538 = vmatprep.subr.bf16.mxu0 %v6835_v45  ;;  %v5492_v60 = vld [vmem:[#allocation8 + $0x92] sm:$0xff]  ;;  %vm5565_vm7 = vcmask 146432  }
 0x892   : > { %v4971_v40 = vpop.permute.xlu0 %4970  ;;  %6539 = vmatpush3.bf16.msra.mxu0 %v6835_v45 }
 0x893   : > { %v4825_v50 = vpop.permute.xlu1 %4824  ;;  %4991 = vst.msk [vmem:[#allocation9 + $0x120] sm:$0xff] %vm4986_vm11, %v4971_v40  ;;  %6658 = vmatprep.subr.msk.bf16.mxu0 %vm5578_vm15, %v6836_v46 }
 0x894   : > { %4844 = vst.msk [vmem:[#allocation9 + $0x168] sm:$0xff] %vm4838_vm8, %v4825_v50  ;;  %vm6871_vm8 = vmmov 0  }
 0x895   : > { %4894 = vst.msk [vmem:[#allocation9 + $0x168] sm:$0xff] %vm4888_vm9, %v8774_v7  ;;  %vm5864_vm9 = vcmask 0  }
 0x896   : > { %4943 = vst.msk [vmem:[#allocation9 + $0x168] sm:$0xff] %vm4937_vm10, %v4924_v28  ;;  %v4975_v61 = vpop.permute.xlu0 %4974  ;;  %6541 = vmatpush3.bf16.msra.mxu0 %v5580_v47 }
 0x897   : > { %4992 = vst.msk [vmem:[#allocation9 + $0x168] sm:$0xff] %vm4986_vm11, %v4973_v29  ;;  %v4977_v62 = vpop.permute.xlu1 %4976  ;;  %4993 = vst.msk [vmem:[#allocation9 + $0x1b0] sm:$0xff] %vm4986_vm11, %v4975_v61 }
 0x898   : > { %4994 = vst.msk [vmem:[#allocation9 + $0x1f8] sm:$0xff] %vm4986_vm11, %v4977_v62 }
 0x89a   : > { %v4999_v63 = vld [vmem:[#allocation9 + $0x120] sm:$0xff] }
 0x89e   : > { %v5000_v0 = vld [vmem:[#allocation9 + $0x168] sm:$0xff]  ;;  %v5001_v3 = vld [vmem:[#allocation9 + $0x1b0] sm:$0xff] }
 0x89f   : > { %v5005_v34 = vpack.c.bf16 %v5000_v0, %v4999_v63  ;;  %v5002_v59 = vld [vmem:[#allocation9 + $0x1f8] sm:$0xff] }
 0x8a0   : > { %v5006_v4 = vpack.c.bf16 %v5002_v59, %v5001_v3 }
 0x8a1   : > { %6534 = vmatprep.mubr.msk.bf16.mxu0 %vm5034_vm12, %v5005_v34 }
 0x8a2   : > { %6535 = vmatmul.mubr.msk.bf16.gmra.mrb[80].mxu0 %vm5034_vm12, %v5006_v4 }
 0x8a6   : > { %v8898_v39 = vpop.permute.xlu1 %5417 }
 0x8ab   : > { %v8904_v57 = vpop.permute.xlu1 %5466 }
 0x8cd   : > { %v5158_v37 = vpop.permute.xlu0 %5157 }
 0x8ce   : > { %5182 = vst.msk [vmem:[#allocation9] sm:$0xff] %vm5181_vm13, %v5158_v37 }
 0x8d1   : > { %v5207_v10 = vpop.permute.xlu0 %5206 }
 0x8d2   : > { %5231 = vst.msk [vmem:[#allocation9] sm:$0xff] %vm5230_vm14, %v5207_v10 }
 0x955   : > { %v6532_v12 = vpop.f32.mrb[76].mxu0 }
 0x956   : > { %v5094_v13 = vadd.f32 %v6532_v12, %v6081_v11  ;;  %v5085_v14 = vpop.f32.mrb[77].mxu0 }
 0x957   : > { %v5086_v15 = vadd.f32 %v6081_v11, %v5085_v14  ;;  %v6533_v16 = vpop.f32.mrb[78].mxu0 }
 0x958   : > { %5119 = vst.msk [vmem:[#allocation8 + $0x31] sm:$0xff] %vm734_vm4, %v5094_v13  ;;  %v5097_v6 = vadd.f32 %v6533_v16, %v6081_v11  ;;  %v5088_v17 = vpop.f32.mrb[79].mxu0 }
 0x959   : > { %5117 = vst.msk [vmem:[#allocation8 + $0x11] sm:$0xff] %vm734_vm4, %v5086_v15  ;;  %v5089_v18 = vadd.f32 %v6081_v11, %v5088_v17 }
 0x95a   : > { %5120 = vst.msk [vmem:[#allocation8 + $0x41] sm:$0xff] %vm734_vm4, %v5097_v6 }
 0x95b   : > { %5118 = vst.msk [vmem:[#allocation8 + $0x21] sm:$0xff] %vm734_vm4, %v5089_v18 }
 0x95f   : > { %v5241_v2 = vld [vmem:[#allocation8 + $0x30] sm:$0xff] }
 0x960   : > { %v5144_v9 = vld [vmem:[#allocation8 + $0x31] sm:$0xff]  ;;  %5259 = vrot.lane.b32.xlu0 %v5241_v2, %s6868_s26  ;;  %5136 = vst.msk [vmem:[#allocation9 + $0xd8] sm:$0xff] %vm734_vm4, %v5241_v2 }
 0x961   : > { %5163 = vrot.lane.b32.xlu1 %v5144_v9, %s6866_s2  ;;  %v5239_v20 = vld [vmem:[#allocation8 + $0x10] sm:$0xff]  ;;  %v5389_v22 = vld [vmem:[#allocation8 + $0x40] sm:$0xff] }
 0x962   : > { %5134 = vst.msk [vmem:[#allocation9 + $0x48] sm:$0xff] %vm734_vm4, %v5239_v20  ;;  %v5240_v23 = vld [vmem:[#allocation8 + $0x20] sm:$0xff]  ;;  %5137 = vst.msk [vmem:[#allocation9 + $0x120] sm:$0xff] %vm734_vm4, %v5389_v22  ;;  %v5193_v24 = vld [vmem:[#allocation8 + $0x32] sm:$0xff] }
 0x963   : > { %5135 = vst.msk [vmem:[#allocation9 + $0x90] sm:$0xff] %vm734_vm4, %v5240_v23  ;;  %v5288_v25 = vld [vmem:[#allocation8 + $0x11] sm:$0xff]  ;;  %v5438_v33 = vld [vmem:[#allocation8 + $0x41] sm:$0xff] }
 0x964   : > { %5308 = vrot.lane.b32.xlu0 %v5144_v9, %s6858_s20  ;;  %v5337_v7 = vld [vmem:[#allocation8 + $0x12] sm:$0xff]  ;;  %v5487_v38 = vld [vmem:[#allocation8 + $0x42] sm:$0xff] }
 0x965   : > { %5212 = vrot.lane.b32.xlu1 %v5193_v24, %s6862_s21  ;;  %v5143_v41 = vld [vmem:[#allocation8 + $0x21] sm:$0xff] }
 0x966   : > { %v5192_v42 = vld [vmem:[#allocation8 + $0x22] sm:$0xff] }
 0x968   : > { %5357 = vrot.lane.b32.xlu0 %v5193_v24, %s6869_s14 }
 0x969   : > { %5405 = vrot.lane.b32.xlu1 %v5241_v2, %s6864_s3 }
 0x96c   : > { %5255 = vrot.lane.b32.xlu0 %v5239_v20, %s6868_s26 }
 0x96d   : > { %5454 = vrot.lane.b32.xlu1 %v5144_v9, %s6867_s30 }
 0x970   : > { %5304 = vrot.lane.b32.xlu0 %v5288_v25, %s6858_s20 }
 0x971   : > { %5503 = vrot.lane.b32.xlu1 %v5193_v24, %s6853_s27 }
 0x974   : > { %5353 = vrot.lane.b32.xlu0 %v5337_v7, %s6869_s14 }
 0x975   : > { %5159 = vrot.lane.b32.xlu1 %v5288_v25, %s6866_s2  ;;  %v6536_v26 = vpop.f32.mrb[80].mxu0 }
 0x976   : > { %v5110_v28 = vadd.f32 %v6536_v26, %v6081_v11  ;;  %v5101_v27 = vpop.f32.mrb[81].mxu0 }
 0x977   : > { %v5102_v29 = vadd.f32 %v6081_v11, %v5101_v27  ;;  %v6537_v30 = vpop.f32.mrb[82].mxu0 }
 0x978   : > { %5123 = vst.msk [vmem:[#allocation8 + $0x71] sm:$0xff] %vm734_vm4, %v5110_v28  ;;  %v5113_v1 = vadd.f32 %v6537_v30, %v6081_v11  ;;  %v5104_v31 = vpop.f32.mrb[83].mxu0  ;;  %5407 = vrot.lane.b32.xlu0 %v5389_v22, %s6864_s3 }
 0x979   : > { %5208 = vrot.lane.b32.xlu1 %v5337_v7, %s6862_s21  ;;  %5121 = vst.msk [vmem:[#allocation8 + $0x51] sm:$0xff] %vm734_vm4, %v5102_v29  ;;  %v5105_v32 = vadd.f32 %v6081_v11, %v5104_v31 }
 0x97a   : > { %5124 = vst.msk [vmem:[#allocation8 + $0x81] sm:$0xff] %vm734_vm4, %v5113_v1 }
 0x97b   : > { %5122 = vst.msk [vmem:[#allocation8 + $0x61] sm:$0xff] %vm734_vm4, %v5105_v32 }
 0x97c   : > { %5456 = vrot.lane.b32.xlu0 %v5438_v33, %s6867_s30 }
 0x97d   : > { %5261 = vrot.lane.b32.xlu1 %v5389_v22, %s6868_s26 }
 0x97f   : > { %v5392_v35 = vld [vmem:[#allocation8 + $0x70] sm:$0xff] }
 0x980   : > { %5165 = vrot.lane.b32.xlu0 %v5438_v33, %s6866_s2  ;;  %v5390_v19 = vld [vmem:[#allocation8 + $0x50] sm:$0xff]  ;;  %5140 = vst.msk [vmem:[#allocation9 + $0x1f8] sm:$0xff] %vm734_vm4, %v5392_v35 }
 0x981   : > { %5310 = vrot.lane.b32.xlu1 %v5438_v33, %s6858_s20  ;;  %5138 = vst.msk [vmem:[#allocation9 + $0x168] sm:$0xff] %vm734_vm4, %v5390_v19  ;;  %v5148_v21 = vld [vmem:[#allocation8 + $0x71] sm:$0xff]  ;;  %v5393_v49 = vld [vmem:[#allocation8 + $0x80] sm:$0xff] }
 0x982   : > { %v5391_v36 = vld [vmem:[#allocation8 + $0x60] sm:$0xff]  ;;  %v5197_v43 = vld [vmem:[#allocation8 + $0x72] sm:$0xff] }
 0x983   : > { %5139 = vst.msk [vmem:[#allocation9 + $0x1b0] sm:$0xff] %vm734_vm4, %v5391_v36  ;;  %v5439_v44 = vld [vmem:[#allocation8 + $0x51] sm:$0xff]  ;;  %v5442_v51 = vld [vmem:[#allocation8 + $0x81] sm:$0xff]  ;;  %vm5427_vm4 = vcmask 113760  }
 0x984   : > { %5505 = vrot.lane.b32.xlu0 %v5487_v38, %s6853_s27  ;;  %v5341_v48 = vld [vmem:[#allocation8 + $0x52] sm:$0xff]  ;;  %v5147_v52 = vld [vmem:[#allocation8 + $0x61] sm:$0xff] }
 0x985   : > { %5359 = vrot.lane.b32.xlu1 %v5487_v38, %s6869_s14  ;;  %v5196_v56 = vld [vmem:[#allocation8 + $0x62] sm:$0xff] }
 0x986   : > { %v5344_v58 = vld [vmem:[#allocation8 + $0x82] sm:$0xff] }
 0x988   : > { %5214 = vrot.lane.b32.xlu0 %v5487_v38, %s6862_s21 }
 0x989   : > { %5257 = vrot.lane.b32.xlu1 %v5240_v23, %s6868_s26 }
 0x98c   : > { %5161 = vrot.lane.b32.xlu0 %v5143_v41, %s6866_s2 }
 0x98d   : > { %5306 = vrot.lane.b32.xlu1 %v5143_v41, %s6858_s20 }
 0x990   : > { %5210 = vrot.lane.b32.xlu0 %v5192_v42, %s6862_s21 }
 0x991   : > { %5355 = vrot.lane.b32.xlu1 %v5192_v42, %s6869_s14 }
 0x994   : > { %5403 = vrot.lane.b32.xlu0 %v5240_v23, %s6864_s3 }
 0x995   : > { %5171 = vrot.lane.b32.xlu1 %v5148_v21, %s6866_s2 }
 0x998   : > { %5452 = vrot.lane.b32.xlu0 %v5143_v41, %s6867_s30 }
 0x999   : > { %5220 = vrot.lane.b32.xlu1 %v5197_v43, %s6862_s21 }
 0x99c   : > { %5501 = vrot.lane.b32.xlu0 %v5192_v42, %s6853_s27 }
 0x99d   : > { %5413 = vrot.lane.b32.xlu1 %v5392_v35, %s6864_s3 }
 0x9a0   : > { %5267 = vrot.lane.b32.xlu0 %v5392_v35, %s6868_s26 }
 0x9a1   : > { %5462 = vrot.lane.b32.xlu1 %v5148_v21, %s6867_s30 }
 0x9a4   : > { %5316 = vrot.lane.b32.xlu0 %v5148_v21, %s6858_s20 }
 0x9a5   : > { %5511 = vrot.lane.b32.xlu1 %v5197_v43, %s6853_s27 }
 0x9a8   : > { %5365 = vrot.lane.b32.xlu0 %v5197_v43, %s6869_s14 }
 0x9a9   : > { %5409 = vrot.lane.b32.xlu1 %v5390_v19, %s6864_s3 }
 0x9ac   : > { %5263 = vrot.lane.b32.xlu0 %v5390_v19, %s6868_s26 }
 0x9ad   : > { %5458 = vrot.lane.b32.xlu1 %v5439_v44, %s6867_s30 }
 0x9b0   : > { %5312 = vrot.lane.b32.xlu0 %v5439_v44, %s6858_s20 }
 0x9b1   : > { %5167 = vrot.lane.b32.xlu1 %v5439_v44, %s6866_s2 }
 0x9b4   : > { %5361 = vrot.lane.b32.xlu0 %v5341_v48, %s6869_s14 }
 0x9b5   : > { %5507 = vrot.lane.b32.xlu1 %v5341_v48, %s6853_s27 }
 0x9b8   : > { %5415 = vrot.lane.b32.xlu0 %v5393_v49, %s6864_s3 }
 0x9b9   : > { %5216 = vrot.lane.b32.xlu1 %v5341_v48, %s6862_s21 }
 0x9bc   : > { %5464 = vrot.lane.b32.xlu0 %v5442_v51, %s6867_s30 }
 0x9bd   : > { %5269 = vrot.lane.b32.xlu1 %v5393_v49, %s6868_s26 }
 0x9c0   : > { %5169 = vrot.lane.b32.xlu0 %v5147_v52, %s6866_s2  ;;  %s602_s2 = scalar_lea.vmem %s9094_s19, %s9111_s22 }
 0x9c1   : > { %5318 = vrot.lane.b32.xlu1 %v5442_v51, %s6858_s20 }
 0x9c4   : > { %5218 = vrot.lane.b32.xlu0 %v5196_v56, %s6862_s21 }
 0x9c5   : > { %5367 = vrot.lane.b32.xlu1 %v5344_v58, %s6869_s14 }
 0x9c8   : > { %5411 = vrot.lane.b32.xlu0 %v5391_v36, %s6864_s3 }
 0x9c9   : > { %5265 = vrot.lane.b32.xlu1 %v5391_v36, %s6868_s26 }
 0x9cc   : > { %5460 = vrot.lane.b32.xlu0 %v5147_v52, %s6867_s30 }
 0x9cd   : > { %5314 = vrot.lane.b32.xlu1 %v5147_v52, %s6858_s20 }
 0x9d0   : > { %5509 = vrot.lane.b32.xlu0 %v5196_v56, %s6853_s27 }
 0x9d1   : > { %5363 = vrot.lane.b32.xlu1 %v5196_v56, %s6869_s14 }
 0x9d2   : > { %v5260_v40 = vpop.permute.xlu0 %5259 }
 0x9d3   : > { %v5164_v50 = vpop.permute.xlu1 %5163 }
 0x9d4   : > { %5185 = vst.msk [vmem:[#allocation9 + $0xd8] sm:$0xff] %vm5181_vm13, %v5164_v50  ;;  %5513 = vrot.lane.b32.xlu0 %v5344_v58, %s6853_s27 }
 0x9d5   : > { %5515 = vrot.lane.b32.xlu1 %v5492_v60, %s6853_s27 }
 0x9d6   : > { %v5309_v61 = vpop.permute.xlu0 %5308 }
 0x9d7   : > { %v5213_v62 = vpop.permute.xlu1 %5212 }
 0x9d8   : > { %5234 = vst.msk [vmem:[#allocation9 + $0xd8] sm:$0xff] %vm5230_vm14, %v5213_v62 }
 0x9da   : > { %v5358_v63 = vpop.permute.xlu0 %5357 }
 0x9db   : > { %v5406_v0 = vpop.permute.xlu1 %5405 }
 0x9de   : > { %v5256_v3 = vpop.permute.xlu0 %5255 }
 0x9df   : > { %v5455_v34 = vpop.permute.xlu1 %5454  ;;  %5280 = vst.msk [vmem:[#allocation9] sm:$0xff] %vm5279_vm1, %v5256_v3 }
 0x9e2   : > { %v5305_v4 = vpop.permute.xlu0 %5304 }
 0x9e3   : > { %v5504_v59 = vpop.permute.xlu1 %5503  ;;  %5329 = vst.msk [vmem:[#allocation9] sm:$0xff] %vm5328_vm2, %v5305_v4 }
 0x9e6   : > { %v5354_v53 = vpop.permute.xlu0 %5353 }
 0x9e7   : > { %v5160_v55 = vpop.permute.xlu1 %5159  ;;  %5378 = vst.msk [vmem:[#allocation9] sm:$0xff] %vm5377_vm3, %v5354_v53 }
 0x9e8   : > { %5183 = vst.msk [vmem:[#allocation9 + $0x48] sm:$0xff] %vm5181_vm13, %v5160_v55 }
 0x9ea   : > { %v5408_v8 = vpop.permute.xlu0 %5407 }
 0x9eb   : > { %v5209_v54 = vpop.permute.xlu1 %5208 }
 0x9ec   : > { %5232 = vst.msk [vmem:[#allocation9 + $0x48] sm:$0xff] %vm5230_vm14, %v5209_v54 }
 0x9ee   : > { %v5457_v5 = vpop.permute.xlu0 %5456 }
 0x9ef   : > { %v5262_v37 = vpop.permute.xlu1 %5261 }
 0x9f0   : > { %5283 = vst.msk [vmem:[#allocation9 + $0xd8] sm:$0xff] %vm5279_vm1, %v5262_v37 }
 0x9f2   : > { %v5166_v10 = vpop.permute.xlu0 %5165 }
 0x9f3   : > { %v5311_v11 = vpop.permute.xlu1 %5310  ;;  %5186 = vst.msk [vmem:[#allocation9 + $0x120] sm:$0xff] %vm5181_vm13, %v5166_v10 }
 0x9f4   : > { %5332 = vst.msk [vmem:[#allocation9 + $0xd8] sm:$0xff] %vm5328_vm2, %v5311_v11  ;;  %v6870_v11 = vmov 0.0|0.0  }
 0x9f5   : > { %6604 = vmatprep.subr.bf16.mxu0 %v6870_v11  ;;  %6616 = vmatprep.subr.bf16.mxu1 %v6870_v11 }
 0x9f6   : > { %v5506_v12 = vpop.permute.xlu0 %5505 }
 0x9f7   : > { %v5360_v13 = vpop.permute.xlu1 %5359 }
 0x9f8   : > { %5381 = vst.msk [vmem:[#allocation9 + $0xd8] sm:$0xff] %vm5377_vm3, %v5360_v13 }
 0x9fa   : > { %v5215_v14 = vpop.permute.xlu0 %5214 }
 0x9fb   : > { %v5258_v15 = vpop.permute.xlu1 %5257  ;;  %5235 = vst.msk [vmem:[#allocation9 + $0x120] sm:$0xff] %vm5230_vm14, %v5215_v14 }
 0x9fc   : > { %5281 = vst.msk [vmem:[#allocation9 + $0x48] sm:$0xff] %vm5279_vm1, %v5258_v15 }
 0x9fe   : > { %v5162_v16 = vpop.permute.xlu0 %5161 }
 0x9ff   : > { %v5307_v6 = vpop.permute.xlu1 %5306  ;;  %5184 = vst.msk [vmem:[#allocation9 + $0x90] sm:$0xff] %vm5181_vm13, %v5162_v16 }
 0xa00   : > { %5330 = vst.msk [vmem:[#allocation9 + $0x48] sm:$0xff] %vm5328_vm2, %v5307_v6 }
 0xa02   : > { %v5211_v17 = vpop.permute.xlu0 %5210 }
 0xa03   : > { %v5356_v18 = vpop.permute.xlu1 %5355  ;;  %5233 = vst.msk [vmem:[#allocation9 + $0x90] sm:$0xff] %vm5230_vm14, %v5211_v17 }
 0xa04   : > { %5379 = vst.msk [vmem:[#allocation9 + $0x48] sm:$0xff] %vm5377_vm3, %v5356_v18 }
 0xa05   : > { %5282 = vst.msk [vmem:[#allocation9 + $0x90] sm:$0xff] %vm5279_vm1, %v5260_v40 }
 0xa06   : > { %5429 = vst.msk [vmem:[#allocation9 + $0x48] sm:$0xff] %vm5427_vm4, %v5406_v0  ;;  %v5404_v2 = vpop.permute.xlu0 %5403 }
 0xa07   : > { %5331 = vst.msk [vmem:[#allocation9 + $0x90] sm:$0xff] %vm5328_vm2, %v5309_v61  ;;  %v5172_v9 = vpop.permute.xlu1 %5171 }
 0xa08   : > { %5478 = vst.msk [vmem:[#allocation9 + $0x48] sm:$0xff] %vm5476_vm5, %v5455_v34 }
 0xa09   : > { %5380 = vst.msk [vmem:[#allocation9 + $0x90] sm:$0xff] %vm5377_vm3, %v5358_v63 }
 0xa0a   : > { %5527 = vst.msk [vmem:[#allocation9 + $0x48] sm:$0xff] %vm5525_vm6, %v5504_v59  ;;  %v5453_v20 = vpop.permute.xlu0 %5452  ;;  %v6089_v59 = vld [vmem:[#allocation10] ss:$0 sm:$0xff] }
 0xa0b   : > { %5430 = vst.msk [vmem:[#allocation9 + $0x90] sm:$0xff] %vm5427_vm4, %v5408_v8  ;;  %5428 = vst.msk [vmem:[#allocation9] sm:$0xff] %vm5427_vm4, %v5404_v2  ;;  %v5221_v22 = vpop.permute.xlu1 %5220  ;;  %v6840_v2 = vld [vmem:[#allocation2] sm:$0xff] }
 0xa0c   : > { %5189 = vst.msk [vmem:[#allocation9 + $0x1f8] sm:$0xff] %vm5181_vm13, %v5172_v9  ;;  %6601 = vmatprep.mubr.msk.f32.mxu1 %vm6871_vm8, %v6840_v2  ;;  %v5777_v9 = vld [vmem:[%s9093_s17] sm:$0xff] }
 0xa0d   : > { %5479 = vst.msk [vmem:[#allocation9 + $0x90] sm:$0xff] %vm5476_vm5, %v5457_v5  ;;  %5477 = vst.msk [vmem:[#allocation9] sm:$0xff] %vm5476_vm5, %v5453_v20  ;;  %v5778_v20 = vld [vmem:[%s9093_s17 + $0x8] sm:$0xff] }
 0xa0e   : > { %5528 = vst.msk [vmem:[#allocation9 + $0x90] sm:$0xff] %vm5525_vm6, %v5506_v12  ;;  %v5502_v23 = vpop.permute.xlu0 %5501 }
 0xa0f   : > { %5238 = vst.msk [vmem:[#allocation9 + $0x1f8] sm:$0xff] %vm5230_vm14, %v5221_v22  ;;  %v8940_v24 = vpop.permute.xlu1 %5413  ;;  %v5779_v22 = vld [vmem:[%s9093_s17 + $0x10] sm:$0xff] }
 0xa10   : > { %5526 = vst.msk [vmem:[#allocation9] sm:$0xff] %vm5525_vm6, %v5502_v23  ;;  %v6617_v23 = vpack.c.bf16 %v5778_v20, %v5777_v9 }
 0xa11   : > { %v5535_v29 = vld [vmem:[#allocation9 + $0x48] sm:$0xff] }
 0xa12   : > { %v5268_v25 = vpop.permute.xlu0 %5267  ;;  %6618 = vmatpush3.bf16.msra.mxu1 %v6617_v23 }
 0xa13   : > { %v5463_v7 = vpop.permute.xlu1 %5462  ;;  %6619 = vmatprep.subr.bf16.mxu1 %v6870_v11 }
 0xa15   : > { %v5536_v45 = vld [vmem:[#allocation9 + $0x90] sm:$0xff] }
 0xa16   : > { %v5317_v26 = vpop.permute.xlu0 %5316 }
 0xa17   : > { %v5512_v28 = vpop.permute.xlu1 %5511  ;;  %v5534_v27 = vld [vmem:[#allocation9] sm:$0xff] }
 0xa18   : > { %v5542_v30 = vpack.c.bf16 %v5535_v29, %v5534_v27  ;;  %v5783_v27 = vld [vmem:[%s9093_s17 + $0x30] sm:$0xff]  ;;  %v5784_v29 = vld [vmem:[%s9093_s17 + $0x38] sm:$0xff] }
 0xa1a   : > { %6542 = vmatprep.mubr.msk.bf16.mxu0 %vm5565_vm7, %v5542_v30  ;;  %v5366_v1 = vpop.permute.xlu0 %5365  ;;  %v6626_v30 = vpack.c.bf16 %v5784_v29, %v5783_v27 }
 0xa1b   : > { %v5410_v31 = vpop.permute.xlu1 %5409 }
 0xa1c   : > { %5431 = vst.msk [vmem:[#allocation9 + $0xd8] sm:$0xff] %vm5427_vm4, %v5410_v31  ;;  %v5786_v31 = vld [vmem:[%s9093_s17 + $0x48] sm:$0xff] }
 0xa1e   : > { %v5264_v32 = vpop.permute.xlu0 %5263 }
 0xa1f   : > { %v5459_v33 = vpop.permute.xlu1 %5458  ;;  %5284 = vst.msk [vmem:[#allocation9 + $0x120] sm:$0xff] %vm5279_vm1, %v5264_v32 }
 0xa20   : > { %5480 = vst.msk [vmem:[#allocation9 + $0xd8] sm:$0xff] %vm5476_vm5, %v5459_v33  ;;  %v5787_v33 = vld [vmem:[%s9093_s17 + $0x50] sm:$0xff] }
 0xa22   : > { %v5313_v35 = vpop.permute.xlu0 %5312 }
 0xa23   : > { %v5168_v19 = vpop.permute.xlu1 %5167  ;;  %5333 = vst.msk [vmem:[#allocation9 + $0x120] sm:$0xff] %vm5328_vm2, %v5313_v35  ;;  %v5788_v35 = vld [vmem:[%s9093_s17 + $0x58] sm:$0xff] }
 0xa24   : > { %5187 = vst.msk [vmem:[#allocation9 + $0x168] sm:$0xff] %vm5181_vm13, %v5168_v19  ;;  %v6632_v19 = vpack.c.bf16 %v5788_v35, %v5787_v33 }
 0xa26   : > { %v5362_v36 = vpop.permute.xlu0 %5361 }
 0xa27   : > { %v5508_v38 = vpop.permute.xlu1 %5507  ;;  %5382 = vst.msk [vmem:[#allocation9 + $0x120] sm:$0xff] %vm5377_vm3, %v5362_v36  ;;  %v5789_v36 = vld [vmem:[%s9093_s17 + $0x60] sm:$0xff] }
 0xa28   : > { %5529 = vst.msk [vmem:[#allocation9 + $0xd8] sm:$0xff] %vm5525_vm6, %v5508_v38  ;;  %v5790_v38 = vld [vmem:[%s9093_s17 + $0x68] sm:$0xff] }
 0xa2a   : > { %v5416_v41 = vpop.permute.xlu0 %5415 }
 0xa2b   : > { %v5217_v42 = vpop.permute.xlu1 %5216 }
 0xa2c   : > { %5236 = vst.msk [vmem:[#allocation9 + $0x168] sm:$0xff] %vm5230_vm14, %v5217_v42  ;;  %v5791_v42 = vld [vmem:[%s9093_s17 + $0x70] sm:$0xff] }
 0xa2e   : > { %v5465_v21 = vpop.permute.xlu0 %5464 }
 0xa2f   : > { %v5270_v43 = vpop.permute.xlu1 %5269  ;;  %v5537_v44 = vld [vmem:[#allocation9 + $0xd8] sm:$0xff] }
 0xa30   : > { %5287 = vst.msk [vmem:[#allocation9 + $0x1f8] sm:$0xff] %vm5279_vm1, %v5270_v43  ;;  %v5543_v46 = vpack.c.bf16 %v5537_v44, %v5536_v45  ;;  %v5647_v45 = vld [vmem:[%s9091_s15] sm:$0xff] }
 0xa32   : > { %6543 = vmatmul.mubr.msk.bf16.vlgmr.msra.gmra.mrb[84].mxu0 %vm5565_vm7, %v5543_v46  ;;  %v5170_v47 = vpop.permute.xlu0 %5169  ;;  %v5648_v46 = vld [vmem:[%s9091_s15 + $0x8] sm:$0xff] }
 0xa33   : > { %v5319_v48 = vpop.permute.xlu1 %5318  ;;  %5188 = vst.msk [vmem:[#allocation9 + $0x1b0] sm:$0xff] %vm5181_vm13, %v5170_v47 }
 0xa34   : > { %5336 = vst.msk [vmem:[#allocation9 + $0x1f8] sm:$0xff] %vm5328_vm2, %v5319_v48 }
 0xa36   : > { %v5219_v49 = vpop.permute.xlu0 %5218 }
 0xa37   : > { %v5368_v51 = vpop.permute.xlu1 %5367  ;;  %5237 = vst.msk [vmem:[#allocation9 + $0x1b0] sm:$0xff] %vm5230_vm14, %v5219_v49 }
 0xa38   : > { %5385 = vst.msk [vmem:[#allocation9 + $0x1f8] sm:$0xff] %vm5377_vm3, %v5368_v51  ;;  %v5650_v51 = vld [vmem:[%s9091_s15 + $0x18] sm:$0xff] }
 0xa39   : > { %5286 = vst.msk [vmem:[#allocation9 + $0x1b0] sm:$0xff] %vm5279_vm1, %v5268_v25 }
 0xa3a   : > { %5435 = vst.msk [vmem:[#allocation9 + $0x1f8] sm:$0xff] %vm5427_vm4, %v8898_v39  ;;  %v5412_v52 = vpop.permute.xlu0 %5411 }
 0xa3b   : > { %5335 = vst.msk [vmem:[#allocation9 + $0x1b0] sm:$0xff] %vm5328_vm2, %v5317_v26  ;;  %v5266_v56 = vpop.permute.xlu1 %5265  ;;  %v5782_v26 = vld [vmem:[%s9093_s17 + $0x28] sm:$0xff] }
 0xa3c   : > { %5484 = vst.msk [vmem:[#allocation9 + $0x1f8] sm:$0xff] %vm5476_vm5, %v8904_v57 }
 0xa3d   : > { %5384 = vst.msk [vmem:[#allocation9 + $0x1b0] sm:$0xff] %vm5377_vm3, %v5366_v1  ;;  %v5785_v1 = vld [vmem:[%s9093_s17 + $0x40] sm:$0xff] }
 0xa3e   : > { %5434 = vst.msk [vmem:[#allocation9 + $0x1b0] sm:$0xff] %vm5427_vm4, %v5416_v41  ;;  %5432 = vst.msk [vmem:[#allocation9 + $0x120] sm:$0xff] %vm5427_vm4, %v5412_v52  ;;  %v5461_v58 = vpop.permute.xlu0 %5460  ;;  %v6629_v32 = vpack.c.bf16 %v5786_v31, %v5785_v1  ;;  %v6635_v41 = vpack.c.bf16 %v5790_v38, %v5789_v36 }
 0xa3f   : > { %5285 = vst.msk [vmem:[#allocation9 + $0x168] sm:$0xff] %vm5279_vm1, %v5266_v56  ;;  %v5315_v60 = vpop.permute.xlu1 %5314  ;;  %v5649_v56 = vld [vmem:[%s9091_s15 + $0x10] sm:$0xff] }
 0xa40   : > { %5483 = vst.msk [vmem:[#allocation9 + $0x1b0] sm:$0xff] %vm5476_vm5, %v5465_v21  ;;  %5481 = vst.msk [vmem:[#allocation9 + $0x120] sm:$0xff] %vm5476_vm5, %v5461_v58  ;;  %v5792_v21 = vld [vmem:[%s9093_s17 + $0x78] sm:$0xff] }
 0xa41   : > { %5334 = vst.msk [vmem:[#allocation9 + $0x168] sm:$0xff] %vm5328_vm2, %v5315_v60  ;;  %v6638_v43 = vpack.c.bf16 %v5792_v21, %v5791_v42 }
 0xa42   : > { %v5510_v39 = vpop.permute.xlu0 %5509 }
 0xa43   : > { %v5364_v57 = vpop.permute.xlu1 %5363  ;;  %5530 = vst.msk [vmem:[#allocation9 + $0x120] sm:$0xff] %vm5525_vm6, %v5510_v39 }
 0xa44   : > { %5383 = vst.msk [vmem:[#allocation9 + $0x168] sm:$0xff] %vm5377_vm3, %v5364_v57 }
 0xa45   : > { %5433 = vst.msk [vmem:[#allocation9 + $0x168] sm:$0xff] %vm5427_vm4, %v8940_v24  ;;  %v5780_v24 = vld [vmem:[%s9093_s17 + $0x18] sm:$0xff] }
 0xa46   : > { %5482 = vst.msk [vmem:[#allocation9 + $0x168] sm:$0xff] %vm5476_vm5, %v5463_v7  ;;  %v5514_v40 = vpop.permute.xlu0 %5513  ;;  %v6620_v25 = vpack.c.bf16 %v5780_v24, %v5779_v22  ;;  %v5781_v7 = vld [vmem:[%s9093_s17 + $0x20] sm:$0xff] }
 0xa47   : > { %5531 = vst.msk [vmem:[#allocation9 + $0x168] sm:$0xff] %vm5525_vm6, %v5512_v28  ;;  %v5516_v50 = vpop.permute.xlu1 %5515  ;;  %5532 = vst.msk [vmem:[#allocation9 + $0x1b0] sm:$0xff] %vm5525_vm6, %v5514_v40  ;;  %v6623_v28 = vpack.c.bf16 %v5782_v26, %v5781_v7 }
 0xa48   : > { %5533 = vst.msk [vmem:[#allocation9 + $0x1f8] sm:$0xff] %vm5525_vm6, %v5516_v50  ;;  %6621 = vmatpush3.bf16.msra.mxu1 %v6620_v25  ;;  %v5651_v50 = vld [vmem:[%s9091_s15 + $0x20] sm:$0xff] }
 0xa49   : > { %6622 = vmatprep.subr.bf16.mxu1 %v6870_v11 }
 0xa4a   : > { %v5538_v61 = vld [vmem:[#allocation9 + $0x120] sm:$0xff] }
 0xa4c   : > { %6624 = vmatpush3.bf16.msra.mxu1 %v6623_v28 }
 0xa4d   : > { %6625 = vmatprep.subr.bf16.mxu1 %v6870_v11 }
 0xa4e   : > { %v5539_v62 = vld [vmem:[#allocation9 + $0x168] sm:$0xff]  ;;  %v5540_v0 = vld [vmem:[#allocation9 + $0x1b0] sm:$0xff] }
 0xa4f   : > { %v5544_v63 = vpack.c.bf16 %v5539_v62, %v5538_v61  ;;  %v5541_v34 = vld [vmem:[#allocation9 + $0x1f8] sm:$0xff]  ;;  %v5652_v62 = vld [vmem:[%s9091_s15 + $0x28] sm:$0xff] }
 0xa50   : > { %v5545_v3 = vpack.c.bf16 %v5541_v34, %v5540_v0  ;;  %6627 = vmatpush3.bf16.msra.mxu1 %v6626_v30 }
 0xa51   : > { %6546 = vmatprep.mubr.msk.bf16.mxu0 %vm5565_vm7, %v5544_v63  ;;  %6628 = vmatprep.subr.bf16.mxu1 %v6870_v11 }
 0xa52   : > { %6547 = vmatmul.mubr.msk.bf16.gmra.mrb[88].mxu0 %vm5565_vm7, %v5545_v3  ;;  %v5653_v3 = vld [vmem:[%s9091_s15 + $0x30] sm:$0xff] }
 0xa53   : > { %6566 = vmatprep.mubr.msk.f32.mxu0 %vm6871_vm8, %v6840_v2 }
 0xa54   : > { %6630 = vmatpush3.bf16.msra.mxu1 %v6629_v32 }
 0xa55   : > { %6631 = vmatprep.subr.bf16.mxu1 %v6870_v11 }
 0xa58   : > { %6633 = vmatpush3.bf16.msra.mxu1 %v6632_v19 }
 0xa59   : > { %6634 = vmatprep.subr.bf16.mxu1 %v6870_v11 }
 0xa5c   : > { %6636 = vmatpush3.bf16.msra.mxu1 %v6635_v41 }
 0xa5d   : > { %6637 = vmatprep.subr.bf16.mxu1 %v6870_v11 }
 0xa60   : > { %6639 = vmatpush3.bf16.msra.mxu1 %v6638_v43 }
 0xb05   : > { %v6544_v4 = vpop.f32.mrb[84].mxu0 }
 0xb06   : > { %v5616_v53 = vpop.f32.mrb[85].mxu0  ;;  %v5625_v10 = vadd.f32 %v6544_v4, %v6089_v59  ;;  %v5654_v4 = vld [vmem:[%s9091_s15 + $0x38] sm:$0xff] }
 0xb07   : > { %v5617_v55 = vadd.f32 %v6089_v59, %v5616_v53  ;;  %v6545_v8 = vpop.f32.mrb[86].mxu0 }
 0xb08   : > { %v5619_v54 = vpop.f32.mrb[87].mxu0  ;;  %v5628_v37 = vadd.f32 %v6545_v8, %v6089_v59 }
 0xb09   : > { %v5620_v5 = vadd.f32 %v6089_v59, %v5619_v54  ;;  %5657 = vperm.xlu0 %6690, %v5617_v55  }
 0xb0b   : > { %5662 = vperm.xlu1 %6691, %v5620_v5  }
 0xb0d   : > { %5672 = vperm.xlu0 %6690, %v5628_v37   ;;  %v5703_v37 = vld [vmem:[%s9092_s16] sm:$0x1] }
 0xb0f   : > { %5667 = vperm.xlu1 %6691, %v5625_v10  }
 0xb25   : > { %v6548_v12 = vpop.f32.mrb[88].mxu0 }
 0xb26   : > { %v5632_v13 = vpop.f32.mrb[89].mxu0  ;;  %v5641_v17 = vadd.f32 %v6548_v12, %v6089_v59 }
 0xb27   : > { %v5633_v14 = vadd.f32 %v6089_v59, %v5632_v13  ;;  %v6549_v15 = vpop.f32.mrb[90].mxu0  ;;  %v5793_v13 = vld [vmem:[#allocation11] sm:$0x1] }
 0xb28   : > { %v5635_v16 = vpop.f32.mrb[91].mxu0  ;;  %v5644_v18 = vadd.f32 %v6549_v15, %v6089_v59 }
 0xb29   : > { %v5636_v6 = vadd.f32 %v6089_v59, %v5635_v16  ;;  %5677 = vperm.xlu1 %6691, %v5633_v14  }
 0xb2b   : > { %5682 = vperm.xlu0 %6690, %v5636_v6  }
 0xb2d   : > { %5687 = vperm.xlu1 %6691, %v5641_v17  }
 0xb2f   : > { %5692 = vperm.xlu0 %6690, %v5644_v18  }
 0xb88   : > { %v5658_v44 = vpop.permute.xlu0 %5657 }
 0xb89   : > { %v5695_v48 = vmul.f32 %v5658_v44, %v5647_v45 }
 0xb8a   : > { %v5663_v47 = vpop.permute.xlu1 %5662 }
 0xb8b   : > { %v5696_v49 = vmul.f32 %v5663_v47, %v5648_v46 }
 0xb8c   : > { %v5673_v52 = vpop.permute.xlu0 %5672 }
 0xb8d   : > { %v6605_v58 = vpack.c.bf16 %v5696_v49, %v5695_v48  ;;  %v5698_v39 = vmul.f32 %v5673_v52, %v5650_v51 }
 0xb8e   : > { %v5668_v60 = vpop.permute.xlu1 %5667 }
 0xb8f   : > { %v5697_v57 = vmul.f32 %v5668_v60, %v5649_v56  ;;  %6606 = vmatpush3.bf16.msra.mxu0 %v6605_v58 }
 0xb90   : > { %6607 = vmatprep.subr.bf16.mxu0 %v6870_v11 }
 0xb91   : > { %v6608_v40 = vpack.c.bf16 %v5698_v39, %v5697_v57 }
 0xb93   : > { %6609 = vmatpush3.bf16.msra.mxu0 %v6608_v40 }
 0xb94   : > { %6610 = vmatprep.subr.bf16.mxu0 %v6870_v11 }
 0xba8   : > { %v5678_v61 = vpop.permute.xlu1 %5677 }
 0xba9   : > { %v5699_v0 = vmul.f32 %v5678_v61, %v5651_v50 }
 0xbaa   : > { %v5683_v63 = vpop.permute.xlu0 %5682 }
 0xbab   : > { %v5700_v34 = vmul.f32 %v5683_v63, %v5652_v62 }
 0xbac   : > { %v5688_v59 = vpop.permute.xlu1 %5687 }
 0xbad   : > { %v6611_v53 = vpack.c.bf16 %v5700_v34, %v5699_v0  ;;  %v5701_v8 = vmul.f32 %v5688_v59, %v5653_v3 }
 0xbae   : > { %v5693_v55 = vpop.permute.xlu0 %5692 }
 0xbaf   : > { %v5702_v54 = vmul.f32 %v5693_v55, %v5654_v4  ;;  %6612 = vmatpush3.bf16.msra.mxu0 %v6611_v53 }
 0xbb0   : > { %6613 = vmatprep.subr.bf16.mxu0 %v6870_v11 }
 0xbb1   : > { %v6614_v5 = vpack.c.bf16 %v5702_v54, %v5701_v8 }
 0xbb3   : > { %6615 = vmatpush3.bf16.msra.mxu0 %v6614_v5 }
 0xbb6   : > { %6567 = vmatmul.mubr.msk.f32.vlgmr.msra.gmra.mrb[92].mxu0 %vm624_vm0, %v5703_v37 }
 0xc89   : > { %v5773_v10 = vpop.f32.mrb[92].mxu0 }
 0xc8a   : > { %v6568_v12 = vpop.f32.mrb[93].mxu0  ;;  %6602 = vmatmul.mubr.f32.vlgmr.msra.gmra.mrb[84].mxu1 %v5773_v10 }
 0xd5d   : > { %v5860_v14 = vpop.f32.mrb[84].mxu1 }
 0xd5e   : > { %v5861_v15 = vadd.f32 %v5860_v14, %v5793_v13  ;;  %v6603_v11 = vpop.f32.mrb[85].mxu1 }
 0xd60   : > { %5865 = vst.msk [vmem:[%s602_s2] sm:$0x1] %vm5864_vm9, %v5861_v15 }
 0xd61 PF: > { %s33_s1 = sadd.s32 1, %s6847_s1  }
 0xd62   : > { %p30_p4 = scmp.ge.s32.totalorder %s33_s1, 4  }
 0xd64   :  { %32 = sbr.rel (!%p30_p4) target bundleno = 5 (0x5), region = 140 }

</bundles_post_ra>
